<compile_context>
chip_gen: v7x
topology: tpu7x:2x2x1
jax: 0.10.0
libtpu: 0.0.40
codegen_flags: <defaults>
</compile_context>

<pallas_src>
import math
import jax
import jax.numpy as jnp
from jax.experimental import pallas as pl
from jax.experimental.pallas import tpu as pltpu

# ------------------------ config (module defaults: dim_head=64, heads=8, ff_mult=4) ----
DIM = 64
DEPTH = 2
DIM_HEAD = 64
HEADS = 8
FF_MULT = 4
INNER = DIM_HEAD * HEADS          # 512
FF_INNER = DIM * FF_MULT          # 256 (SwiGLU -> first linear outputs 2*FF_INNER)
SEQ = 8
BATCH = 2
M = BATCH * SEQ                   # 16  (batch folded into matmul M dim)
NK = 16                           # padded key count: 8 real + 1 null + 7 pad
ROT_DIM = 32                      # RotaryEmbedding(dim=min(32, dim_head))
NUM_BUCKETS = 32                  # RelPosBias defaults
MAX_DISTANCE = 128
COSINE_SIM_SCALE = 16.0
LN_EPS = 1e-5
NEG_MASK = -1e30

F32 = jnp.float32


# ------------------------ shared math helpers (kernel + JAX reference) ------------------
def _ln(x, g, eps=LN_EPS):
    # DALLE2 LayerNorm: gamma only, biased variance.
    mu = jnp.mean(x, axis=-1, keepdims=True)
    var = jnp.mean((x - mu) ** 2, axis=-1, keepdims=True)
    return (x - mu) * jax.lax.rsqrt(var + eps) * g


def _stable_ln(x, g, eps=LN_EPS):
    # LayerNorm(dim, stable=True): divide by amax first.
    x = x / jnp.max(x, axis=-1, keepdims=True)
    return _ln(x, g, eps)


def _l2norm(x):
    ss = jnp.sum(x * x, axis=-1, keepdims=True)
    return x * jax.lax.rsqrt(jnp.maximum(ss, 1e-24))


def _silu(x):
    return x * jax.nn.sigmoid(x)


def _rope(t, cos, sin, rot):
    # interleaved rotary: t*cos + rotate_half(t)*sin ; rotate_half == t @ rot (constant)
    return t * cos + jnp.dot(t, rot, preferred_element_type=F32) * sin


# ------------------------ the single fused Pallas kernel --------------------------------
def transformer_kernel(x_ref, bias_ref, cosk_ref, sink_ref, cosq_ref, sinq_ref, rot_ref,
                       g_attn_ref, wqkv_ref, nk_ref, nv_ref, wout_ref, g_aout_ref,
                       g_ff_ref, w1_ref, w2_ref, g_fin_ref, wproj_ref, o_ref):
    x = x_ref[...]                       # (M, DIM)      residual stream, batch folded in
    bias = bias_ref[...]                 # (H*S, NK)     rel-pos bias + causal + pad mask
    cos_k = cosk_ref[...]                # (M, Dh)
    sin_k = sink_ref[...]
    cos_q = cosq_ref[...]                # (B*H*S, Dh)
    sin_q = sinq_ref[...]
    rot = rot_ref[...]                   # (Dh, Dh)      rotate-half matrix

    for l in range(DEPTH):
        # ---------------- Attention ----------------
        xn = _ln(x, g_attn_ref[l])
        qkv = jnp.dot(xn, wqkv_ref[l], preferred_element_type=F32)     # (M, H*Dh + 2*Dh)
        k = qkv[:, INNER:INNER + DIM_HEAD]                             # (M, Dh)  multi-query
        v = qkv[:, INNER + DIM_HEAD:]                                  # (M, Dh)
        k = _rope(k, cos_k, sin_k, rot)

        # stack q heads along sublanes: rows ordered (batch, head, pos)
        q_stk = jnp.concatenate(
            [qkv[b * SEQ:(b + 1) * SEQ, h * DIM_HEAD:(h + 1) * DIM_HEAD]
             for b in range(BATCH) for h in range(HEADS)], axis=0)      # (B*H*S, Dh)
        q_stk = _l2norm(_rope(q_stk, cos_q, sin_q, rot))               # one rope / one l2norm

        outs = []
        for b in range(BATCH):                 # only QK^T / softmax / PV is per-batch
            # sublane-aligned 16-row keys/values: rows 0..7 real, row 8 null, 9..15 pad
            k_ext = jnp.concatenate([k[b * SEQ:(b + 1) * SEQ, :], nk_ref[l]], axis=0)
            v_ext = jnp.concatenate([v[b * SEQ:(b + 1) * SEQ, :], nv_ref[l]], axis=0)
            k_ext = _l2norm(k_ext) * COSINE_SIM_SCALE     # full 16x scale applied once

            q_b = q_stk[b * HEADS * SEQ:(b + 1) * HEADS * SEQ, :]       # (H*S, Dh)
            sim = jax.lax.dot_general(q_b, k_ext, (((1,), (1,)), ((), ())),
                                      preferred_element_type=F32)       # (H*S, NK)
            sim = sim + bias                                            # bias incl. masks
            mx = jnp.max(sim, axis=-1, keepdims=True)
            p = jnp.exp(sim - mx)
            den = jnp.sum(p, axis=-1, keepdims=True)
            r = pl.reciprocal(den, approx=True)
            r = r * (2.0 - den * r)            # one Newton step -> full f32 accuracy
            p = p * r
            o_b = jnp.dot(p, v_ext, preferred_element_type=F32)         # (H*S, Dh)
            # (head, pos) rows -> (pos, head*Dh) lanes for the output projection
            outs.append(jnp.concatenate(
                [o_b[h * SEQ:(h + 1) * SEQ, :] for h in range(HEADS)], axis=1))  # (S, H*Dh)

        attn = jnp.concatenate(outs, axis=0)                            # (M, H*Dh)
        proj = jnp.dot(attn, wout_ref[l], preferred_element_type=F32)   # (M, DIM)
        x = x + _ln(proj, g_aout_ref[l])                                # to_out LayerNorm

        # ---------------- FeedForward: LN -> Linear -> SwiGLU -> Linear (+ residual) ----
        xn = _ln(x, g_ff_ref[l])
        hh = jnp.dot(xn, w1_ref[l], preferred_element_type=F32)         # (M, 2*ff_inner)
        hsw = hh[:, :FF_INNER] * _silu(hh[:, FF_INNER:])
        x = x + jnp.dot(hsw, w2_ref[l], preferred_element_type=F32)

    # ---------------- final stable LayerNorm + output projection (bias-free) ------------
    x = _stable_ln(x, g_fin_ref[...])
    o_ref[...] = jnp.dot(x, wproj_ref[...], preferred_element_type=F32)


# ------------------------ wrapper (single pallas_call, jitted) ---------------------------
def _pallas_forward(params, x):
    x2 = x.reshape(M, DIM)
    args = (x2, params["bias_hi"], params["cos_k"], params["sin_k"],
            params["cos_q"], params["sin_q"], params["rot"],
            params["g_attn"], params["wqkv"], params["null_k_pad"], params["null_v_pad"],
            params["wout"], params["g_aout"], params["g_ff"],
            params["w1"], params["w2"], params["g_fin"], params["wproj"])
    out = pl.pallas_call(
        transformer_kernel,
        out_shape=jax.ShapeDtypeStruct((M, DIM), F32),
        in_specs=[pl.BlockSpec(memory_space=pltpu.MemorySpace.VMEM) for _ in args],
        out_specs=pl.BlockSpec(memory_space=pltpu.MemorySpace.VMEM),
    )(*args)
    return out.reshape(BATCH, SEQ, DIM)


flagged_causal_transformer_forward = jax.jit(_pallas_forward)


# ------------------------ static precomputation (plain JAX, init-time only) --------------
def _rel_pos_bias(emb_w, i, j):
    # RelPosBias.forward(i, j): T5-style bucketed relative positions, Embedding gather.
    q_pos = jnp.arange(i)
    k_pos = jnp.arange(j)
    rel = k_pos[None, :] - q_pos[:, None]
    n = jnp.maximum(-rel, 0)
    max_exact = NUM_BUCKETS // 2
    is_small = n < max_exact
    safe = jnp.maximum(n, 1).astype(F32)
    val_large = max_exact + (jnp.log(safe / max_exact)
                             / math.log(MAX_DISTANCE / max_exact)
                             * (NUM_BUCKETS - max_exact)).astype(jnp.int32)
    val_large = jnp.minimum(val_large, NUM_BUCKETS - 1)
    bucket = jnp.where(is_small, n, val_large)
    values = emb_w[bucket]                       # (i, j, H)
    return jnp.transpose(values, (2, 0, 1))      # (H, i, j)


def _rope_tables():
    inv_freq = 1.0 / (10000.0 ** (jnp.arange(0, ROT_DIM, 2, dtype=F32) / ROT_DIM))
    pos = jnp.arange(SEQ, dtype=F32)
    freqs = pos[:, None] * inv_freq[None, :]              # (n, ROT_DIM/2)
    freqs = jnp.repeat(freqs, 2, axis=-1)                 # interleaved duplicate (n, ROT_DIM)
    pad_c = jnp.ones((SEQ, DIM_HEAD - ROT_DIM), F32)
    pad_s = jnp.zeros((SEQ, DIM_HEAD - ROT_DIM), F32)
    return (jnp.concatenate([jnp.cos(freqs), pad_c], axis=-1),
            jnp.concatenate([jnp.sin(freqs), pad_s], axis=-1))


def _rotate_half_matrix():
    # (t @ rot)[2i] = -t[2i+1], (t @ rot)[2i+1] = t[2i]  (only within ROT_DIM)
    idx = jnp.arange(DIM_HEAD)
    r = idx[:, None]
    c = idx[None, :]
    plus = (c == r + 1) & (r % 2 == 0) & (r < ROT_DIM)
    minus = (c == r - 1) & (r % 2 == 1) & (r < ROT_DIM)
    return plus.astype(F32) - minus.astype(F32)


def init_params(key):
    ks = jax.random.split(key, 8)

    def nrm(k, shape, scale):
        return jax.random.normal(k, shape, F32) * scale

    wqkv = nrm(ks[0], (DEPTH, DIM, INNER + 2 * DIM_HEAD), 1.0 / math.sqrt(DIM))
    null_kv = nrm(ks[3], (DEPTH, 2, DIM_HEAD), 1.0)
    null_k_pad = jnp.zeros((DEPTH, NK - SEQ, DIM_HEAD), F32).at[:, 0, :].set(null_kv[:, 0])
    null_v_pad = jnp.zeros((DEPTH, NK - SEQ, DIM_HEAD), F32).at[:, 0, :].set(null_kv[:, 1])

    p = {
        "wqkv":       wqkv,
        "null_kv":    null_kv,
        "null_k_pad": null_k_pad,
        "null_v_pad": null_v_pad,
        "wout":       nrm(ks[2], (DEPTH, INNER, DIM), 1.0 / math.sqrt(INNER)),
        "w1":         nrm(ks[4], (DEPTH, DIM, 2 * FF_INNER), 1.0 / math.sqrt(DIM)),
        "w2":         nrm(ks[5], (DEPTH, FF_INNER, DIM), 1.0 / math.sqrt(FF_INNER)),
        "wproj":      nrm(ks[6], (DIM, DIM), 1.0 / math.sqrt(DIM)),
        "g_attn":     jnp.ones((DEPTH, 1, DIM), F32),
        "g_aout":     jnp.ones((DEPTH, 1, DIM), F32),
        "g_ff":       jnp.ones((DEPTH, 1, DIM), F32),
        "g_fin":      jnp.ones((1, DIM), F32),
    }

    # ---- T5 relative-position bias, causal mask and key padding folded together ----
    rel_w = nrm(ks[7], (NUM_BUCKETS, HEADS), 0.02)
    bias_full = _rel_pos_bias(rel_w, SEQ, SEQ + 1)            # (H, n, n+1): col 0 = null key
    p["bias_full"] = bias_full
    real = bias_full[:, :, 1:]                                # (H, n, n): real keys
    null = bias_full[:, :, :1]                                # (H, n, 1): null key
    ii = jnp.arange(SEQ)[None, :, None]
    jj = jnp.arange(SEQ)[None, None, :]
    real = jnp.where(jj > ii, NEG_MASK, real)                 # causal: key pos j > query pos i
    pad = jnp.full((HEADS, SEQ, NK - SEQ - 1), NEG_MASK, F32)
    p["bias_hi"] = jnp.concatenate([real, null, pad], axis=-1).reshape(HEADS * SEQ, NK)

    # ---- rotary tables (tiled to the folded batch / stacked-head row layouts) ----
    cos, sin = _rope_tables()                                 # (SEQ, Dh)
    p["cos_base"], p["sin_base"] = cos, sin
    p["cos_k"] = jnp.tile(cos, (BATCH, 1))                    # rows (b, i)
    p["sin_k"] = jnp.tile(sin, (BATCH, 1))
    p["cos_q"] = jnp.tile(cos, (BATCH * HEADS, 1))            # rows (b, h, i)
    p["sin_q"] = jnp.tile(sin, (BATCH * HEADS, 1))
    p["rot"] = _rotate_half_matrix()
    return p


# ------------------------ pure-JAX reference (faithful per-batch / per-head structure) ---
@jax.jit
def reference_forward(params, x):
    cos, sin, rot = params["cos_base"], params["sin_base"], params["rot"]
    bias = params["bias_full"]
    wq = params["wqkv"][:, :, :INNER]
    wk = params["wqkv"][:, :, INNER:INNER + DIM_HEAD]
    wv = params["wqkv"][:, :, INNER + DIM_HEAD:]
    r = jnp.arange(SEQ)[:, None]
    c = jnp.arange(SEQ + 1)[None, :]
    causal = c > r + 1
    neg_max = -jnp.finfo(F32).max
    sqrt_scale = math.sqrt(COSINE_SIM_SCALE)
    outs = []
    for b in range(BATCH):
        xb = x[b]
        for l in range(DEPTH):
            xn = _ln(xb, params["g_attn"][l])
            q_all = xn @ wq[l]
            k = _rope(xn @ wk[l], cos, sin, rot)
            v = xn @ wv[l]
            k_ext = jnp.concatenate([params["null_kv"][l][0:1], k], axis=0)
            v_ext = jnp.concatenate([params["null_kv"][l][1:2], v], axis=0)
            k_ext = _l2norm(k_ext) * sqrt_scale
            proj = jnp.zeros((SEQ, DIM), F32)
            for h in range(HEADS):
                q = q_all[:, h * DIM_HEAD:(h + 1) * DIM_HEAD] * COSINE_SIM_SCALE
                q = _l2norm(_rope(q, cos, sin, rot)) * sqrt_scale
                sim = q @ k_ext.T + bias[h]
                sim = jnp.where(causal, neg_max, sim)
                p_attn = jax.nn.softmax(sim, axis=-1)
                proj = proj + (p_attn @ v_ext) @ params["wout"][l][h * DIM_HEAD:(h + 1) * DIM_HEAD]
            xb = xb + _ln(proj, params["g_aout"][l])
            xn = _ln(xb, params["g_ff"][l])
            hh = xn @ params["w1"][l]
            xb = xb + (hh[:, :FF_INNER] * _silu(hh[:, FF_INNER:])) @ params["w2"][l]
        xb = _stable_ln(xb, params["g_fin"])
        outs.append(xb @ params["wproj"])
    return jnp.stack(outs, axis=0)


# ------------------------ main ------------------------------------------------------------
if __name__ == "__main__":
    key = jax.random.PRNGKey(0)
    k_p, k_x = jax.random.split(key)

    params = init_params(k_p)
    x = jax.random.normal(k_x, (BATCH, SEQ, DIM), F32)

    out = flagged_causal_transformer_forward(params, x)
    out = jax.block_until_ready(out)

    assert out.shape == (BATCH, SEQ, DIM), out.shape
    assert bool(jnp.all(jnp.isfinite(out)))

    ref = jax.block_until_ready(reference_forward(params, x))
    err = float(jnp.max(jnp.abs(out - ref)))
    assert bool(jnp.allclose(out, ref, atol=1e-3, rtol=1e-3)), err

    print("KERNEL_OK")
</pallas_src>

<mosaic_0001>
module attributes {stable_mosaic.version = 11 : i64} {
  func.func @transformer_kernel(%arg0: memref<16x64xf32, #tpu.memory_space<vmem>>, %arg1: memref<64x16xf32, #tpu.memory_space<vmem>>, %arg2: memref<16x64xf32, #tpu.memory_space<vmem>>, %arg3: memref<16x64xf32, #tpu.memory_space<vmem>>, %arg4: memref<128x64xf32, #tpu.memory_space<vmem>>, %arg5: memref<128x64xf32, #tpu.memory_space<vmem>>, %arg6: memref<64x64xf32, #tpu.memory_space<vmem>>, %arg7: memref<2x1x64xf32, #tpu.memory_space<vmem>>, %arg8: memref<2x64x640xf32, #tpu.memory_space<vmem>>, %arg9: memref<2x8x64xf32, #tpu.memory_space<vmem>>, %arg10: memref<2x8x64xf32, #tpu.memory_space<vmem>>, %arg11: memref<2x512x64xf32, #tpu.memory_space<vmem>>, %arg12: memref<2x1x64xf32, #tpu.memory_space<vmem>>, %arg13: memref<2x1x64xf32, #tpu.memory_space<vmem>>, %arg14: memref<2x64x512xf32, #tpu.memory_space<vmem>>, %arg15: memref<2x256x64xf32, #tpu.memory_space<vmem>>, %arg16: memref<1x64xf32, #tpu.memory_space<vmem>>, %arg17: memref<64x64xf32, #tpu.memory_space<vmem>>, %arg18: memref<16x64xf32, #tpu.memory_space<vmem>>) attributes {dimension_semantics = [], scalar_prefetch = 0 : i64, scratch_operands = 0 : i64, tpu.core_type = #tpu.core_type<tc>} {
    %c0 = arith.constant 0 : index
    %c0_0 = arith.constant 0 : index
    %0 = vector.load %arg0[%c0, %c0_0] : memref<16x64xf32, #tpu.memory_space<vmem>>, vector<16x64xf32>
    %c0_1 = arith.constant 0 : index
    %c0_2 = arith.constant 0 : index
    %1 = vector.load %arg1[%c0_1, %c0_2] : memref<64x16xf32, #tpu.memory_space<vmem>>, vector<64x16xf32>
    %c0_3 = arith.constant 0 : index
    %c0_4 = arith.constant 0 : index
    %2 = vector.load %arg2[%c0_3, %c0_4] : memref<16x64xf32, #tpu.memory_space<vmem>>, vector<16x64xf32>
    %c0_5 = arith.constant 0 : index
    %c0_6 = arith.constant 0 : index
    %3 = vector.load %arg3[%c0_5, %c0_6] : memref<16x64xf32, #tpu.memory_space<vmem>>, vector<16x64xf32>
    %c0_7 = arith.constant 0 : index
    %c0_8 = arith.constant 0 : index
    %4 = vector.load %arg4[%c0_7, %c0_8] : memref<128x64xf32, #tpu.memory_space<vmem>>, vector<128x64xf32>
    %c0_9 = arith.constant 0 : index
    %c0_10 = arith.constant 0 : index
    %5 = vector.load %arg5[%c0_9, %c0_10] : memref<128x64xf32, #tpu.memory_space<vmem>>, vector<128x64xf32>
    %c0_11 = arith.constant 0 : index
    %c0_12 = arith.constant 0 : index
    %6 = vector.load %arg6[%c0_11, %c0_12] : memref<64x64xf32, #tpu.memory_space<vmem>>, vector<64x64xf32>
    %c0_13 = arith.constant 0 : index
    %c0_14 = arith.constant 0 : index
    %c0_15 = arith.constant 0 : index
    %7 = vector.load %arg7[%c0_13, %c0_14, %c0_15] : memref<2x1x64xf32, #tpu.memory_space<vmem>>, vector<1x1x64xf32>
    %8 = vector.shape_cast %7 : vector<1x1x64xf32> to vector<1x64xf32>
    %cst = arith.constant dense<0.000000e+00> : vector<16xf32>
    %9 = vector.multi_reduction <add>, %0, %cst [1] : vector<16x64xf32> to vector<16xf32>
    %10 = vector.shape_cast %9 : vector<16xf32> to vector<16x1xf32>
    %cst_16 = arith.constant 6.400000e+01 : f32
    %11 = vector.broadcast %cst_16 : f32 to vector<16x1xf32>
    %12 = arith.divf %10, %11 : vector<16x1xf32>
    %13 = vector.broadcast %12 : vector<16x1xf32> to vector<16x64xf32>
    %14 = arith.subf %0, %13 : vector<16x64xf32>
    %15 = arith.mulf %14, %14 : vector<16x64xf32>
    %cst_17 = arith.constant dense<0.000000e+00> : vector<16xf32>
    %16 = vector.multi_reduction <add>, %15, %cst_17 [1] : vector<16x64xf32> to vector<16xf32>
    %17 = vector.shape_cast %16 : vector<16xf32> to vector<16x1xf32>
    %cst_18 = arith.constant 6.400000e+01 : f32
    %18 = vector.broadcast %cst_18 : f32 to vector<16x1xf32>
    %19 = arith.divf %17, %18 : vector<16x1xf32>
    %20 = vector.broadcast %12 : vector<16x1xf32> to vector<16x64xf32>
    %21 = arith.subf %0, %20 : vector<16x64xf32>
    %cst_19 = arith.constant 9.99999974E-6 : f32
    %22 = vector.broadcast %cst_19 : f32 to vector<16x1xf32>
    %23 = arith.addf %19, %22 : vector<16x1xf32>
    %24 = math.rsqrt %23 : vector<16x1xf32>
    %25 = vector.broadcast %24 : vector<16x1xf32> to vector<16x64xf32>
    %26 = arith.mulf %21, %25 : vector<16x64xf32>
    %27 = vector.broadcast %8 : vector<1x64xf32> to vector<16x64xf32>
    %28 = arith.mulf %26, %27 : vector<16x64xf32>
    %c0_20 = arith.constant 0 : index
    %c0_21 = arith.constant 0 : index
    %c0_22 = arith.constant 0 : index
    %29 = vector.load %arg8[%c0_20, %c0_21, %c0_22] : memref<2x64x640xf32, #tpu.memory_space<vmem>>, vector<1x64x640xf32>
    %30 = vector.shape_cast %29 : vector<1x64x640xf32> to vector<64x640xf32>
    %cst_23 = arith.constant dense<0.000000e+00> : vector<16x640xf32>
    %31 = tpu.matmul %28, %30, %cst_23 {dimension_numbers = #tpu.dot_dimension_numbers<[1], [0], [0], [1], [0, 0, 1, 1], [], []>} : vector<16x64xf32>, vector<64x640xf32>, vector<16x640xf32> -> vector<16x640xf32>
    %32 = vector.extract_strided_slice %31 {offsets = [0, 512], sizes = [16, 64], strides = [1, 1]} : vector<16x640xf32> to vector<16x64xf32>
    %33 = vector.extract_strided_slice %31 {offsets = [0, 576], sizes = [16, 64], strides = [1, 1]} : vector<16x640xf32> to vector<16x64xf32>
    %34 = arith.mulf %32, %2 : vector<16x64xf32>
    %cst_24 = arith.constant dense<0.000000e+00> : vector<16x64xf32>
    %35 = tpu.matmul %32, %6, %cst_24 {dimension_numbers = #tpu.dot_dimension_numbers<[1], [0], [0], [1], [0, 0, 1, 1], [], []>} : vector<16x64xf32>, vector<64x64xf32>, vector<16x64xf32> -> vector<16x64xf32>
    %36 = arith.mulf %35, %3 : vector<16x64xf32>
    %37 = arith.addf %34, %36 : vector<16x64xf32>
    %38 = vector.extract_strided_slice %31 {offsets = [0, 0], sizes = [8, 64], strides = [1, 1]} : vector<16x640xf32> to vector<8x64xf32>
    %39 = vector.extract_strided_slice %31 {offsets = [0, 64], sizes = [8, 64], strides = [1, 1]} : vector<16x640xf32> to vector<8x64xf32>
    %40 = vector.extract_strided_slice %31 {offsets = [0, 128], sizes = [8, 64], strides = [1, 1]} : vector<16x640xf32> to vector<8x64xf32>
    %41 = vector.extract_strided_slice %31 {offsets = [0, 192], sizes = [8, 64], strides = [1, 1]} : vector<16x640xf32> to vector<8x64xf32>
    %42 = vector.extract_strided_slice %31 {offsets = [0, 256], sizes = [8, 64], strides = [1, 1]} : vector<16x640xf32> to vector<8x64xf32>
    %43 = vector.extract_strided_slice %31 {offsets = [0, 320], sizes = [8, 64], strides = [1, 1]} : vector<16x640xf32> to vector<8x64xf32>
    %44 = vector.extract_strided_slice %31 {offsets = [0, 384], sizes = [8, 64], strides = [1, 1]} : vector<16x640xf32> to vector<8x64xf32>
    %45 = vector.extract_strided_slice %31 {offsets = [0, 448], sizes = [8, 64], strides = [1, 1]} : vector<16x640xf32> to vector<8x64xf32>
    %46 = vector.extract_strided_slice %31 {offsets = [8, 0], sizes = [8, 64], strides = [1, 1]} : vector<16x640xf32> to vector<8x64xf32>
    %47 = vector.extract_strided_slice %31 {offsets = [8, 64], sizes = [8, 64], strides = [1, 1]} : vector<16x640xf32> to vector<8x64xf32>
    %48 = vector.extract_strided_slice %31 {offsets = [8, 128], sizes = [8, 64], strides = [1, 1]} : vector<16x640xf32> to vector<8x64xf32>
    %49 = vector.extract_strided_slice %31 {offsets = [8, 192], sizes = [8, 64], strides = [1, 1]} : vector<16x640xf32> to vector<8x64xf32>
    %50 = vector.extract_strided_slice %31 {offsets = [8, 256], sizes = [8, 64], strides = [1, 1]} : vector<16x640xf32> to vector<8x64xf32>
    %51 = vector.extract_strided_slice %31 {offsets = [8, 320], sizes = [8, 64], strides = [1, 1]} : vector<16x640xf32> to vector<8x64xf32>
    %52 = vector.extract_strided_slice %31 {offsets = [8, 384], sizes = [8, 64], strides = [1, 1]} : vector<16x640xf32> to vector<8x64xf32>
    %53 = vector.extract_strided_slice %31 {offsets = [8, 448], sizes = [8, 64], strides = [1, 1]} : vector<16x640xf32> to vector<8x64xf32>
    %54 = tpu.concatenate %38, %39, %40, %41, %42, %43, %44, %45, %46, %47, %48, %49, %50, %51, %52, %53 in 0 : vector<8x64xf32>, vector<8x64xf32>, vector<8x64xf32>, vector<8x64xf32>, vector<8x64xf32>, vector<8x64xf32>, vector<8x64xf32>, vector<8x64xf32>, vector<8x64xf32>, vector<8x64xf32>, vector<8x64xf32>, vector<8x64xf32>, vector<8x64xf32>, vector<8x64xf32>, vector<8x64xf32>, vector<8x64xf32> -> vector<128x64xf32>
    %55 = arith.mulf %54, %4 : vector<128x64xf32>
    %cst_25 = arith.constant dense<0.000000e+00> : vector<128x64xf32>
    %56 = tpu.matmul %54, %6, %cst_25 {dimension_numbers = #tpu.dot_dimension_numbers<[1], [0], [0], [1], [0, 0, 1, 1], [], []>} : vector<128x64xf32>, vector<64x64xf32>, vector<128x64xf32> -> vector<128x64xf32>
    %57 = arith.mulf %56, %5 : vector<128x64xf32>
    %58 = arith.addf %55, %57 : vector<128x64xf32>
    %59 = arith.mulf %58, %58 : vector<128x64xf32>
    %cst_26 = arith.constant dense<0.000000e+00> : vector<128xf32>
    %60 = vector.multi_reduction <add>, %59, %cst_26 [1] : vector<128x64xf32> to vector<128xf32>
    %61 = vector.shape_cast %60 : vector<128xf32> to vector<128x1xf32>
    %cst_27 = arith.constant 1.000000e-24 : f32
    %62 = vector.broadcast %cst_27 : f32 to vector<128x1xf32>
    %63 = arith.maximumf %61, %62 : vector<128x1xf32>
    %64 = math.rsqrt %63 : vector<128x1xf32>
    %65 = vector.broadcast %64 : vector<128x1xf32> to vector<128x64xf32>
    %66 = arith.mulf %58, %65 : vector<128x64xf32>
    %67 = vector.extract_strided_slice %37 {offsets = [0, 0], sizes = [8, 64], strides = [1, 1]} : vector<16x64xf32> to vector<8x64xf32>
    %c0_28 = arith.constant 0 : index
    %c0_29 = arith.constant 0 : index
    %c0_30 = arith.constant 0 : index
    %68 = vector.load %arg9[%c0_28, %c0_29, %c0_30] : memref<2x8x64xf32, #tpu.memory_space<vmem>>, vector<1x8x64xf32>
    %69 = vector.shape_cast %68 : vector<1x8x64xf32> to vector<8x64xf32>
    %70 = tpu.concatenate %67, %69 in 0 : vector<8x64xf32>, vector<8x64xf32> -> vector<16x64xf32>
    %71 = vector.extract_strided_slice %33 {offsets = [0, 0], sizes = [8, 64], strides = [1, 1]} : vector<16x64xf32> to vector<8x64xf32>
    %c0_31 = arith.constant 0 : index
    %c0_32 = arith.constant 0 : index
    %c0_33 = arith.constant 0 : index
    %72 = vector.load %arg10[%c0_31, %c0_32, %c0_33] : memref<2x8x64xf32, #tpu.memory_space<vmem>>, vector<1x8x64xf32>
    %73 = vector.shape_cast %72 : vector<1x8x64xf32> to vector<8x64xf32>
    %74 = tpu.concatenate %71, %73 in 0 : vector<8x64xf32>, vector<8x64xf32> -> vector<16x64xf32>
    %75 = arith.mulf %70, %70 : vector<16x64xf32>
    %cst_34 = arith.constant dense<0.000000e+00> : vector<16xf32>
    %76 = vector.multi_reduction <add>, %75, %cst_34 [1] : vector<16x64xf32> to vector<16xf32>
    %77 = vector.shape_cast %76 : vector<16xf32> to vector<16x1xf32>
    %cst_35 = arith.constant 1.000000e-24 : f32
    %78 = vector.broadcast %cst_35 : f32 to vector<16x1xf32>
    %79 = arith.maximumf %77, %78 : vector<16x1xf32>
    %80 = math.rsqrt %79 : vector<16x1xf32>
    %81 = vector.broadcast %80 : vector<16x1xf32> to vector<16x64xf32>
    %82 = arith.mulf %70, %81 : vector<16x64xf32>
    %cst_36 = arith.constant 1.600000e+01 : f32
    %83 = vector.broadcast %cst_36 : f32 to vector<16x64xf32>
    %84 = arith.mulf %82, %83 : vector<16x64xf32>
    %85 = vector.extract_strided_slice %66 {offsets = [0, 0], sizes = [64, 64], strides = [1, 1]} : vector<128x64xf32> to vector<64x64xf32>
    %cst_37 = arith.constant dense<0.000000e+00> : vector<64x16xf32>
    %86 = tpu.matmul %85, %84, %cst_37 {dimension_numbers = #tpu.dot_dimension_numbers<[1], [1], [0], [0], [0, 0, 1, 0], [], []>} : vector<64x64xf32>, vector<16x64xf32>, vector<64x16xf32> -> vector<64x16xf32>
    %87 = arith.addf %86, %1 : vector<64x16xf32>
    %cst_38 = arith.constant dense<0xFF800000> : vector<64xf32>
    %88 = vector.multi_reduction <maximumf>, %87, %cst_38 [1] : vector<64x16xf32> to vector<64xf32>
    %89 = vector.shape_cast %88 : vector<64xf32> to vector<64x1xf32>
    %90 = vector.broadcast %89 : vector<64x1xf32> to vector<64x16xf32>
    %91 = arith.subf %87, %90 : vector<64x16xf32>
    %92 = math.exp %91 : vector<64x16xf32>
    %cst_39 = arith.constant dense<0.000000e+00> : vector<64xf32>
    %93 = vector.multi_reduction <add>, %92, %cst_39 [1] : vector<64x16xf32> to vector<64xf32>
    %94 = vector.shape_cast %93 : vector<64xf32> to vector<64x1xf32>
    %95 = tpu.reciprocal %94 {approx = true} : vector<64x1xf32> -> vector<64x1xf32>
    %96 = arith.mulf %94, %95 : vector<64x1xf32>
    %cst_40 = arith.constant 2.000000e+00 : f32
    %97 = vector.broadcast %cst_40 : f32 to vector<64x1xf32>
    %98 = arith.subf %97, %96 : vector<64x1xf32>
    %99 = arith.mulf %95, %98 : vector<64x1xf32>
    %100 = vector.broadcast %99 : vector<64x1xf32> to vector<64x16xf32>
    %101 = arith.mulf %92, %100 : vector<64x16xf32>
    %cst_41 = arith.constant dense<0.000000e+00> : vector<64x64xf32>
    %102 = tpu.matmul %101, %74, %cst_41 {dimension_numbers = #tpu.dot_dimension_numbers<[1], [0], [0], [1], [0, 0, 1, 1], [], []>} : vector<64x16xf32>, vector<16x64xf32>, vector<64x64xf32> -> vector<64x64xf32>
    %103 = vector.extract_strided_slice %102 {offsets = [0, 0], sizes = [8, 64], strides = [1, 1]} : vector<64x64xf32> to vector<8x64xf32>
    %104 = vector.extract_strided_slice %102 {offsets = [8, 0], sizes = [8, 64], strides = [1, 1]} : vector<64x64xf32> to vector<8x64xf32>
    %105 = vector.extract_strided_slice %102 {offsets = [16, 0], sizes = [8, 64], strides = [1, 1]} : vector<64x64xf32> to vector<8x64xf32>
    %106 = vector.extract_strided_slice %102 {offsets = [24, 0], sizes = [8, 64], strides = [1, 1]} : vector<64x64xf32> to vector<8x64xf32>
    %107 = vector.extract_strided_slice %102 {offsets = [32, 0], sizes = [8, 64], strides = [1, 1]} : vector<64x64xf32> to vector<8x64xf32>
    %108 = vector.extract_strided_slice %102 {offsets = [40, 0], sizes = [8, 64], strides = [1, 1]} : vector<64x64xf32> to vector<8x64xf32>
    %109 = vector.extract_strided_slice %102 {offsets = [48, 0], sizes = [8, 64], strides = [1, 1]} : vector<64x64xf32> to vector<8x64xf32>
    %110 = vector.extract_strided_slice %102 {offsets = [56, 0], sizes = [8, 64], strides = [1, 1]} : vector<64x64xf32> to vector<8x64xf32>
    %111 = tpu.concatenate %103, %104, %105, %106, %107, %108, %109, %110 in 1 : vector<8x64xf32>, vector<8x64xf32>, vector<8x64xf32>, vector<8x64xf32>, vector<8x64xf32>, vector<8x64xf32>, vector<8x64xf32>, vector<8x64xf32> -> vector<8x512xf32>
    %112 = vector.extract_strided_slice %37 {offsets = [8, 0], sizes = [8, 64], strides = [1, 1]} : vector<16x64xf32> to vector<8x64xf32>
    %c0_42 = arith.constant 0 : index
    %c0_43 = arith.constant 0 : index
    %c0_44 = arith.constant 0 : index
    %113 = vector.load %arg9[%c0_42, %c0_43, %c0_44] : memref<2x8x64xf32, #tpu.memory_space<vmem>>, vector<1x8x64xf32>
    %114 = vector.shape_cast %113 : vector<1x8x64xf32> to vector<8x64xf32>
    %115 = tpu.concatenate %112, %114 in 0 : vector<8x64xf32>, vector<8x64xf32> -> vector<16x64xf32>
    %116 = vector.extract_strided_slice %33 {offsets = [8, 0], sizes = [8, 64], strides = [1, 1]} : vector<16x64xf32> to vector<8x64xf32>
    %c0_45 = arith.constant 0 : index
    %c0_46 = arith.constant 0 : index
    %c0_47 = arith.constant 0 : index
    %117 = vector.load %arg10[%c0_45, %c0_46, %c0_47] : memref<2x8x64xf32, #tpu.memory_space<vmem>>, vector<1x8x64xf32>
    %118 = vector.shape_cast %117 : vector<1x8x64xf32> to vector<8x64xf32>
    %119 = tpu.concatenate %116, %118 in 0 : vector<8x64xf32>, vector<8x64xf32> -> vector<16x64xf32>
    %120 = arith.mulf %115, %115 : vector<16x64xf32>
    %cst_48 = arith.constant dense<0.000000e+00> : vector<16xf32>
    %121 = vector.multi_reduction <add>, %120, %cst_48 [1] : vector<16x64xf32> to vector<16xf32>
    %122 = vector.shape_cast %121 : vector<16xf32> to vector<16x1xf32>
    %cst_49 = arith.constant 1.000000e-24 : f32
    %123 = vector.broadcast %cst_49 : f32 to vector<16x1xf32>
    %124 = arith.maximumf %122, %123 : vector<16x1xf32>
    %125 = math.rsqrt %124 : vector<16x1xf32>
    %126 = vector.broadcast %125 : vector<16x1xf32> to vector<16x64xf32>
    %127 = arith.mulf %115, %126 : vector<16x64xf32>
    %cst_50 = arith.constant 1.600000e+01 : f32
    %128 = vector.broadcast %cst_50 : f32 to vector<16x64xf32>
    %129 = arith.mulf %127, %128 : vector<16x64xf32>
    %130 = vector.extract_strided_slice %66 {offsets = [64, 0], sizes = [64, 64], strides = [1, 1]} : vector<128x64xf32> to vector<64x64xf32>
    %cst_51 = arith.constant dense<0.000000e+00> : vector<64x16xf32>
    %131 = tpu.matmul %130, %129, %cst_51 {dimension_numbers = #tpu.dot_dimension_numbers<[1], [1], [0], [0], [0, 0, 1, 0], [], []>} : vector<64x64xf32>, vector<16x64xf32>, vector<64x16xf32> -> vector<64x16xf32>
    %132 = arith.addf %131, %1 : vector<64x16xf32>
    %cst_52 = arith.constant dense<0xFF800000> : vector<64xf32>
    %133 = vector.multi_reduction <maximumf>, %132, %cst_52 [1] : vector<64x16xf32> to vector<64xf32>
    %134 = vector.shape_cast %133 : vector<64xf32> to vector<64x1xf32>
    %135 = vector.broadcast %134 : vector<64x1xf32> to vector<64x16xf32>
    %136 = arith.subf %132, %135 : vector<64x16xf32>
    %137 = math.exp %136 : vector<64x16xf32>
    %cst_53 = arith.constant dense<0.000000e+00> : vector<64xf32>
    %138 = vector.multi_reduction <add>, %137, %cst_53 [1] : vector<64x16xf32> to vector<64xf32>
    %139 = vector.shape_cast %138 : vector<64xf32> to vector<64x1xf32>
    %140 = tpu.reciprocal %139 {approx = true} : vector<64x1xf32> -> vector<64x1xf32>
    %141 = arith.mulf %139, %140 : vector<64x1xf32>
    %cst_54 = arith.constant 2.000000e+00 : f32
    %142 = vector.broadcast %cst_54 : f32 to vector<64x1xf32>
    %143 = arith.subf %142, %141 : vector<64x1xf32>
    %144 = arith.mulf %140, %143 : vector<64x1xf32>
    %145 = vector.broadcast %144 : vector<64x1xf32> to vector<64x16xf32>
    %146 = arith.mulf %137, %145 : vector<64x16xf32>
    %cst_55 = arith.constant dense<0.000000e+00> : vector<64x64xf32>
    %147 = tpu.matmul %146, %119, %cst_55 {dimension_numbers = #tpu.dot_dimension_numbers<[1], [0], [0], [1], [0, 0, 1, 1], [], []>} : vector<64x16xf32>, vector<16x64xf32>, vector<64x64xf32> -> vector<64x64xf32>
    %148 = vector.extract_strided_slice %147 {offsets = [0, 0], sizes = [8, 64], strides = [1, 1]} : vector<64x64xf32> to vector<8x64xf32>
    %149 = vector.extract_strided_slice %147 {offsets = [8, 0], sizes = [8, 64], strides = [1, 1]} : vector<64x64xf32> to vector<8x64xf32>
    %150 = vector.extract_strided_slice %147 {offsets = [16, 0], sizes = [8, 64], strides = [1, 1]} : vector<64x64xf32> to vector<8x64xf32>
    %151 = vector.extract_strided_slice %147 {offsets = [24, 0], sizes = [8, 64], strides = [1, 1]} : vector<64x64xf32> to vector<8x64xf32>
    %152 = vector.extract_strided_slice %147 {offsets = [32, 0], sizes = [8, 64], strides = [1, 1]} : vector<64x64xf32> to vector<8x64xf32>
    %153 = vector.extract_strided_slice %147 {offsets = [40, 0], sizes = [8, 64], strides = [1, 1]} : vector<64x64xf32> to vector<8x64xf32>
    %154 = vector.extract_strided_slice %147 {offsets = [48, 0], sizes = [8, 64], strides = [1, 1]} : vector<64x64xf32> to vector<8x64xf32>
    %155 = vector.extract_strided_slice %147 {offsets = [56, 0], sizes = [8, 64], strides = [1, 1]} : vector<64x64xf32> to vector<8x64xf32>
    %156 = tpu.concatenate %148, %149, %150, %151, %152, %153, %154, %155 in 1 : vector<8x64xf32>, vector<8x64xf32>, vector<8x64xf32>, vector<8x64xf32>, vector<8x64xf32>, vector<8x64xf32>, vector<8x64xf32>, vector<8x64xf32> -> vector<8x512xf32>
    %157 = tpu.concatenate %111, %156 in 0 : vector<8x512xf32>, vector<8x512xf32> -> vector<16x512xf32>
    %c0_56 = arith.constant 0 : index
    %c0_57 = arith.constant 0 : index
    %c0_58 = arith.constant 0 : index
    %158 = vector.load %arg11[%c0_56, %c0_57, %c0_58] : memref<2x512x64xf32, #tpu.memory_space<vmem>>, vector<1x512x64xf32>
    %159 = vector.shape_cast %158 : vector<1x512x64xf32> to vector<512x64xf32>
    %cst_59 = arith.constant dense<0.000000e+00> : vector<16x64xf32>
    %160 = tpu.matmul %157, %159, %cst_59 {dimension_numbers = #tpu.dot_dimension_numbers<[1], [0], [0], [1], [0, 0, 1, 1], [], []>} : vector<16x512xf32>, vector<512x64xf32>, vector<16x64xf32> -> vector<16x64xf32>
    %c0_60 = arith.constant 0 : index
    %c0_61 = arith.constant 0 : index
    %c0_62 = arith.constant 0 : index
    %161 = vector.load %arg12[%c0_60, %c0_61, %c0_62] : memref<2x1x64xf32, #tpu.memory_space<vmem>>, vector<1x1x64xf32>
    %162 = vector.shape_cast %161 : vector<1x1x64xf32> to vector<1x64xf32>
    %cst_63 = arith.constant dense<0.000000e+00> : vector<16xf32>
    %163 = vector.multi_reduction <add>, %160, %cst_63 [1] : vector<16x64xf32> to vector<16xf32>
    %164 = vector.shape_cast %163 : vector<16xf32> to vector<16x1xf32>
    %cst_64 = arith.constant 6.400000e+01 : f32
    %165 = vector.broadcast %cst_64 : f32 to vector<16x1xf32>
    %166 = arith.divf %164, %165 : vector<16x1xf32>
    %167 = vector.broadcast %166 : vector<16x1xf32> to vector<16x64xf32>
    %168 = arith.subf %160, %167 : vector<16x64xf32>
    %169 = arith.mulf %168, %168 : vector<16x64xf32>
    %cst_65 = arith.constant dense<0.000000e+00> : vector<16xf32>
    %170 = vector.multi_reduction <add>, %169, %cst_65 [1] : vector<16x64xf32> to vector<16xf32>
    %171 = vector.shape_cast %170 : vector<16xf32> to vector<16x1xf32>
    %cst_66 = arith.constant 6.400000e+01 : f32
    %172 = vector.broadcast %cst_66 : f32 to vector<16x1xf32>
    %173 = arith.divf %171, %172 : vector<16x1xf32>
    %174 = vector.broadcast %166 : vector<16x1xf32> to vector<16x64xf32>
    %175 = arith.subf %160, %174 : vector<16x64xf32>
    %cst_67 = arith.constant 9.99999974E-6 : f32
    %176 = vector.broadcast %cst_67 : f32 to vector<16x1xf32>
    %177 = arith.addf %173, %176 : vector<16x1xf32>
    %178 = math.rsqrt %177 : vector<16x1xf32>
    %179 = vector.broadcast %178 : vector<16x1xf32> to vector<16x64xf32>
    %180 = arith.mulf %175, %179 : vector<16x64xf32>
    %181 = vector.broadcast %162 : vector<1x64xf32> to vector<16x64xf32>
    %182 = arith.mulf %180, %181 : vector<16x64xf32>
    %183 = arith.addf %0, %182 : vector<16x64xf32>
    %c0_68 = arith.constant 0 : index
    %c0_69 = arith.constant 0 : index
    %c0_70 = arith.constant 0 : index
    %184 = vector.load %arg13[%c0_68, %c0_69, %c0_70] : memref<2x1x64xf32, #tpu.memory_space<vmem>>, vector<1x1x64xf32>
    %185 = vector.shape_cast %184 : vector<1x1x64xf32> to vector<1x64xf32>
    %cst_71 = arith.constant dense<0.000000e+00> : vector<16xf32>
    %186 = vector.multi_reduction <add>, %183, %cst_71 [1] : vector<16x64xf32> to vector<16xf32>
    %187 = vector.shape_cast %186 : vector<16xf32> to vector<16x1xf32>
    %cst_72 = arith.constant 6.400000e+01 : f32
    %188 = vector.broadcast %cst_72 : f32 to vector<16x1xf32>
    %189 = arith.divf %187, %188 : vector<16x1xf32>
    %190 = vector.broadcast %189 : vector<16x1xf32> to vector<16x64xf32>
    %191 = arith.subf %183, %190 : vector<16x64xf32>
    %192 = arith.mulf %191, %191 : vector<16x64xf32>
    %cst_73 = arith.constant dense<0.000000e+00> : vector<16xf32>
    %193 = vector.multi_reduction <add>, %192, %cst_73 [1] : vector<16x64xf32> to vector<16xf32>
    %194 = vector.shape_cast %193 : vector<16xf32> to vector<16x1xf32>
    %cst_74 = arith.constant 6.400000e+01 : f32
    %195 = vector.broadcast %cst_74 : f32 to vector<16x1xf32>
    %196 = arith.divf %194, %195 : vector<16x1xf32>
    %197 = vector.broadcast %189 : vector<16x1xf32> to vector<16x64xf32>
    %198 = arith.subf %183, %197 : vector<16x64xf32>
    %cst_75 = arith.constant 9.99999974E-6 : f32
    %199 = vector.broadcast %cst_75 : f32 to vector<16x1xf32>
    %200 = arith.addf %196, %199 : vector<16x1xf32>
    %201 = math.rsqrt %200 : vector<16x1xf32>
    %202 = vector.broadcast %201 : vector<16x1xf32> to vector<16x64xf32>
    %203 = arith.mulf %198, %202 : vector<16x64xf32>
    %204 = vector.broadcast %185 : vector<1x64xf32> to vector<16x64xf32>
    %205 = arith.mulf %203, %204 : vector<16x64xf32>
    %c0_76 = arith.constant 0 : index
    %c0_77 = arith.constant 0 : index
    %c0_78 = arith.constant 0 : index
    %206 = vector.load %arg14[%c0_76, %c0_77, %c0_78] : memref<2x64x512xf32, #tpu.memory_space<vmem>>, vector<1x64x512xf32>
    %207 = vector.shape_cast %206 : vector<1x64x512xf32> to vector<64x512xf32>
    %cst_79 = arith.constant dense<0.000000e+00> : vector<16x512xf32>
    %208 = tpu.matmul %205, %207, %cst_79 {dimension_numbers = #tpu.dot_dimension_numbers<[1], [0], [0], [1], [0, 0, 1, 1], [], []>} : vector<16x64xf32>, vector<64x512xf32>, vector<16x512xf32> -> vector<16x512xf32>
    %209 = vector.extract_strided_slice %208 {offsets = [0, 0], sizes = [16, 256], strides = [1, 1]} : vector<16x512xf32> to vector<16x256xf32>
    %210 = vector.extract_strided_slice %208 {offsets = [0, 256], sizes = [16, 256], strides = [1, 1]} : vector<16x512xf32> to vector<16x256xf32>
    %211 = arith.negf %210 : vector<16x256xf32>
    %212 = math.exp %211 : vector<16x256xf32>
    %cst_80 = arith.constant 1.000000e+00 : f32
    %213 = vector.broadcast %cst_80 : f32 to vector<16x256xf32>
    %214 = arith.addf %213, %212 : vector<16x256xf32>
    %215 = arith.divf %213, %214 : vector<16x256xf32>
    %216 = arith.mulf %210, %215 : vector<16x256xf32>
    %217 = arith.mulf %209, %216 : vector<16x256xf32>
    %c0_81 = arith.constant 0 : index
    %c0_82 = arith.constant 0 : index
    %c0_83 = arith.constant 0 : index
    %218 = vector.load %arg15[%c0_81, %c0_82, %c0_83] : memref<2x256x64xf32, #tpu.memory_space<vmem>>, vector<1x256x64xf32>
    %219 = vector.shape_cast %218 : vector<1x256x64xf32> to vector<256x64xf32>
    %cst_84 = arith.constant dense<0.000000e+00> : vector<16x64xf32>
    %220 = tpu.matmul %217, %219, %cst_84 {dimension_numbers = #tpu.dot_dimension_numbers<[1], [0], [0], [1], [0, 0, 1, 1], [], []>} : vector<16x256xf32>, vector<256x64xf32>, vector<16x64xf32> -> vector<16x64xf32>
    %221 = arith.addf %183, %220 : vector<16x64xf32>
    %c1 = arith.constant 1 : index
    %c0_85 = arith.constant 0 : index
    %c0_86 = arith.constant 0 : index
    %222 = vector.load %arg7[%c1, %c0_85, %c0_86] : memref<2x1x64xf32, #tpu.memory_space<vmem>>, vector<1x1x64xf32>
    %223 = vector.shape_cast %222 : vector<1x1x64xf32> to vector<1x64xf32>
    %cst_87 = arith.constant dense<0.000000e+00> : vector<16xf32>
    %224 = vector.multi_reduction <add>, %221, %cst_87 [1] : vector<16x64xf32> to vector<16xf32>
    %225 = vector.shape_cast %224 : vector<16xf32> to vector<16x1xf32>
    %cst_88 = arith.constant 6.400000e+01 : f32
    %226 = vector.broadcast %cst_88 : f32 to vector<16x1xf32>
    %227 = arith.divf %225, %226 : vector<16x1xf32>
    %228 = vector.broadcast %227 : vector<16x1xf32> to vector<16x64xf32>
    %229 = arith.subf %221, %228 : vector<16x64xf32>
    %230 = arith.mulf %229, %229 : vector<16x64xf32>
    %cst_89 = arith.constant dense<0.000000e+00> : vector<16xf32>
    %231 = vector.multi_reduction <add>, %230, %cst_89 [1] : vector<16x64xf32> to vector<16xf32>
    %232 = vector.shape_cast %231 : vector<16xf32> to vector<16x1xf32>
    %cst_90 = arith.constant 6.400000e+01 : f32
    %233 = vector.broadcast %cst_90 : f32 to vector<16x1xf32>
    %234 = arith.divf %232, %233 : vector<16x1xf32>
    %235 = vector.broadcast %227 : vector<16x1xf32> to vector<16x64xf32>
    %236 = arith.subf %221, %235 : vector<16x64xf32>
    %cst_91 = arith.constant 9.99999974E-6 : f32
    %237 = vector.broadcast %cst_91 : f32 to vector<16x1xf32>
    %238 = arith.addf %234, %237 : vector<16x1xf32>
    %239 = math.rsqrt %238 : vector<16x1xf32>
    %240 = vector.broadcast %239 : vector<16x1xf32> to vector<16x64xf32>
    %241 = arith.mulf %236, %240 : vector<16x64xf32>
    %242 = vector.broadcast %223 : vector<1x64xf32> to vector<16x64xf32>
    %243 = arith.mulf %241, %242 : vector<16x64xf32>
    %c1_92 = arith.constant 1 : index
    %c0_93 = arith.constant 0 : index
    %c0_94 = arith.constant 0 : index
    %244 = vector.load %arg8[%c1_92, %c0_93, %c0_94] : memref<2x64x640xf32, #tpu.memory_space<vmem>>, vector<1x64x640xf32>
    %245 = vector.shape_cast %244 : vector<1x64x640xf32> to vector<64x640xf32>
    %cst_95 = arith.constant dense<0.000000e+00> : vector<16x640xf32>
    %246 = tpu.matmul %243, %245, %cst_95 {dimension_numbers = #tpu.dot_dimension_numbers<[1], [0], [0], [1], [0, 0, 1, 1], [], []>} : vector<16x64xf32>, vector<64x640xf32>, vector<16x640xf32> -> vector<16x640xf32>
    %247 = vector.extract_strided_slice %246 {offsets = [0, 512], sizes = [16, 64], strides = [1, 1]} : vector<16x640xf32> to vector<16x64xf32>
    %248 = vector.extract_strided_slice %246 {offsets = [0, 576], sizes = [16, 64], strides = [1, 1]} : vector<16x640xf32> to vector<16x64xf32>
    %249 = arith.mulf %247, %2 : vector<16x64xf32>
    %cst_96 = arith.constant dense<0.000000e+00> : vector<16x64xf32>
    %250 = tpu.matmul %247, %6, %cst_96 {dimension_numbers = #tpu.dot_dimension_numbers<[1], [0], [0], [1], [0, 0, 1, 1], [], []>} : vector<16x64xf32>, vector<64x64xf32>, vector<16x64xf32> -> vector<16x64xf32>
    %251 = arith.mulf %250, %3 : vector<16x64xf32>
    %252 = arith.addf %249, %251 : vector<16x64xf32>
    %253 = vector.extract_strided_slice %246 {offsets = [0, 0], sizes = [8, 64], strides = [1, 1]} : vector<16x640xf32> to vector<8x64xf32>
    %254 = vector.extract_strided_slice %246 {offsets = [0, 64], sizes = [8, 64], strides = [1, 1]} : vector<16x640xf32> to vector<8x64xf32>
    %255 = vector.extract_strided_slice %246 {offsets = [0, 128], sizes = [8, 64], strides = [1, 1]} : vector<16x640xf32> to vector<8x64xf32>
    %256 = vector.extract_strided_slice %246 {offsets = [0, 192], sizes = [8, 64], strides = [1, 1]} : vector<16x640xf32> to vector<8x64xf32>
    %257 = vector.extract_strided_slice %246 {offsets = [0, 256], sizes = [8, 64], strides = [1, 1]} : vector<16x640xf32> to vector<8x64xf32>
    %258 = vector.extract_strided_slice %246 {offsets = [0, 320], sizes = [8, 64], strides = [1, 1]} : vector<16x640xf32> to vector<8x64xf32>
    %259 = vector.extract_strided_slice %246 {offsets = [0, 384], sizes = [8, 64], strides = [1, 1]} : vector<16x640xf32> to vector<8x64xf32>
    %260 = vector.extract_strided_slice %246 {offsets = [0, 448], sizes = [8, 64], strides = [1, 1]} : vector<16x640xf32> to vector<8x64xf32>
    %261 = vector.extract_strided_slice %246 {offsets = [8, 0], sizes = [8, 64], strides = [1, 1]} : vector<16x640xf32> to vector<8x64xf32>
    %262 = vector.extract_strided_slice %246 {offsets = [8, 64], sizes = [8, 64], strides = [1, 1]} : vector<16x640xf32> to vector<8x64xf32>
    %263 = vector.extract_strided_slice %246 {offsets = [8, 128], sizes = [8, 64], strides = [1, 1]} : vector<16x640xf32> to vector<8x64xf32>
    %264 = vector.extract_strided_slice %246 {offsets = [8, 192], sizes = [8, 64], strides = [1, 1]} : vector<16x640xf32> to vector<8x64xf32>
    %265 = vector.extract_strided_slice %246 {offsets = [8, 256], sizes = [8, 64], strides = [1, 1]} : vector<16x640xf32> to vector<8x64xf32>
    %266 = vector.extract_strided_slice %246 {offsets = [8, 320], sizes = [8, 64], strides = [1, 1]} : vector<16x640xf32> to vector<8x64xf32>
    %267 = vector.extract_strided_slice %246 {offsets = [8, 384], sizes = [8, 64], strides = [1, 1]} : vector<16x640xf32> to vector<8x64xf32>
    %268 = vector.extract_strided_slice %246 {offsets = [8, 448], sizes = [8, 64], strides = [1, 1]} : vector<16x640xf32> to vector<8x64xf32>
    %269 = tpu.concatenate %253, %254, %255, %256, %257, %258, %259, %260, %261, %262, %263, %264, %265, %266, %267, %268 in 0 : vector<8x64xf32>, vector<8x64xf32>, vector<8x64xf32>, vector<8x64xf32>, vector<8x64xf32>, vector<8x64xf32>, vector<8x64xf32>, vector<8x64xf32>, vector<8x64xf32>, vector<8x64xf32>, vector<8x64xf32>, vector<8x64xf32>, vector<8x64xf32>, vector<8x64xf32>, vector<8x64xf32>, vector<8x64xf32> -> vector<128x64xf32>
    %270 = arith.mulf %269, %4 : vector<128x64xf32>
    %cst_97 = arith.constant dense<0.000000e+00> : vector<128x64xf32>
    %271 = tpu.matmul %269, %6, %cst_97 {dimension_numbers = #tpu.dot_dimension_numbers<[1], [0], [0], [1], [0, 0, 1, 1], [], []>} : vector<128x64xf32>, vector<64x64xf32>, vector<128x64xf32> -> vector<128x64xf32>
    %272 = arith.mulf %271, %5 : vector<128x64xf32>
    %273 = arith.addf %270, %272 : vector<128x64xf32>
    %274 = arith.mulf %273, %273 : vector<128x64xf32>
    %cst_98 = arith.constant dense<0.000000e+00> : vector<128xf32>
    %275 = vector.multi_reduction <add>, %274, %cst_98 [1] : vector<128x64xf32> to vector<128xf32>
    %276 = vector.shape_cast %275 : vector<128xf32> to vector<128x1xf32>
    %cst_99 = arith.constant 1.000000e-24 : f32
    %277 = vector.broadcast %cst_99 : f32 to vector<128x1xf32>
    %278 = arith.maximumf %276, %277 : vector<128x1xf32>
    %279 = math.rsqrt %278 : vector<128x1xf32>
    %280 = vector.broadcast %279 : vector<128x1xf32> to vector<128x64xf32>
    %281 = arith.mulf %273, %280 : vector<128x64xf32>
    %282 = vector.extract_strided_slice %252 {offsets = [0, 0], sizes = [8, 64], strides = [1, 1]} : vector<16x64xf32> to vector<8x64xf32>
    %c1_100 = arith.constant 1 : index
    %c0_101 = arith.constant 0 : index
    %c0_102 = arith.constant 0 : index
    %283 = vector.load %arg9[%c1_100, %c0_101, %c0_102] : memref<2x8x64xf32, #tpu.memory_space<vmem>>, vector<1x8x64xf32>
    %284 = vector.shape_cast %283 : vector<1x8x64xf32> to vector<8x64xf32>
    %285 = tpu.concatenate %282, %284 in 0 : vector<8x64xf32>, vector<8x64xf32> -> vector<16x64xf32>
    %286 = vector.extract_strided_slice %248 {offsets = [0, 0], sizes = [8, 64], strides = [1, 1]} : vector<16x64xf32> to vector<8x64xf32>
    %c1_103 = arith.constant 1 : index
    %c0_104 = arith.constant 0 : index
    %c0_105 = arith.constant 0 : index
    %287 = vector.load %arg10[%c1_103, %c0_104, %c0_105] : memref<2x8x64xf32, #tpu.memory_space<vmem>>, vector<1x8x64xf32>
    %288 = vector.shape_cast %287 : vector<1x8x64xf32> to vector<8x64xf32>
    %289 = tpu.concatenate %286, %288 in 0 : vector<8x64xf32>, vector<8x64xf32> -> vector<16x64xf32>
    %290 = arith.mulf %285, %285 : vector<16x64xf32>
    %cst_106 = arith.constant dense<0.000000e+00> : vector<16xf32>
    %291 = vector.multi_reduction <add>, %290, %cst_106 [1] : vector<16x64xf32> to vector<16xf32>
    %292 = vector.shape_cast %291 : vector<16xf32> to vector<16x1xf32>
    %cst_107 = arith.constant 1.000000e-24 : f32
    %293 = vector.broadcast %cst_107 : f32 to vector<16x1xf32>
    %294 = arith.maximumf %292, %293 : vector<16x1xf32>
    %295 = math.rsqrt %294 : vector<16x1xf32>
    %296 = vector.broadcast %295 : vector<16x1xf32> to vector<16x64xf32>
    %297 = arith.mulf %285, %296 : vector<16x64xf32>
    %cst_108 = arith.constant 1.600000e+01 : f32
    %298 = vector.broadcast %cst_108 : f32 to vector<16x64xf32>
    %299 = arith.mulf %297, %298 : vector<16x64xf32>
    %300 = vector.extract_strided_slice %281 {offsets = [0, 0], sizes = [64, 64], strides = [1, 1]} : vector<128x64xf32> to vector<64x64xf32>
    %cst_109 = arith.constant dense<0.000000e+00> : vector<64x16xf32>
    %301 = tpu.matmul %300, %299, %cst_109 {dimension_numbers = #tpu.dot_dimension_numbers<[1], [1], [0], [0], [0, 0, 1, 0], [], []>} : vector<64x64xf32>, vector<16x64xf32>, vector<64x16xf32> -> vector<64x16xf32>
    %302 = arith.addf %301, %1 : vector<64x16xf32>
    %cst_110 = arith.constant dense<0xFF800000> : vector<64xf32>
    %303 = vector.multi_reduction <maximumf>, %302, %cst_110 [1] : vector<64x16xf32> to vector<64xf32>
    %304 = vector.shape_cast %303 : vector<64xf32> to vector<64x1xf32>
    %305 = vector.broadcast %304 : vector<64x1xf32> to vector<64x16xf32>
    %306 = arith.subf %302, %305 : vector<64x16xf32>
    %307 = math.exp %306 : vector<64x16xf32>
    %cst_111 = arith.constant dense<0.000000e+00> : vector<64xf32>
    %308 = vector.multi_reduction <add>, %307, %cst_111 [1] : vector<64x16xf32> to vector<64xf32>
    %309 = vector.shape_cast %308 : vector<64xf32> to vector<64x1xf32>
    %310 = tpu.reciprocal %309 {approx = true} : vector<64x1xf32> -> vector<64x1xf32>
    %311 = arith.mulf %309, %310 : vector<64x1xf32>
    %cst_112 = arith.constant 2.000000e+00 : f32
    %312 = vector.broadcast %cst_112 : f32 to vector<64x1xf32>
    %313 = arith.subf %312, %311 : vector<64x1xf32>
    %314 = arith.mulf %310, %313 : vector<64x1xf32>
    %315 = vector.broadcast %314 : vector<64x1xf32> to vector<64x16xf32>
    %316 = arith.mulf %307, %315 : vector<64x16xf32>
    %cst_113 = arith.constant dense<0.000000e+00> : vector<64x64xf32>
    %317 = tpu.matmul %316, %289, %cst_113 {dimension_numbers = #tpu.dot_dimension_numbers<[1], [0], [0], [1], [0, 0, 1, 1], [], []>} : vector<64x16xf32>, vector<16x64xf32>, vector<64x64xf32> -> vector<64x64xf32>
    %318 = vector.extract_strided_slice %317 {offsets = [0, 0], sizes = [8, 64], strides = [1, 1]} : vector<64x64xf32> to vector<8x64xf32>
    %319 = vector.extract_strided_slice %317 {offsets = [8, 0], sizes = [8, 64], strides = [1, 1]} : vector<64x64xf32> to vector<8x64xf32>
    %320 = vector.extract_strided_slice %317 {offsets = [16, 0], sizes = [8, 64], strides = [1, 1]} : vector<64x64xf32> to vector<8x64xf32>
    %321 = vector.extract_strided_slice %317 {offsets = [24, 0], sizes = [8, 64], strides = [1, 1]} : vector<64x64xf32> to vector<8x64xf32>
    %322 = vector.extract_strided_slice %317 {offsets = [32, 0], sizes = [8, 64], strides = [1, 1]} : vector<64x64xf32> to vector<8x64xf32>
    %323 = vector.extract_strided_slice %317 {offsets = [40, 0], sizes = [8, 64], strides = [1, 1]} : vector<64x64xf32> to vector<8x64xf32>
    %324 = vector.extract_strided_slice %317 {offsets = [48, 0], sizes = [8, 64], strides = [1, 1]} : vector<64x64xf32> to vector<8x64xf32>
    %325 = vector.extract_strided_slice %317 {offsets = [56, 0], sizes = [8, 64], strides = [1, 1]} : vector<64x64xf32> to vector<8x64xf32>
    %326 = tpu.concatenate %318, %319, %320, %321, %322, %323, %324, %325 in 1 : vector<8x64xf32>, vector<8x64xf32>, vector<8x64xf32>, vector<8x64xf32>, vector<8x64xf32>, vector<8x64xf32>, vector<8x64xf32>, vector<8x64xf32> -> vector<8x512xf32>
    %327 = vector.extract_strided_slice %252 {offsets = [8, 0], sizes = [8, 64], strides = [1, 1]} : vector<16x64xf32> to vector<8x64xf32>
    %c1_114 = arith.constant 1 : index
    %c0_115 = arith.constant 0 : index
    %c0_116 = arith.constant 0 : index
    %328 = vector.load %arg9[%c1_114, %c0_115, %c0_116] : memref<2x8x64xf32, #tpu.memory_space<vmem>>, vector<1x8x64xf32>
    %329 = vector.shape_cast %328 : vector<1x8x64xf32> to vector<8x64xf32>
    %330 = tpu.concatenate %327, %329 in 0 : vector<8x64xf32>, vector<8x64xf32> -> vector<16x64xf32>
    %331 = vector.extract_strided_slice %248 {offsets = [8, 0], sizes = [8, 64], strides = [1, 1]} : vector<16x64xf32> to vector<8x64xf32>
    %c1_117 = arith.constant 1 : index
    %c0_118 = arith.constant 0 : index
    %c0_119 = arith.constant 0 : index
    %332 = vector.load %arg10[%c1_117, %c0_118, %c0_119] : memref<2x8x64xf32, #tpu.memory_space<vmem>>, vector<1x8x64xf32>
    %333 = vector.shape_cast %332 : vector<1x8x64xf32> to vector<8x64xf32>
    %334 = tpu.concatenate %331, %333 in 0 : vector<8x64xf32>, vector<8x64xf32> -> vector<16x64xf32>
    %335 = arith.mulf %330, %330 : vector<16x64xf32>
    %cst_120 = arith.constant dense<0.000000e+00> : vector<16xf32>
    %336 = vector.multi_reduction <add>, %335, %cst_120 [1] : vector<16x64xf32> to vector<16xf32>
    %337 = vector.shape_cast %336 : vector<16xf32> to vector<16x1xf32>
    %cst_121 = arith.constant 1.000000e-24 : f32
    %338 = vector.broadcast %cst_121 : f32 to vector<16x1xf32>
    %339 = arith.maximumf %337, %338 : vector<16x1xf32>
    %340 = math.rsqrt %339 : vector<16x1xf32>
    %341 = vector.broadcast %340 : vector<16x1xf32> to vector<16x64xf32>
    %342 = arith.mulf %330, %341 : vector<16x64xf32>
    %cst_122 = arith.constant 1.600000e+01 : f32
    %343 = vector.broadcast %cst_122 : f32 to vector<16x64xf32>
    %344 = arith.mulf %342, %343 : vector<16x64xf32>
    %345 = vector.extract_strided_slice %281 {offsets = [64, 0], sizes = [64, 64], strides = [1, 1]} : vector<128x64xf32> to vector<64x64xf32>
    %cst_123 = arith.constant dense<0.000000e+00> : vector<64x16xf32>
    %346 = tpu.matmul %345, %344, %cst_123 {dimension_numbers = #tpu.dot_dimension_numbers<[1], [1], [0], [0], [0, 0, 1, 0], [], []>} : vector<64x64xf32>, vector<16x64xf32>, vector<64x16xf32> -> vector<64x16xf32>
    %347 = arith.addf %346, %1 : vector<64x16xf32>
    %cst_124 = arith.constant dense<0xFF800000> : vector<64xf32>
    %348 = vector.multi_reduction <maximumf>, %347, %cst_124 [1] : vector<64x16xf32> to vector<64xf32>
    %349 = vector.shape_cast %348 : vector<64xf32> to vector<64x1xf32>
    %350 = vector.broadcast %349 : vector<64x1xf32> to vector<64x16xf32>
    %351 = arith.subf %347, %350 : vector<64x16xf32>
    %352 = math.exp %351 : vector<64x16xf32>
    %cst_125 = arith.constant dense<0.000000e+00> : vector<64xf32>
    %353 = vector.multi_reduction <add>, %352, %cst_125 [1] : vector<64x16xf32> to vector<64xf32>
    %354 = vector.shape_cast %353 : vector<64xf32> to vector<64x1xf32>
    %355 = tpu.reciprocal %354 {approx = true} : vector<64x1xf32> -> vector<64x1xf32>
    %356 = arith.mulf %354, %355 : vector<64x1xf32>
    %cst_126 = arith.constant 2.000000e+00 : f32
    %357 = vector.broadcast %cst_126 : f32 to vector<64x1xf32>
    %358 = arith.subf %357, %356 : vector<64x1xf32>
    %359 = arith.mulf %355, %358 : vector<64x1xf32>
    %360 = vector.broadcast %359 : vector<64x1xf32> to vector<64x16xf32>
    %361 = arith.mulf %352, %360 : vector<64x16xf32>
    %cst_127 = arith.constant dense<0.000000e+00> : vector<64x64xf32>
    %362 = tpu.matmul %361, %334, %cst_127 {dimension_numbers = #tpu.dot_dimension_numbers<[1], [0], [0], [1], [0, 0, 1, 1], [], []>} : vector<64x16xf32>, vector<16x64xf32>, vector<64x64xf32> -> vector<64x64xf32>
    %363 = vector.extract_strided_slice %362 {offsets = [0, 0], sizes = [8, 64], strides = [1, 1]} : vector<64x64xf32> to vector<8x64xf32>
    %364 = vector.extract_strided_slice %362 {offsets = [8, 0], sizes = [8, 64], strides = [1, 1]} : vector<64x64xf32> to vector<8x64xf32>
    %365 = vector.extract_strided_slice %362 {offsets = [16, 0], sizes = [8, 64], strides = [1, 1]} : vector<64x64xf32> to vector<8x64xf32>
    %366 = vector.extract_strided_slice %362 {offsets = [24, 0], sizes = [8, 64], strides = [1, 1]} : vector<64x64xf32> to vector<8x64xf32>
    %367 = vector.extract_strided_slice %362 {offsets = [32, 0], sizes = [8, 64], strides = [1, 1]} : vector<64x64xf32> to vector<8x64xf32>
    %368 = vector.extract_strided_slice %362 {offsets = [40, 0], sizes = [8, 64], strides = [1, 1]} : vector<64x64xf32> to vector<8x64xf32>
    %369 = vector.extract_strided_slice %362 {offsets = [48, 0], sizes = [8, 64], strides = [1, 1]} : vector<64x64xf32> to vector<8x64xf32>
    %370 = vector.extract_strided_slice %362 {offsets = [56, 0], sizes = [8, 64], strides = [1, 1]} : vector<64x64xf32> to vector<8x64xf32>
    %371 = tpu.concatenate %363, %364, %365, %366, %367, %368, %369, %370 in 1 : vector<8x64xf32>, vector<8x64xf32>, vector<8x64xf32>, vector<8x64xf32>, vector<8x64xf32>, vector<8x64xf32>, vector<8x64xf32>, vector<8x64xf32> -> vector<8x512xf32>
    %372 = tpu.concatenate %326, %371 in 0 : vector<8x512xf32>, vector<8x512xf32> -> vector<16x512xf32>
    %c1_128 = arith.constant 1 : index
    %c0_129 = arith.constant 0 : index
    %c0_130 = arith.constant 0 : index
    %373 = vector.load %arg11[%c1_128, %c0_129, %c0_130] : memref<2x512x64xf32, #tpu.memory_space<vmem>>, vector<1x512x64xf32>
    %374 = vector.shape_cast %373 : vector<1x512x64xf32> to vector<512x64xf32>
    %cst_131 = arith.constant dense<0.000000e+00> : vector<16x64xf32>
    %375 = tpu.matmul %372, %374, %cst_131 {dimension_numbers = #tpu.dot_dimension_numbers<[1], [0], [0], [1], [0, 0, 1, 1], [], []>} : vector<16x512xf32>, vector<512x64xf32>, vector<16x64xf32> -> vector<16x64xf32>
    %c1_132 = arith.constant 1 : index
    %c0_133 = arith.constant 0 : index
    %c0_134 = arith.constant 0 : index
    %376 = vector.load %arg12[%c1_132, %c0_133, %c0_134] : memref<2x1x64xf32, #tpu.memory_space<vmem>>, vector<1x1x64xf32>
    %377 = vector.shape_cast %376 : vector<1x1x64xf32> to vector<1x64xf32>
    %cst_135 = arith.constant dense<0.000000e+00> : vector<16xf32>
    %378 = vector.multi_reduction <add>, %375, %cst_135 [1] : vector<16x64xf32> to vector<16xf32>
    %379 = vector.shape_cast %378 : vector<16xf32> to vector<16x1xf32>
    %cst_136 = arith.constant 6.400000e+01 : f32
    %380 = vector.broadcast %cst_136 : f32 to vector<16x1xf32>
    %381 = arith.divf %379, %380 : vector<16x1xf32>
    %382 = vector.broadcast %381 : vector<16x1xf32> to vector<16x64xf32>
    %383 = arith.subf %375, %382 : vector<16x64xf32>
    %384 = arith.mulf %383, %383 : vector<16x64xf32>
    %cst_137 = arith.constant dense<0.000000e+00> : vector<16xf32>
    %385 = vector.multi_reduction <add>, %384, %cst_137 [1] : vector<16x64xf32> to vector<16xf32>
    %386 = vector.shape_cast %385 : vector<16xf32> to vector<16x1xf32>
    %cst_138 = arith.constant 6.400000e+01 : f32
    %387 = vector.broadcast %cst_138 : f32 to vector<16x1xf32>
    %388 = arith.divf %386, %387 : vector<16x1xf32>
    %389 = vector.broadcast %381 : vector<16x1xf32> to vector<16x64xf32>
    %390 = arith.subf %375, %389 : vector<16x64xf32>
    %cst_139 = arith.constant 9.99999974E-6 : f32
    %391 = vector.broadcast %cst_139 : f32 to vector<16x1xf32>
    %392 = arith.addf %388, %391 : vector<16x1xf32>
    %393 = math.rsqrt %392 : vector<16x1xf32>
    %394 = vector.broadcast %393 : vector<16x1xf32> to vector<16x64xf32>
    %395 = arith.mulf %390, %394 : vector<16x64xf32>
    %396 = vector.broadcast %377 : vector<1x64xf32> to vector<16x64xf32>
    %397 = arith.mulf %395, %396 : vector<16x64xf32>
    %398 = arith.addf %221, %397 : vector<16x64xf32>
    %c1_140 = arith.constant 1 : index
    %c0_141 = arith.constant 0 : index
    %c0_142 = arith.constant 0 : index
    %399 = vector.load %arg13[%c1_140, %c0_141, %c0_142] : memref<2x1x64xf32, #tpu.memory_space<vmem>>, vector<1x1x64xf32>
    %400 = vector.shape_cast %399 : vector<1x1x64xf32> to vector<1x64xf32>
    %cst_143 = arith.constant dense<0.000000e+00> : vector<16xf32>
    %401 = vector.multi_reduction <add>, %398, %cst_143 [1] : vector<16x64xf32> to vector<16xf32>
    %402 = vector.shape_cast %401 : vector<16xf32> to vector<16x1xf32>
    %cst_144 = arith.constant 6.400000e+01 : f32
    %403 = vector.broadcast %cst_144 : f32 to vector<16x1xf32>
    %404 = arith.divf %402, %403 : vector<16x1xf32>
    %405 = vector.broadcast %404 : vector<16x1xf32> to vector<16x64xf32>
    %406 = arith.subf %398, %405 : vector<16x64xf32>
    %407 = arith.mulf %406, %406 : vector<16x64xf32>
    %cst_145 = arith.constant dense<0.000000e+00> : vector<16xf32>
    %408 = vector.multi_reduction <add>, %407, %cst_145 [1] : vector<16x64xf32> to vector<16xf32>
    %409 = vector.shape_cast %408 : vector<16xf32> to vector<16x1xf32>
    %cst_146 = arith.constant 6.400000e+01 : f32
    %410 = vector.broadcast %cst_146 : f32 to vector<16x1xf32>
    %411 = arith.divf %409, %410 : vector<16x1xf32>
    %412 = vector.broadcast %404 : vector<16x1xf32> to vector<16x64xf32>
    %413 = arith.subf %398, %412 : vector<16x64xf32>
    %cst_147 = arith.constant 9.99999974E-6 : f32
    %414 = vector.broadcast %cst_147 : f32 to vector<16x1xf32>
    %415 = arith.addf %411, %414 : vector<16x1xf32>
    %416 = math.rsqrt %415 : vector<16x1xf32>
    %417 = vector.broadcast %416 : vector<16x1xf32> to vector<16x64xf32>
    %418 = arith.mulf %413, %417 : vector<16x64xf32>
    %419 = vector.broadcast %400 : vector<1x64xf32> to vector<16x64xf32>
    %420 = arith.mulf %418, %419 : vector<16x64xf32>
    %c1_148 = arith.constant 1 : index
    %c0_149 = arith.constant 0 : index
    %c0_150 = arith.constant 0 : index
    %421 = vector.load %arg14[%c1_148, %c0_149, %c0_150] : memref<2x64x512xf32, #tpu.memory_space<vmem>>, vector<1x64x512xf32>
    %422 = vector.shape_cast %421 : vector<1x64x512xf32> to vector<64x512xf32>
    %cst_151 = arith.constant dense<0.000000e+00> : vector<16x512xf32>
    %423 = tpu.matmul %420, %422, %cst_151 {dimension_numbers = #tpu.dot_dimension_numbers<[1], [0], [0], [1], [0, 0, 1, 1], [], []>} : vector<16x64xf32>, vector<64x512xf32>, vector<16x512xf32> -> vector<16x512xf32>
    %424 = vector.extract_strided_slice %423 {offsets = [0, 0], sizes = [16, 256], strides = [1, 1]} : vector<16x512xf32> to vector<16x256xf32>
    %425 = vector.extract_strided_slice %423 {offsets = [0, 256], sizes = [16, 256], strides = [1, 1]} : vector<16x512xf32> to vector<16x256xf32>
    %426 = arith.negf %425 : vector<16x256xf32>
    %427 = math.exp %426 : vector<16x256xf32>
    %cst_152 = arith.constant 1.000000e+00 : f32
    %428 = vector.broadcast %cst_152 : f32 to vector<16x256xf32>
    %429 = arith.addf %428, %427 : vector<16x256xf32>
    %430 = arith.divf %428, %429 : vector<16x256xf32>
    %431 = arith.mulf %425, %430 : vector<16x256xf32>
    %432 = arith.mulf %424, %431 : vector<16x256xf32>
    %c1_153 = arith.constant 1 : index
    %c0_154 = arith.constant 0 : index
    %c0_155 = arith.constant 0 : index
    %433 = vector.load %arg15[%c1_153, %c0_154, %c0_155] : memref<2x256x64xf32, #tpu.memory_space<vmem>>, vector<1x256x64xf32>
    %434 = vector.shape_cast %433 : vector<1x256x64xf32> to vector<256x64xf32>
    %cst_156 = arith.constant dense<0.000000e+00> : vector<16x64xf32>
    %435 = tpu.matmul %432, %434, %cst_156 {dimension_numbers = #tpu.dot_dimension_numbers<[1], [0], [0], [1], [0, 0, 1, 1], [], []>} : vector<16x256xf32>, vector<256x64xf32>, vector<16x64xf32> -> vector<16x64xf32>
    %436 = arith.addf %398, %435 : vector<16x64xf32>
    %c0_157 = arith.constant 0 : index
    %c0_158 = arith.constant 0 : index
    %437 = vector.load %arg16[%c0_157, %c0_158] : memref<1x64xf32, #tpu.memory_space<vmem>>, vector<1x64xf32>
    %cst_159 = arith.constant dense<0xFF800000> : vector<16xf32>
    %438 = vector.multi_reduction <maximumf>, %436, %cst_159 [1] : vector<16x64xf32> to vector<16xf32>
    %439 = vector.shape_cast %438 : vector<16xf32> to vector<16x1xf32>
    %440 = vector.broadcast %439 : vector<16x1xf32> to vector<16x64xf32>
    %441 = arith.divf %436, %440 : vector<16x64xf32>
    %cst_160 = arith.constant dense<0.000000e+00> : vector<16xf32>
    %442 = vector.multi_reduction <add>, %441, %cst_160 [1] : vector<16x64xf32> to vector<16xf32>
    %443 = vector.shape_cast %442 : vector<16xf32> to vector<16x1xf32>
    %cst_161 = arith.constant 6.400000e+01 : f32
    %444 = vector.broadcast %cst_161 : f32 to vector<16x1xf32>
    %445 = arith.divf %443, %444 : vector<16x1xf32>
    %446 = vector.broadcast %445 : vector<16x1xf32> to vector<16x64xf32>
    %447 = arith.subf %441, %446 : vector<16x64xf32>
    %448 = arith.mulf %447, %447 : vector<16x64xf32>
    %cst_162 = arith.constant dense<0.000000e+00> : vector<16xf32>
    %449 = vector.multi_reduction <add>, %448, %cst_162 [1] : vector<16x64xf32> to vector<16xf32>
    %450 = vector.shape_cast %449 : vector<16xf32> to vector<16x1xf32>
    %cst_163 = arith.constant 6.400000e+01 : f32
    %451 = vector.broadcast %cst_163 : f32 to vector<16x1xf32>
    %452 = arith.divf %450, %451 : vector<16x1xf32>
    %453 = vector.broadcast %445 : vector<16x1xf32> to vector<16x64xf32>
    %454 = arith.subf %441, %453 : vector<16x64xf32>
    %cst_164 = arith.constant 9.99999974E-6 : f32
    %455 = vector.broadcast %cst_164 : f32 to vector<16x1xf32>
    %456 = arith.addf %452, %455 : vector<16x1xf32>
    %457 = math.rsqrt %456 : vector<16x1xf32>
    %458 = vector.broadcast %457 : vector<16x1xf32> to vector<16x64xf32>
    %459 = arith.mulf %454, %458 : vector<16x64xf32>
    %460 = vector.broadcast %437 : vector<1x64xf32> to vector<16x64xf32>
    %461 = arith.mulf %459, %460 : vector<16x64xf32>
    %c0_165 = arith.constant 0 : index
    %c0_166 = arith.constant 0 : index
    %462 = vector.load %arg17[%c0_165, %c0_166] : memref<64x64xf32, #tpu.memory_space<vmem>>, vector<64x64xf32>
    %cst_167 = arith.constant dense<0.000000e+00> : vector<16x64xf32>
    %463 = tpu.matmul %461, %462, %cst_167 {dimension_numbers = #tpu.dot_dimension_numbers<[1], [0], [0], [1], [0, 0, 1, 1], [], []>} : vector<16x64xf32>, vector<64x64xf32>, vector<16x64xf32> -> vector<16x64xf32>
    %c0_168 = arith.constant 0 : index
    %c0_169 = arith.constant 0 : index
    %464 = vector.load %arg18[%c0_168, %c0_169] : memref<16x64xf32, #tpu.memory_space<vmem>>, vector<16x64xf32>
    tpu.vector_store %arg18[%c0_168, %c0_169], %463 {strides = array<i32>} : memref<16x64xf32, #tpu.memory_space<vmem>>, vector<16x64xf32>,
    return
  }
}

</mosaic_0001>

<bundles_post_ra>
// kernel: _pallas_forward.1
= control target key start
LH: loop header
LB: loop body
LE: loop exit
PB: predicated region body
PF: predicated region fallthrough
CT: control target
= control target key end

     0   :  { %s9223_s0 = inlined_call_operand.vmem [shape: f32[16,64], index: 0, kind: input, shape index: {}]   ;;  %s9224_s1 = inlined_call_operand.vmem [shape: f32[64,16], index: 1, kind: input, shape index: {}]   ;;  %s9225_s2 = inlined_call_operand.vmem [shape: f32[16,64], index: 2, kind: input, shape index: {}]   ;;  %s9226_s3 = inlined_call_operand.vmem [shape: f32[16,64], index: 3, kind: input, shape index: {}]   ;;  %s9227_s4 = inlined_call_operand.vmem [shape: f32[128,64], index: 4, kind: input, shape index: {}]   ;;  %s9228_s5 = inlined_call_operand.vmem [shape: f32[128,64], index: 5, kind: input, shape index: {}]   ;;  %s9229_s6 = inlined_call_operand.vmem [shape: f32[64,64], index: 6, kind: input, shape index: {}]   ;;  %s9230_s7 = inlined_call_operand.vmem [shape: f32[2,1,64], index: 7, kind: input, shape index: {}]   ;;  %s9231_s8 = inlined_call_operand.vmem [shape: f32[2,64,640], index: 8, kind: input, shape index: {}]   ;;  %s9232_s9 = inlined_call_operand.vmem [shape: f32[2,8,64], index: 9, kind: input, shape index: {}]   ;;  %s9233_s10 = inlined_call_operand.vmem [shape: f32[2,8,64], index: 10, kind: input, shape index: {}]   ;;  %s9234_s11 = inlined_call_operand.vmem [shape: f32[2,512,64], index: 11, kind: input, shape index: {}]   ;;  %s9235_s12 = inlined_call_operand.vmem [shape: f32[2,1,64], index: 12, kind: input, shape index: {}]   ;;  %s9236_s13 = inlined_call_operand.vmem [shape: f32[2,1,64], index: 13, kind: input, shape index: {}]   ;;  %s9237_s14 = inlined_call_operand.vmem [shape: f32[2,64,512], index: 14, kind: input, shape index: {}]   ;;  %s9238_s15 = inlined_call_operand.vmem [shape: f32[2,256,64], index: 15, kind: input, shape index: {}]   ;;  %s9239_s16 = inlined_call_operand.vmem [shape: f32[1,64], index: 16, kind: input, shape index: {}]   ;;  %s9240_s17 = inlined_call_operand.vmem [shape: f32[64,64], index: 17, kind: input, shape index: {}]   ;;  %s9241_s18 = inlined_call_operand.hbm [shape: f32[16,64], index: 18, kind: output, shape index: {}]  }
   0x1   :  { %9247 = sst [smem:[#allocation5_spill]] %s9223_s0 }
   0x2   :  { %9248 = sst [smem:[#allocation6_spill]] %s9224_s1 }
   0x3   :  { %9249 = sst [smem:[#allocation7_spill]] %s9225_s2 }
   0x4   :  { %s9250_s29 = sld [smem:[#allocation5_spill]]  ;;  %vm115_vm0 = vcmask 523264  }
   0xa   :  { %v60_v0 = vld [vmem:[%s9250_s29] sm:$0xff]  ;;  %v61_v1 = vld [vmem:[%s9250_s29 + $0x8] sm:$0xff] }
   0xb   :  { %23 = vsyncpa [#allocation3], 0  ;;  %v116_v2 = vsel %vm115_vm0, %v60_v0, 0.0  ;;  %v119_v3 = vsel %vm115_vm0, %v61_v1, 0.0  ;;  %v152_v14 = vld [vmem:[%s9231_s8 + $0x8] sm:$0xff]  ;;  %v157_v15 = vld [vmem:[%s9231_s8 + $0x30] sm:$0xff] }
   0xc   :  { %117 = vadd.xlane.f32.xlu0 %v116_v2  ;;  %v5729_v16 = vpack.c.bf16 %v157_v15, %v152_v14  ;;  %v151_v17 = vld [vmem:[%s9231_s8] sm:$0xff]  ;;  %v156_v18 = vld [vmem:[%s9231_s8 + $0x28] sm:$0xff]  ;;  %v154_v19 = vld [vmem:[%s9231_s8 + $0x18] sm:$0xff]  ;;  %v9245_v48 = vmov 0.0   ;;  %s9251_s22 = sld [smem:[#allocation7_spill]]  ;;  %s9254_s25 = sld [smem:[#allocation6_spill]] }
   0xd   :  { %v5731_v20 = vpack.c.bf16 %v156_v18, %v151_v17  ;;  %v159_v21 = vld [vmem:[%s9231_s8 + $0x40] sm:$0xff]  ;;  %v153_v22 = vld [vmem:[%s9231_s8 + $0x10] sm:$0xff]  ;;  %v158_v23 = vld [vmem:[%s9231_s8 + $0x38] sm:$0xff]  ;;  %261 = vmatprep.mubr.f32.mxu0 %v9245_v48  ;;  %338 = vmatprep.mubr.f32.mxu1 %v9245_v48  ;;  %vm1038_vm2 = vcmask 130048  }
   0xe   :  { %5730 = vmatprep.subr.bf16.mxu0 %v5729_v16  ;;  %v5745_v24 = vpack.c.bf16 %v159_v21, %v154_v19  ;;  %v5747_v25 = vpack.c.bf16 %v158_v23, %v153_v22  ;;  %v162_v26 = vld [vmem:[%s9231_s8 + $0x58] sm:$0xff]  ;;  %v167_v27 = vld [vmem:[%s9231_s8 + $0x80] sm:$0xff]  ;;  %v161_v29 = vld [vmem:[%s9231_s8 + $0x50] sm:$0xff] }
   0xf   :  { %5732 = vmatpush1.bf16.msra.mxu0 %v5731_v20  ;;  %v5733_v28 = vpack.c.bf16 %v167_v27, %v162_v26  ;;  %v166_v30 = vld [vmem:[%s9231_s8 + $0x78] sm:$0xff]  ;;  %v164_v31 = vld [vmem:[%s9231_s8 + $0x68] sm:$0xff]  ;;  %v169_v33 = vld [vmem:[%s9231_s8 + $0x90] sm:$0xff] }
  0x10   :  { %120 = vadd.xlane.f32.xlu0 %v119_v3  ;;  %5746 = vmatprep.subr.bf16.mxu1 %v5745_v24  ;;  %v5735_v32 = vpack.c.bf16 %v166_v30, %v161_v29  ;;  %v163_v34 = vld [vmem:[%s9231_s8 + $0x60] sm:$0xff]  ;;  %v168_v35 = vld [vmem:[%s9231_s8 + $0x88] sm:$0xff]  ;;  %v5749_v36 = vpack.c.bf16 %v169_v33, %v164_v31  ;;  %v177_v39 = vld [vmem:[%s9231_s8 + $0xd0] sm:$0xff] }
  0x11   :  { %5748 = vmatpush1.bf16.msra.mxu1 %v5747_v25  ;;  %5734 = vmatprep.subr.bf16.mxu0 %v5733_v28  ;;  %v5751_v37 = vpack.c.bf16 %v168_v35, %v163_v34  ;;  %v172_v38 = vld [vmem:[%s9231_s8 + $0xa8] sm:$0xff]  ;;  %v171_v41 = vld [vmem:[%s9231_s8 + $0xa0] sm:$0xff]  ;;  %v174_v43 = vld [vmem:[%s9231_s8 + $0xb8] sm:$0xff] }
  0x12   :  { %5750 = vmatprep.subr.bf16.mxu1 %v5749_v36  ;;  %v5737_v40 = vpack.c.bf16 %v177_v39, %v172_v38  ;;  %v176_v42 = vld [vmem:[%s9231_s8 + $0xc8] sm:$0xff]  ;;  %v179_v45 = vld [vmem:[%s9231_s8 + $0xe0] sm:$0xff]  ;;  %v173_v46 = vld [vmem:[%s9231_s8 + $0xb0] sm:$0xff] }
  0x13   :  { %5736 = vmatpush1.bf16.msra.mxu0 %v5735_v32  ;;  %v5739_v44 = vpack.c.bf16 %v176_v42, %v171_v41  ;;  %v178_v47 = vld [vmem:[%s9231_s8 + $0xd8] sm:$0xff]  ;;  %v5753_v49 = vpack.c.bf16 %v179_v45, %v174_v43  ;;  %v187_v52 = vld [vmem:[%s9231_s8 + $0x120] sm:$0xff]  ;;  %v181_v53 = vld [vmem:[%s9231_s8 + $0xf0] sm:$0xff] }
  0x14   :  { %5738 = vmatprep.subr.bf16.mxu0 %v5737_v40  ;;  %v5755_v50 = vpack.c.bf16 %v178_v47, %v173_v46  ;;  %v182_v51 = vld [vmem:[%s9231_s8 + $0xf8] sm:$0xff]  ;;  %v184_v56 = vld [vmem:[%s9231_s8 + $0x108] sm:$0xff]  ;;  %v189_v57 = vld [vmem:[%s9231_s8 + $0x130] sm:$0xff] }
  0x15   :  { %5752 = vmatpush1.bf16.msra.mxu1 %v5751_v37  ;;  %v5741_v54 = vpack.c.bf16 %v187_v52, %v182_v51  ;;  %v186_v55 = vld [vmem:[%s9231_s8 + $0x118] sm:$0xff]  ;;  %v5757_v59 = vpack.c.bf16 %v189_v57, %v184_v56  ;;  %v183_v60 = vld [vmem:[%s9231_s8 + $0x100] sm:$0xff]  ;;  %v188_v61 = vld [vmem:[%s9231_s8 + $0x128] sm:$0xff] }
  0x16   :  { %5754 = vmatprep.subr.bf16.mxu1 %v5753_v49  ;;  %v5743_v58 = vpack.c.bf16 %v186_v55, %v181_v53  ;;  %v155_v62 = vld [vmem:[%s9231_s8 + $0x20] sm:$0xff]  ;;  %v5759_v63 = vpack.c.bf16 %v188_v61, %v183_v60  ;;  %v180_v19 = vld [vmem:[%s9231_s8 + $0xe8] sm:$0xff]  ;;  %v185_v22 = vld [vmem:[%s9231_s8 + $0x110] sm:$0xff] }
  0x17   :  { %5740 = vmatpush1.bf16.msra.mxu0 %v5739_v44  ;;  %v175_v18 = vld [vmem:[%s9231_s8 + $0xc0] sm:$0xff]  ;;  %v190_v23 = vld [vmem:[%s9231_s8 + $0x138] sm:$0xff]  ;;  %v107_v25 = vld [vmem:[%s9229_s6 + $0x8] sm:$0xff] }
  0x18   :  { %5742 = vmatprep.subr.bf16.mxu0 %v5741_v54  ;;  %v5769_v21 = vpack.c.bf16 %v180_v19, %v175_v18  ;;  %v106_v24 = vld [vmem:[%s9229_s6] sm:$0xff]  ;;  %v108_v27 = vld [vmem:[%s9229_s6 + $0x10] sm:$0xff]  ;;  %v109_v28 = vld [vmem:[%s9229_s6 + $0x18] sm:$0xff] }
  0x19   :  { %5756 = vmatpush1.bf16.msra.mxu1 %v5755_v50  ;;  %v6855_v26 = vpack.c.bf16 %v107_v25, %v106_v24  ;;  %v6867_v29 = vpack.c.bf16 %v109_v28, %v108_v27  ;;  %v110_v30 = vld [vmem:[%s9229_s6 + $0x20] sm:$0xff]  ;;  %v111_v31 = vld [vmem:[%s9229_s6 + $0x28] sm:$0xff]  ;;  %v112_v33 = vld [vmem:[%s9229_s6 + $0x30] sm:$0xff] }
  0x1a   :  { %5758 = vmatprep.subr.bf16.mxu1 %v5757_v59  ;;  %v6876_v32 = vpack.c.bf16 %v111_v31, %v110_v30  ;;  %v113_v34 = vld [vmem:[%s9229_s6 + $0x38] sm:$0xff]  ;;  %s6597_s6 = smov 64   ;;  %v6930_v46 = vld [vmem:[%s9232_s9] sm:$0xff]  ;;  %v71_v54 = vld [vmem:[%s9251_s22 + $0x8] sm:$0xff] }
  0x1b   :  { %5744 = vmatpush1.bf16.msra.mxu0 %v5743_v58  ;;  %v6889_v35 = vpack.c.bf16 %v113_v34, %v112_v33  ;;  %v888_v47 = vmul.f32 %v6930_v46, %v6930_v46  ;;  %v73_v55 = vld [vmem:[%s9226_s3 + $0x8] sm:$0xff]  ;;  %v70_v56 = vld [vmem:[%s9251_s22] sm:$0xff]  ;;  %v76_v18 = vld [vmem:[%s9227_s4 + $0x10] sm:$0xff] }
  0x1c   :  { %v72_v57 = vld [vmem:[%s9226_s3] sm:$0xff]  ;;  %v79_v27 = vld [vmem:[%s9227_s4 + $0x28] sm:$0xff]  ;;  %vm7077_vm1 = vmpackc.low %vm115_vm0, %vm115_vm0 }
  0x1d   :  { %5760 = vmatpush1.bf16.msra.mxu1 %v5759_v63  ;;  %v892_v49 = vsel %vm115_vm0, %v888_v47, 0.0  ;;  %v95_v30 = vld [vmem:[%s9228_s5 + $0x28] sm:$0xff]  ;;  %v78_v31 = vld [vmem:[%s9227_s4 + $0x20] sm:$0xff] }
  0x1e   :  { %5778 = vmatprep.subr.bf16.mxu1 %v6855_v26 }
  0x99   :  { %v118_v4 = vpop.xlane.xlu0 %117 }
  0x9a   :  { %v123_v5 = vmul.f32 0.015625, %v118_v4 }
  0x9c   :  { %v6704_v6 = vsub.f32 %v60_v0, %v123_v5  ;;  %v160_v0 = vld [vmem:[%s9231_s8 + $0x48] sm:$0xff] }
  0x9d   :  { %v121_v7 = vpop.xlane.xlu0 %120 }
  0x9e   :  { %v124_v8 = vmul.f32 0.015625, %v121_v7  ;;  %v127_v9 = vmul.f32 %v6704_v6, %v6704_v6 }
  0xa0   :  { %v6708_v10 = vsub.f32 %v61_v1, %v124_v8  ;;  %v129_v11 = vsel %vm115_vm0, %v127_v9, 0.0  ;;  %v5761_v1 = vpack.c.bf16 %v160_v0, %v155_v62 }
  0xa1   :  { %130 = vadd.xlane.f32.xlu1 %v129_v11  ;;  %v4702_v11 = vld [vmem:[%s9230_s7] ss:$0 sm:$0xff] }
  0xa2   :  { %v128_v12 = vmul.f32 %v6708_v10, %v6708_v10  ;;  %5762 = vmatprep.subr.bf16.mxu0 %v5761_v1 }
  0xa4   :  { %v132_v13 = vsel %vm115_vm0, %v128_v12, 0.0  ;;  %v165_v12 = vld [vmem:[%s9231_s8 + $0x70] sm:$0xff] }
  0xa5   :  { %133 = vadd.xlane.f32.xlu1 %v132_v13  ;;  %v170_v13 = vld [vmem:[%s9231_s8 + $0x98] sm:$0xff] }
  0xa6   :  { %v5765_v16 = vpack.c.bf16 %v170_v13, %v165_v12 }
 0x12e   :  { %v131_v2 = vpop.xlane.xlu1 %130 }
 0x12f   :  { %v135_v3 = vmul.f32 0.015625, %v131_v2 }
 0x131   :  { %v137_v4 = vadd.f32 1e-05, %v135_v3 }
 0x132   :  { %v134_v5 = vpop.xlane.xlu1 %133 }
 0x133   :  { %6258 = vrsqrt.f32 %v137_v4  ;;  %v136_v7 = vmul.f32 0.015625, %v134_v5  ;;  %v75_v4 = vld [vmem:[%s9227_s4 + $0x8] sm:$0xff] }
 0x134   :  { %v91_v5 = vld [vmem:[%s9228_s5 + $0x8] sm:$0xff] }
 0x135   :  { %v138_v8 = vadd.f32 1e-05, %v136_v7  ;;  %v74_v7 = vld [vmem:[%s9227_s4] sm:$0xff] }
 0x137   :  { %6260 = vrsqrt.f32 %v138_v8  ;;  %v90_v8 = vld [vmem:[%s9228_s5] sm:$0xff] }
 0x13d   :  { %v6259_v9 = vpop.eup %6258 }
 0x13e   :  { %v141_v14 = vmul.f32 %v6259_v9, %v6704_v6 }
 0x140   :  { %v149_v15 = vmul.f32 %v4702_v11, %v141_v14 }
 0x141   :  { %v6261_v17 = vpop.eup %6260 }
 0x142   :  { %4703 = vmatmul.mubr.msk.f32.vlgmr.msra.gmra.mrb[0].mxu0 %vm115_vm0, %v149_v15  ;;  %4705 = vmatmul.mubr.msk.f32.vlgmr.msra.gmra.mrb[0].mxu1 %vm115_vm0, %v149_v15  ;;  %v142_v20 = vmul.f32 %v6261_v17, %v6708_v10  ;;  %v5773_v10 = vpack.c.bf16 %v190_v23, %v185_v22  ;;  %v93_v17 = vld [vmem:[%s9228_s5 + $0x18] sm:$0xff] }
 0x143   :  { %5764 = vmatpush3.bf16.msra.mxu0 %v5761_v1  ;;  %267 = vmatprep.mubr.f32.mxu0 %v9245_v48 }
 0x144   :  { %344 = vmatprep.mubr.f32.mxu1 %v9245_v48  ;;  %5766 = vmatprep.subr.bf16.mxu0 %v5765_v16  ;;  %v150_v6 = vmul.f32 %v4702_v11, %v142_v20  ;;  %v92_v20 = vld [vmem:[%s9228_s5 + $0x10] sm:$0xff] }
 0x145   :  { %5780 = vmatpush3.bf16.msra.mxu1 %v6855_v26 }
 0x146   :  { %4704 = vmatmul.mubr.msk.f32.gmra.mrb[2].mxu0 %vm115_vm0, %v150_v6  ;;  %4706 = vmatmul.mubr.msk.f32.gmra.mrb[2].mxu1 %vm115_vm0, %v150_v6 }
 0x147   :  { %5768 = vmatpush3.bf16.msra.mxu0 %v5765_v16  ;;  %5442 = vmatprep.mubr.msk.f32.mxu0 %vm115_vm0, %v149_v15  ;;  %v77_v15 = vld [vmem:[%s9227_s4 + $0x18] sm:$0xff] }
 0x148   :  { %5770 = vmatprep.subr.bf16.mxu0 %v5769_v21  ;;  %5782 = vmatprep.subr.bf16.mxu1 %v6867_v29 }
 0x149   :  { %5784 = vmatpush3.bf16.msra.mxu1 %v6867_v29 }
 0x14a   :  { %5786 = vmatprep.subr.bf16.mxu1 %v6876_v32 }
 0x14b   :  { %5772 = vmatpush3.bf16.msra.mxu0 %v5769_v21 }
 0x14c   :  { %5774 = vmatprep.subr.bf16.mxu0 %v5773_v10 }
 0x14d   :  { %5788 = vmatpush3.bf16.msra.mxu1 %v6876_v32 }
 0x14e   :  { %5790 = vmatprep.subr.bf16.mxu1 %v6889_v35 }
 0x14f   :  { %5776 = vmatpush3.bf16.msra.mxu0 %v5773_v10 }
 0x150   :  { %5794 = vmatprep.subr.bf16.mxu0 %v6855_v26 }
 0x151   :  { %5792 = vmatpush3.bf16.msra.mxu1 %v6889_v35 }
 0x152   :  { %5443 = vmatmul.mubr.msk.f32.vlgmr.msra.gmra.mrb[4].mxu0 %vm115_vm0, %v150_v6 }
 0x153   :  { %5796 = vmatpush3.bf16.msra.mxu0 %v6855_v26 }
 0x154   :  { %5798 = vmatprep.subr.bf16.mxu0 %v6867_v29 }
 0x157   :  { %5800 = vmatpush3.bf16.msra.mxu0 %v6867_v29 }
 0x158   :  { %5802 = vmatprep.subr.bf16.mxu0 %v6876_v32 }
 0x15b   :  { %5804 = vmatpush3.bf16.msra.mxu0 %v6876_v32 }
 0x15c   :  { %5806 = vmatprep.subr.bf16.mxu0 %v6889_v35 }
 0x15f   :  { %5808 = vmatpush3.bf16.msra.mxu0 %v6889_v35 }
 0x215   :  { %v263_v36 = vpop.f32.mrb[0].mxu0  ;;  %v6897_v37 = vpop.f32.mrb[0].mxu1 }
 0x216   :  { %v6899_v38 = vpop.f32.mrb[1].mxu1  ;;  %514 = vrot.lane.b32.xlu0 %v263_v36, %s6597_s6  ;;  %v6902_v39 = vpop.f32.mrb[1].mxu0  ;;  %5480 = vmatprep.mubr.msk.f32.mxu0 %vm115_vm0, %v263_v36  ;;  %v545_v14 = vmul.f32 %v263_v36, %v74_v7  ;;  %v94_v36 = vld [vmem:[%s9228_s5 + $0x20] sm:$0xff] }
 0x217   :  { %518 = vrot.lane.b32.xlu1 %v6902_v39, %s6597_s6  ;;  %v547_v25 = vmul.f32 %v6902_v39, %v76_v18 }
 0x219   :  { %v6907_v40 = vpop.f32.mrb[2].mxu0  ;;  %v6909_v41 = vpop.f32.mrb[2].mxu1 }
 0x21a   :  { %v6911_v42 = vpop.f32.mrb[3].mxu0  ;;  %v6913_v43 = vpop.f32.mrb[3].mxu1 }
 0x21b   :  { %522 = vrot.lane.b32.xlu1 %v6897_v37, %s6597_s6 }
 0x21f   :  { %526 = vrot.lane.b32.xlu1 %v6899_v38, %s6597_s6 }
 0x225   :  { %v6919_v44 = vpop.f32.mrb[4].mxu0 }
 0x226   :  { %v6921_v45 = vpop.f32.mrb[5].mxu0  ;;  %v427_v59 = vmul.f32 %v6919_v44, %v71_v54 }
 0x227   :  { %5461 = vmatprep.mubr.msk.f32.mxu1 %vm115_vm0, %v6921_v45  ;;  %v426_v62 = vmul.f32 %v6921_v45, %v70_v56  ;;  %v549_v56 = vmul.f32 %v6897_v37, %v78_v31 }
 0x228   :  { %5462 = vmatmul.mubr.msk.f32.vlgmr.msra.gmra.mrb[4].mxu1 %vm115_vm0, %v6919_v44 }
 0x243   :  { %893 = vadd.xlane.f32.xlu1 %v892_v49 }
 0x288   :  { %v515_v50 = vpop.permute.xlu0 %514 }
 0x289   :  { %v519_v51 = vpop.permute.xlu1 %518  ;;  %5481 = vmatmul.mubr.msk.f32.vlgmr.msra.gmra.mrb[6].mxu0 %vm115_vm0, %v515_v50  ;;  %v546_v11 = vmul.f32 %v515_v50, %v75_v4 }
 0x28a   :  { %5483 = vmatprep.mubr.msk.f32.mxu0 %vm115_vm0, %v6902_v39  ;;  %v548_v22 = vmul.f32 %v519_v51, %v77_v15 }
 0x28d   :  { %5484 = vmatmul.mubr.msk.f32.gmra.mrb[8].mxu0 %vm115_vm0, %v519_v51  ;;  %v523_v52 = vpop.permute.xlu1 %522 }
 0x28e   :  { %5486 = vmatprep.mubr.msk.f32.mxu0 %vm115_vm0, %v6897_v37  ;;  %v550_v50 = vmul.f32 %v523_v52, %v79_v27  ;;  %v96_v37 = vld [vmem:[%s9228_s5 + $0x30] sm:$0xff] }
 0x291   :  { %5487 = vmatmul.mubr.msk.f32.gmra.mrb[10].mxu0 %vm115_vm0, %v523_v52  ;;  %v6944_v53 = vpop.permute.xlu1 %526  ;;  %v80_v52 = vld [vmem:[%s9227_s4 + $0x30] sm:$0xff] }
 0x292   :  { %5489 = vmatprep.mubr.msk.f32.mxu0 %vm115_vm0, %v6899_v38 }
 0x295   :  { %5490 = vmatmul.mubr.msk.f32.gmra.mrb[12].mxu0 %vm115_vm0, %v6944_v53 }
 0x296   :  { %5492 = vmatprep.mubr.msk.f32.mxu0 %vm115_vm0, %v6907_v40 }
 0x2fb   :  { %v5463_v58 = vpop.f32.mrb[4].mxu1 }
 0x2fc   :  { %v510_v60 = vmul.f32 %v5463_v58, %v73_v55  ;;  %v500_v61 = vpop.f32.mrb[5].mxu1 }
 0x2fd   :  { %v509_v63 = vmul.f32 %v500_v61, %v72_v57  ;;  %v81_v57 = vld [vmem:[%s9227_s4 + $0x38] sm:$0xff] }
 0x2fe   :  { %v6964_v0 = vadd.f32 %v510_v60, %v427_v59  ;;  %v97_v59 = vld [vmem:[%s9228_s5 + $0x38] sm:$0xff]  ;;  %v552_v4 = vmul.f32 %v6944_v53, %v81_v57 }
 0x2ff   :  { %v6966_v1 = vadd.f32 %v509_v63, %v426_v62 }
 0x301   :  { %v887_v2 = vmul.f32 %v6966_v1, %v6966_v1 }
 0x303   :  { %v889_v3 = vsel %vm115_vm0, %v887_v2, 0.0 }
 0x304   :  { %890 = vadd.xlane.f32.xlu0 %v889_v3 }
 0x35c   :  { %v5482_v9 = vpop.f32.mrb[6].mxu0 }
 0x35d   :  { %v739_v12 = vmul.f32 %v5482_v9, %v91_v5  ;;  %v659_v13 = vpop.f32.mrb[7].mxu0  ;;  %v551_v9 = vmul.f32 %v6899_v38, %v80_v52 }
 0x35e   :  { %v738_v16 = vmul.f32 %v659_v13, %v90_v8 }
 0x35f   :  { %v6992_v19 = vadd.f32 %v739_v12, %v546_v11 }
 0x360   :  { %v6997_v6 = vadd.f32 %v738_v16, %v545_v14  ;;  %v5485_v21 = vpop.f32.mrb[8].mxu0 }
 0x361   :  { %v741_v23 = vmul.f32 %v5485_v21, %v93_v17  ;;  %v669_v10 = vpop.f32.mrb[9].mxu0  ;;  %v771_v24 = vmul.f32 %v6992_v19, %v6992_v19  ;;  %v894_v21 = vpop.xlane.xlu1 %893 }
 0x362   :  { %v740_v28 = vmul.f32 %v669_v10, %v92_v20  ;;  %v770_v39 = vmul.f32 %v6997_v6, %v6997_v6 }
 0x363   :  { %v7011_v33 = vadd.f32 %v741_v23, %v548_v22  ;;  %v789_v34 = vsel %vm115_vm0, %v771_v24, 0.0  ;;  %v896_v22 = vmax.f32 %v894_v21, 1e-24 }
 0x364   :  { %v7019_v47 = vadd.f32 %v740_v28, %v547_v25  ;;  %v5488_v49 = vpop.f32.mrb[10].mxu0  ;;  %790 = vadd.xlane.f32.xlu0 %v789_v34  ;;  %v786_v62 = vsel %vm115_vm0, %v770_v39, 0.0 }
 0x365   :  { %v743_v51 = vmul.f32 %v5488_v49, %v95_v30  ;;  %v679_v54 = vpop.f32.mrb[11].mxu0  ;;  %v773_v55 = vmul.f32 %v7011_v33, %v7011_v33  ;;  %6262 = vrsqrt.f32 %v896_v22 }
 0x366   :  { %v742_v58 = vmul.f32 %v679_v54, %v94_v36  ;;  %v772_v63 = vmul.f32 %v7019_v47, %v7019_v47 }
 0x367   :  { %v7033_v60 = vadd.f32 %v743_v51, %v550_v50  ;;  %v795_v61 = vsel %vm115_vm0, %v773_v55, 0.0 }
 0x368   :  { %v7042_v2 = vadd.f32 %v742_v58, %v549_v56  ;;  %796 = vadd.xlane.f32.xlu1 %v795_v61  ;;  %v5491_v3 = vpop.f32.mrb[12].mxu0  ;;  %787 = vadd.xlane.f32.xlu0 %v786_v62  ;;  %v792_v14 = vsel %vm115_vm0, %v772_v63, 0.0 }
 0x369   :  { %v745_v5 = vmul.f32 %v5491_v3, %v97_v59  ;;  %v689_v7 = vpop.f32.mrb[13].mxu0  ;;  %v775_v8 = vmul.f32 %v7033_v60, %v7033_v60 }
 0x36a   :  { %v744_v11 = vmul.f32 %v689_v7, %v96_v37  ;;  %v774_v15 = vmul.f32 %v7042_v2, %v7042_v2 }
 0x36b   :  { %v7048_v12 = vadd.f32 %v745_v5, %v552_v4  ;;  %v801_v13 = vsel %vm115_vm0, %v775_v8, 0.0 }
 0x36c   :  { %v7054_v16 = vadd.f32 %v744_v11, %v551_v9  ;;  %802 = vadd.xlane.f32.xlu1 %v801_v13  ;;  %793 = vadd.xlane.f32.xlu0 %v792_v14  ;;  %v798_v38 = vsel %vm115_vm0, %v774_v15, 0.0 }
 0x36d   :  { %v777_v53 = vmul.f32 %v7048_v12, %v7048_v12 }
 0x36e   :  { %v776_v18 = vmul.f32 %v7054_v16, %v7054_v16 }
 0x36f   :  { %v807_v17 = vsel %vm115_vm0, %v777_v53, 0.0  ;;  %v6263_v24 = vpop.eup %6262 }
 0x370   :  { %808 = vadd.xlane.f32.xlu1 %v807_v17  ;;  %799 = vadd.xlane.f32.xlu0 %v798_v38  ;;  %v804_v20 = vsel %vm115_vm0, %v776_v18, 0.0  ;;  %v900_v25 = vmul.f32 %v6263_v24, %v6930_v46 }
 0x372   :  { %v7073_v30 = vmul.f32 16.0, %v900_v25 }
 0x374   :  { %805 = vadd.xlane.f32.xlu0 %v804_v20  ;;  %v7130_v20 = vld [vmem:[%s9254_s25 + $0x8] sm:$0xff] }
 0x381   :  { %534 = vrot.lane.b32.xlu1 %v6911_v42, %s6597_s6 }
 0x385   :  { %538 = vrot.lane.b32.xlu1 %v6909_v41, %s6597_s6 }
 0x389   :  { %542 = vrot.lane.b32.xlu1 %v6913_v43, %s6597_s6 }
 0x38a   :  { %530 = vrot.lane.b32.xlu0 %v6907_v40, %s6597_s6 }
 0x391   :  { %v891_v23 = vpop.xlane.xlu0 %890 }
 0x392   :  { %v895_v10 = vmax.f32 %v891_v23, 1e-24 }
 0x394   :  { %6264 = vrsqrt.f32 %v895_v10 }
 0x39e   :  { %v6265_v27 = vpop.eup %6264 }
 0x39f   :  { %v899_v28 = vmul.f32 %v6265_v27, %v6966_v1 }
 0x3a1   :  { %v901_v31 = vmul.f32 16.0, %v899_v28  ;;  %v84_v28 = vld [vmem:[%s9227_s4 + $0x50] sm:$0xff] }
 0x3a3   :  { %v5809_v36 = vpack.c.bf16 %v7073_v30, %v901_v31 }
 0x3a5   :  { %5811 = vmatprep.subr.msk.bf16.mxu1 %vm7077_vm1, %v5809_v36 }
 0x3a6   :  { %5814 = vmatpush3.bf16.xpose.msk.msra.mxu1 %vm7077_vm1, %v5809_v36  ;;  %v7153_v36 = vld [vmem:[%s9254_s25 + $0x18] sm:$0xff] }
 0x3f1   :  { %v791_v46 = vpop.xlane.xlu0 %790 }
 0x3f2   :  { %v835_v39 = vmax.f32 %v791_v46, 1e-24 }
 0x3f4   :  { %6266 = vrsqrt.f32 %v835_v39 }
 0x3f5   :  { %v797_v1 = vpop.xlane.xlu1 %796  ;;  %v788_v49 = vpop.xlane.xlu0 %787 }
 0x3f6   :  { %v834_v50 = vmax.f32 %v788_v49, 1e-24  ;;  %v837_v51 = vmax.f32 %v797_v1, 1e-24 }
 0x3f8   :  { %6268 = vrsqrt.f32 %v834_v50 }
 0x3f9   :  { %v803_v54 = vpop.xlane.xlu1 %802  ;;  %v794_v55 = vpop.xlane.xlu0 %793  ;;  %6270 = vrsqrt.f32 %v837_v51 }
 0x3fa   :  { %v836_v56 = vmax.f32 %v794_v55, 1e-24  ;;  %v839_v57 = vmax.f32 %v803_v54, 1e-24  ;;  %v555_v54 = vmul.f32 %v6911_v42, %v84_v28 }
 0x3fc   :  { %6272 = vrsqrt.f32 %v836_v56 }
 0x3fd   :  { %v809_v58 = vpop.xlane.xlu1 %808  ;;  %v800_v59 = vpop.xlane.xlu0 %799  ;;  %6274 = vrsqrt.f32 %v839_v57 }
 0x3fe   :  { %v838_v52 = vmax.f32 %v800_v59, 1e-24  ;;  %v841_v61 = vmax.f32 %v809_v58, 1e-24  ;;  %v6267_v37 = vpop.eup %6266  ;;  %v7171_v58 = vld [vmem:[%s9254_s25 + $0x10] sm:$0xff]  ;;  %v86_v59 = vld [vmem:[%s9227_s4 + $0x60] sm:$0xff] }
 0x3ff   :  { %v867_v8 = vmul.f32 %v6267_v37, %v6992_v19 }
 0x400   :  { %6276 = vrsqrt.f32 %v838_v52  ;;  %v7179_v52 = vld [vmem:[%s9254_s25 + $0x28] sm:$0xff] }
 0x401   :  { %v806_v62 = vpop.xlane.xlu0 %805  ;;  %6278 = vrsqrt.f32 %v841_v61  ;;  %v7087_v5 = vpop.permute.xlu1 %534 }
 0x402   :  { %v840_v63 = vmax.f32 %v806_v62, 1e-24  ;;  %v6269_v3 = vpop.eup %6268 }
 0x403   :  { %v866_v4 = vmul.f32 %v6269_v3, %v6997_v6  ;;  %v6271_v9 = vpop.eup %6270 }
 0x404   :  { %6280 = vrsqrt.f32 %v840_v63  ;;  %v869_v13 = vmul.f32 %v6271_v9, %v7011_v33  ;;  %v99_v63 = vld [vmem:[%s9228_s5 + $0x48] sm:$0xff]  ;;  %v557_v9 = vmul.f32 %v6909_v41, %v86_v59 }
 0x405   :  { %v7089_v7 = vpop.permute.xlu0 %530  ;;  %5508 = vmatprep.mubr.msk.f32.mxu1 %vm115_vm0, %v866_v4  ;;  %v7103_v15 = vpop.permute.xlu1 %538 }
 0x406   :  { %5493 = vmatmul.mubr.msk.f32.gmra.mrb[14].mxu0 %vm115_vm0, %v7089_v7  ;;  %v6273_v11 = vpop.eup %6272  ;;  %5509 = vmatmul.mubr.msk.f32.vlgmr.msra.gmra.mrb[6].mxu1 %vm115_vm0, %v867_v8 }
 0x407   :  { %5495 = vmatprep.mubr.msk.f32.mxu0 %vm115_vm0, %v6911_v42  ;;  %v868_v6 = vmul.f32 %v6273_v11, %v7019_v47  ;;  %v6275_v14 = vpop.eup %6274  ;;  %v102_v42 = vld [vmem:[%s9228_s5 + $0x60] sm:$0xff]  ;;  %v88_v11 = vld [vmem:[%s9227_s4 + $0x70] sm:$0xff] }
 0x408   :  { %v871_v47 = vmul.f32 %v6275_v14, %v7033_v60  ;;  %v82_v60 = vld [vmem:[%s9227_s4 + $0x40] sm:$0xff] }
 0x409   :  { %5511 = vmatprep.mubr.msk.f32.mxu1 %vm115_vm0, %v868_v6  ;;  %v7117_v18 = vpop.permute.xlu1 %542  ;;  %v553_v10 = vmul.f32 %v6907_v40, %v82_v60  ;;  %v100_v40 = vld [vmem:[%s9228_s5 + $0x50] sm:$0xff] }
 0x40a   :  { %5496 = vmatmul.mubr.msk.f32.gmra.mrb[16].mxu0 %vm115_vm0, %v7087_v5  ;;  %v6277_v19 = vpop.eup %6276  ;;  %5512 = vmatmul.mubr.msk.f32.gmra.mrb[8].mxu1 %vm115_vm0, %v869_v13 }
 0x40b   :  { %5498 = vmatprep.mubr.msk.f32.mxu0 %vm115_vm0, %v6909_v41  ;;  %v870_v53 = vmul.f32 %v6277_v19, %v7042_v2  ;;  %v6279_v17 = vpop.eup %6278  ;;  %v7206_v19 = vld [vmem:[%s9254_s25 + $0x20] sm:$0xff]  ;;  %v7214_v41 = vld [vmem:[%s9254_s25 + $0x38] sm:$0xff] }
 0x40c   :  { %v873_v2 = vmul.f32 %v6279_v17, %v7048_v12  ;;  %v7138_v12 = vld [vmem:[%s9254_s25] sm:$0xff]  ;;  %v104_v17 = vld [vmem:[%s9228_s5 + $0x70] sm:$0xff] }
 0x40d   :  { %5514 = vmatprep.mubr.msk.f32.mxu1 %vm115_vm0, %v870_v53  ;;  %v83_v53 = vld [vmem:[%s9227_s4 + $0x48] sm:$0xff] }
 0x40e   :  { %v6281_v33 = vpop.eup %6280  ;;  %5499 = vmatmul.mubr.msk.f32.gmra.mrb[18].mxu0 %vm115_vm0, %v7103_v15  ;;  %5515 = vmatmul.mubr.msk.f32.gmra.mrb[10].mxu1 %vm115_vm0, %v871_v47 }
 0x40f   :  { %5501 = vmatprep.mubr.msk.f32.mxu0 %vm115_vm0, %v6913_v43  ;;  %v872_v38 = vmul.f32 %v6281_v33, %v7054_v16  ;;  %v98_v16 = vld [vmem:[%s9228_s5 + $0x40] sm:$0xff] }
 0x411   :  { %5517 = vmatprep.mubr.msk.f32.mxu1 %vm115_vm0, %v872_v38 }
 0x412   :  { %5502 = vmatmul.mubr.msk.f32.gmra.mrb[20].mxu0 %vm115_vm0, %v7117_v18  ;;  %5518 = vmatmul.mubr.msk.f32.gmra.mrb[12].mxu1 %vm115_vm0, %v873_v2 }
 0x4d9   :  { %v5494_v21 = vpop.f32.mrb[14].mxu0  ;;  %v5510_v22 = vpop.f32.mrb[6].mxu1 }
 0x4da   :  { %v699_v23 = vpop.f32.mrb[15].mxu0  ;;  %v7142_v24 = vadd.f32 %v5510_v22, %v7130_v20  ;;  %v999_v27 = vpop.f32.mrb[7].mxu1  ;;  %v747_v47 = vmul.f32 %v5494_v21, %v99_v63 }
 0x4db   :  { %v746_v25 = vmul.f32 %v699_v23, %v98_v16  ;;  %v7148_v31 = vadd.f32 %v999_v27, %v7138_v12 }
 0x4dc   :  { %v1042_v39 = vsel %vm1038_vm2, %v7142_v24, -inf }
 0x4dd   :  { %v7158_v46 = vadd.f32 %v746_v25, %v553_v10  ;;  %v5497_v1 = vpop.f32.mrb[16].mxu0  ;;  %1043 = vmax.xlane.f32.xlu1 %v1042_v39  ;;  %v5513_v49 = vpop.f32.mrb[8].mxu1  ;;  %v1039_v50 = vsel %vm1038_vm2, %v7148_v31, -inf  ;;  %v559_v10 = vmul.f32 %v6913_v43, %v88_v11  ;;  %v554_v25 = vmul.f32 %v7089_v7, %v83_v53  ;;  %v883_v53 = vld [vmem:[%s9233_s10] sm:$0xff] }
 0x4de   :  { %v709_v51 = vpop.f32.mrb[17].mxu0  ;;  %v7166_v55 = vadd.f32 %v5513_v49, %v7153_v36  ;;  %1040 = vmax.xlane.f32.xlu0 %v1039_v50  ;;  %v1009_v57 = vpop.f32.mrb[9].mxu1  ;;  %v101_v50 = vld [vmem:[%s9228_s5 + $0x58] sm:$0xff] }
 0x4df   :  { %v748_v56 = vmul.f32 %v709_v51, %v100_v40  ;;  %v7194_v3 = vadd.f32 %v1009_v57, %v7171_v58  ;;  %v7236_v40 = vld [vmem:[%s9254_s25 + $0x30] sm:$0xff]  ;;  %v7238_v39 = vadd.f32 %v747_v47, %v554_v25  ;;  %v778_v7 = vmul.f32 %v7158_v46, %v7158_v46  ;;  %v87_v47 = vld [vmem:[%s9227_s4 + $0x68] sm:$0xff]  ;;  %v89_v25 = vld [vmem:[%s9227_s4 + $0x78] sm:$0xff] }
 0x4e0   :  { %v1048_v37 = vsel %vm1038_vm2, %v7166_v55, -inf  ;;  %v749_v57 = vmul.f32 %v5497_v1, %v101_v50 }
 0x4e1   :  { %v7184_v61 = vadd.f32 %v748_v56, %v555_v54  ;;  %v7186_v62 = vpop.f32.mrb[18].mxu0  ;;  %v5516_v4 = vpop.f32.mrb[10].mxu1  ;;  %v1045_v22 = vsel %vm1038_vm2, %v7194_v3, -inf  ;;  %v85_v56 = vld [vmem:[%s9227_s4 + $0x58] sm:$0xff]  ;;  %v810_v59 = vsel %vm115_vm0, %v778_v7, 0.0 }
 0x4e2   :  { %v719_v8 = vpop.f32.mrb[19].mxu0  ;;  %v7201_v6 = vadd.f32 %v5516_v4, %v7179_v52  ;;  %1049 = vmax.xlane.f32.xlu0 %v1048_v37  ;;  %v1019_v14 = vpop.f32.mrb[11].mxu1  ;;  %v556_v63 = vmul.f32 %v7087_v5, %v85_v56 }
 0x4e3   :  { %v750_v13 = vmul.f32 %v719_v8, %v102_v42  ;;  %v7224_v60 = vadd.f32 %v1019_v14, %v7206_v19  ;;  %v779_v42 = vmul.f32 %v7238_v39, %v7238_v39 }
 0x4e4   :  { %v1054_v38 = vsel %vm1038_vm2, %v7201_v6, -inf  ;;  %v7263_v4 = vadd.f32 %v749_v57, %v556_v63 }
 0x4e5   :  { %v7219_v33 = vadd.f32 %v750_v13, %v557_v9  ;;  %v5503_v2 = vpop.f32.mrb[20].mxu0  ;;  %1055 = vmax.xlane.f32.xlu1 %v1054_v38  ;;  %v5519_v16 = vpop.f32.mrb[12].mxu1  ;;  %v1051_v54 = vsel %vm1038_vm2, %v7224_v60, -inf  ;;  %v813_v8 = vsel %vm115_vm0, %v779_v42, 0.0  ;;  %v780_v9 = vmul.f32 %v7184_v61, %v7184_v61 }
 0x4e6   :  { %v729_v23 = vpop.f32.mrb[21].mxu0  ;;  %v7231_v21 = vadd.f32 %v5519_v16, %v7214_v41  ;;  %1046 = vmax.xlane.f32.xlu0 %v1045_v22  ;;  %v1029_v28 = vpop.f32.mrb[13].mxu1  ;;  %v781_v11 = vmul.f32 %v7263_v4, %v7263_v4  ;;  %v558_v16 = vmul.f32 %v7103_v15, %v87_v47  ;;  %v560_v15 = vmul.f32 %v7117_v18, %v89_v25 }
 0x4e7   :  { %v752_v27 = vmul.f32 %v729_v23, %v104_v17  ;;  %v7250_v51 = vadd.f32 %v1029_v28, %v7236_v40  ;;  %v816_v1 = vsel %vm115_vm0, %v780_v9, 0.0  ;;  %v782_v5 = vmul.f32 %v7219_v33, %v7219_v33  ;;  %v103_v17 = vld [vmem:[%s9228_s5 + $0x68] sm:$0xff] }
 0x4e8   :  { %v1060_v43 = vsel %vm1038_vm2, %v7231_v21, -inf  ;;  %v819_v13 = vsel %vm115_vm0, %v781_v11, 0.0  ;;  %v751_v38 = vmul.f32 %v7186_v62, %v103_v17  ;;  %v1306_v23 = vmul.f32 %v6964_v0, %v6964_v0 }
 0x4e9   :  { %v7240_v49 = vadd.f32 %v752_v27, %v559_v10  ;;  %1061 = vmax.xlane.f32.xlu1 %v1060_v43  ;;  %v1057_v37 = vsel %vm1038_vm2, %v7250_v51, -inf  ;;  %v822_v14 = vsel %vm115_vm0, %v782_v5, 0.0  ;;  %v105_v10 = vld [vmem:[%s9228_s5 + $0x78] sm:$0xff] }
 0x4ea   :  { %1052 = vmax.xlane.f32.xlu0 %v1051_v54  ;;  %v7287_v22 = vadd.f32 %v751_v38, %v558_v16  ;;  %v753_v27 = vmul.f32 %v5503_v2, %v105_v10  ;;  %v1307_v28 = vsel %vm115_vm0, %v1306_v23, 0.0 }
 0x4eb   :  { %v784_v50 = vmul.f32 %v7240_v49, %v7240_v49 }
 0x4ec   :  { %v783_v62 = vmul.f32 %v7287_v22, %v7287_v22  ;;  %v7301_v43 = vadd.f32 %v753_v27, %v560_v15 }
 0x4ed   :  { %811 = vadd.xlane.f32.xlu1 %v810_v59  ;;  %v828_v54 = vsel %vm115_vm0, %v784_v50, 0.0 }
 0x4ee   :  { %1058 = vmax.xlane.f32.xlu0 %v1057_v37  ;;  %v825_v7 = vsel %vm115_vm0, %v783_v62, 0.0  ;;  %v785_v2 = vmul.f32 %v7301_v43, %v7301_v43 }
 0x4f0   :  { %v831_v56 = vsel %vm115_vm0, %v785_v2, 0.0 }
 0x4f1   :  { %814 = vadd.xlane.f32.xlu1 %v813_v8 }
 0x4f5   :  { %817 = vadd.xlane.f32.xlu1 %v816_v1 }
 0x4f9   :  { %820 = vadd.xlane.f32.xlu1 %v819_v13 }
 0x4fd   :  { %823 = vadd.xlane.f32.xlu1 %v822_v14 }
 0x504   :  { %885 = vrot.lane.b32.xlu0 %v883_v53, %s6597_s6 }
 0x523   :  { %1308 = vadd.xlane.f32.xlu0 %v1307_v28 }
 0x527   :  { %826 = vadd.xlane.f32.xlu0 %v825_v7 }
 0x52b   :  { %829 = vadd.xlane.f32.xlu0 %v828_v54 }
 0x52f   :  { %832 = vadd.xlane.f32.xlu0 %v831_v56 }
 0x56a   :  { %v1044_v57 = vpop.xlane.xlu1 %1043 }
 0x56b   :  { %v1064_v18 = vsub.f32 %v7142_v24, %v1044_v57  ;;  %v1041_v59 = vpop.xlane.xlu0 %1040 }
 0x56c   :  { %v1063_v42 = vsub.f32 %v7148_v31, %v1041_v59 }
 0x56d   :  { %v1073_v37 = vmul.f32 1.442695, %v1064_v18 }
 0x56e   :  { %v1071_v63 = vmul.f32 1.442695, %v1063_v42 }
 0x56f   :  { %6282 = vpow2.f32 %v1073_v37  ;;  %v1050_v8 = vpop.xlane.xlu0 %1049 }
 0x570   :  { %v1066_v9 = vsub.f32 %v7166_v55, %v1050_v8  ;;  %6284 = vpow2.f32 %v1071_v63 }
 0x572   :  { %v1077_v1 = vmul.f32 1.442695, %v1066_v9  ;;  %v1056_v11 = vpop.xlane.xlu1 %1055 }
 0x573   :  { %v1047_v13 = vpop.xlane.xlu0 %1046  ;;  %v1068_v14 = vsub.f32 %v7201_v6, %v1056_v11 }
 0x574   :  { %v1065_v5 = vsub.f32 %v7194_v3, %v1047_v13  ;;  %6286 = vpow2.f32 %v1077_v1 }
 0x575   :  { %v1081_v31 = vmul.f32 1.442695, %v1068_v14 }
 0x576   :  { %v1075_v53 = vmul.f32 1.442695, %v1065_v5  ;;  %v1062_v38 = vpop.xlane.xlu1 %1061 }
 0x577   :  { %v1053_v24 = vpop.xlane.xlu0 %1052  ;;  %v1070_v3 = vsub.f32 %v7231_v21, %v1062_v38 }
 0x578   :  { %6288 = vpow2.f32 %v1075_v53  ;;  %v1067_v47 = vsub.f32 %v7224_v60, %v1053_v24 }
 0x579   :  { %v7315_v17 = vpop.eup %6282  ;;  %6290 = vpow2.f32 %v1081_v31  ;;  %v1085_v27 = vmul.f32 1.442695, %v1070_v3 }
 0x57a   :  { %v1090_v55 = vsel %vm1038_vm2, %v7315_v17, 0.0  ;;  %v6285_v16 = vpop.eup %6284  ;;  %v1079_v23 = vmul.f32 1.442695, %v1067_v47  ;;  %v812_v37 = vpop.xlane.xlu1 %811 }
 0x57b   :  { %1091 = vadd.xlane.f32.xlu1 %v1090_v55  ;;  %v1059_v10 = vpop.xlane.xlu0 %1058  ;;  %v1087_v6 = vsel %vm1038_vm2, %v6285_v16, 0.0 }
 0x57c   :  { %6292 = vpow2.f32 %v1079_v23  ;;  %v1069_v60 = vsub.f32 %v7250_v51, %v1059_v10 }
 0x57d   :  { %6294 = vpow2.f32 %v1085_v27 }
 0x57e   :  { %v7322_v25 = vpop.eup %6286  ;;  %v1083_v15 = vmul.f32 1.442695, %v1069_v60  ;;  %v7349_v63 = vpop.xlane.xlu1 %814 }
 0x57f   :  { %1088 = vadd.xlane.f32.xlu1 %v1087_v6  ;;  %v1096_v28 = vsel %vm1038_vm2, %v7322_v25, 0.0  ;;  %v886_v59 = vpop.permute.xlu0 %885 }
 0x580   :  { %6296 = vpow2.f32 %v1083_v15  ;;  %v6208_v42 = vpack.i.bf16 %v886_v59, %v6921_v45 }
 0x582   :  { %v7327_v62 = vpop.eup %6288  ;;  %v7351_v8 = vpop.xlane.xlu1 %817 }
 0x583   :  { %1097 = vadd.xlane.f32.xlu1 %v1096_v28  ;;  %v1093_v21 = vsel %vm1038_vm2, %v7327_v62, 0.0  ;;  %v7331_v7 = vpop.eup %6290  ;;  %v844_v48 = vmax.f32 %v7351_v8, 1e-24 }
 0x584   :  { %v1102_v50 = vsel %vm1038_vm2, %v7331_v7, 0.0 }
 0x586   :  { %v7335_v54 = vpop.eup %6292  ;;  %v7353_v9 = vpop.xlane.xlu1 %820 }
 0x587   :  { %1094 = vadd.xlane.f32.xlu1 %v1093_v21  ;;  %v1099_v51 = vsel %vm1038_vm2, %v7335_v54, 0.0  ;;  %v7339_v2 = vpop.eup %6294 }
 0x588   :  { %v1108_v56 = vsel %vm1038_vm2, %v7339_v2, 0.0 }
 0x58a   :  { %v7343_v57 = vpop.eup %6296  ;;  %v7355_v1 = vpop.xlane.xlu1 %823 }
 0x58b   :  { %1103 = vadd.xlane.f32.xlu1 %v1102_v50  ;;  %v1105_v18 = vsel %vm1038_vm2, %v7343_v57, 0.0 }
 0x58f   :  { %1100 = vadd.xlane.f32.xlu1 %v1099_v51 }
 0x593   :  { %1109 = vadd.xlane.f32.xlu1 %v1108_v56 }
 0x597   :  { %1106 = vadd.xlane.f32.xlu1 %v1105_v18 }
 0x5a8   :  { %6209 = vrot.lane.b32.xlu1 %v6208_v42, %s6597_s6 }
 0x5b0   :  { %v1309_v14 = vpop.xlane.xlu0 %1308 }
 0x5b1   :  { %v1310_v53 = vmax.f32 %v1309_v14, 1e-24 }
 0x608   :  { %v1092_v11 = vpop.xlane.xlu1 %1091 }
 0x60c   :  { %v1089_v13 = vpop.xlane.xlu1 %1088 }
 0x60d   :  { %6298 = vrcp.f32 %v1089_v13 }
 0x60e   :  { %6300 = vrcp.f32 %v1092_v11 }
 0x610   :  { %v1098_v5 = vpop.xlane.xlu1 %1097 }
 0x614   :  { %v1095_v24 = vpop.xlane.xlu1 %1094 }
 0x615   :  { %6302 = vrcp.f32 %v1095_v24 }
 0x616   :  { %6304 = vrsqrt.f32 %v1310_v53 }
 0x617   :  { %v6299_v45 = vpop.eup %6298  ;;  %6306 = vrcp.f32 %v1098_v5 }
 0x618   :  { %v1119_v31 = vmul.f32 %v6299_v45, %v1089_v13  ;;  %v1104_v47 = vpop.xlane.xlu1 %1103  ;;  %v6301_v10 = vpop.eup %6300 }
 0x619   :  { %v1120_v28 = vmul.f32 %v6301_v10, %v1092_v11  ;;  %v842_v11 = vmax.f32 %v812_v37, 1e-24 }
 0x61a   :  { %v1127_v38 = vsub.f32 2.0, %v1119_v31 }
 0x61b   :  { %v1128_v18 = vsub.f32 2.0, %v1120_v28 }
 0x61c   :  { %v1135_v55 = vmul.f32 %v6299_v45, %v1127_v38  ;;  %v1101_v3 = vpop.xlane.xlu1 %1100  ;;  %v827_v38 = vpop.xlane.xlu0 %826 }
 0x61d   :  { %6308 = vrcp.f32 %v1101_v3 }
 0x61e   :  { %6310 = vrcp.f32 %v1104_v47  ;;  %v1143_v23 = vmul.f32 %v6285_v16, %v1135_v55 }
 0x61f   :  { %v6303_v27 = vpop.eup %6302 }
 0x620   :  { %5524 = vmatprep.mubr.msk.f32.mxu1 %vm1038_vm2, %v1143_v23  ;;  %v1110_v6 = vpop.xlane.xlu1 %1109  ;;  %v6305_v60 = vpop.eup %6304  ;;  %v1121_v21 = vmul.f32 %v6303_v27, %v1095_v24  ;;  %v1136_v24 = vmul.f32 %v6301_v10, %v1128_v18 }
 0x621   :  { %6312 = vrcp.f32 %v1110_v6  ;;  %v6307_v15 = vpop.eup %6306  ;;  %v1312_v51 = vmul.f32 %v6305_v60, %v6964_v0 }
 0x622   :  { %v1122_v59 = vmul.f32 %v6307_v15, %v1098_v5  ;;  %v1129_v13 = vsub.f32 2.0, %v1121_v21  ;;  %v1144_v10 = vmul.f32 %v7315_v17, %v1136_v24  ;;  %v846_v17 = vmax.f32 %v7355_v1, 1e-24 }
 0x623   :  { %v1313_v31 = vmul.f32 16.0, %v1312_v51 }
 0x624   :  { %v1107_v50 = vpop.xlane.xlu1 %1106  ;;  %v1130_v55 = vsub.f32 2.0, %v1122_v59  ;;  %v1137_v5 = vmul.f32 %v6303_v27, %v1129_v13  ;;  %v830_v13 = vpop.xlane.xlu0 %829 }
 0x625   :  { %6314 = vrcp.f32 %v1107_v50  ;;  %v5819_v21 = vpack.c.bf16 %v7073_v30, %v1313_v31  ;;  %v845_v30 = vmax.f32 %v7353_v9, 1e-24 }
 0x626   :  { %6316 = vrsqrt.f32 %v842_v11  ;;  %v1138_v51 = vmul.f32 %v6307_v15, %v1130_v55 }
 0x627   :  { %v6309_v56 = vpop.eup %6308 }
 0x628   :  { %v6311_v42 = vpop.eup %6310  ;;  %v1123_v16 = vmul.f32 %v6309_v56, %v1101_v3  ;;  %v7359_v14 = vpop.permute.xlu1 %6209  ;;  %v843_v3 = vmax.f32 %v7349_v63, 1e-24  ;;  %v1145_v63 = vmul.f32 %v7327_v62, %v1137_v5  ;;  %v847_v62 = vmax.f32 %v827_v38, 1e-24 }
 0x629   :  { %v6212_v53 = vunpack.i.h.bf16 %v7359_v14  ;;  %v6211_v45 = vunpack.i.l.bf16 %v7359_v14  ;;  %v1124_v23 = vmul.f32 %v6311_v42, %v1104_v47  ;;  %v833_v9 = vpop.xlane.xlu0 %832 }
 0x62a   :  { %v1131_v28 = vsub.f32 2.0, %v1123_v16  ;;  %6318 = vrsqrt.f32 %v843_v3  ;;  %v1146_v16 = vmul.f32 %v7322_v25, %v1138_v51 }
 0x62b   :  { %v5815_v0 = vpack.c.bf16 %v6212_v53, %v6211_v45  ;;  %v6313_v60 = vpop.eup %6312  ;;  %v1132_v47 = vsub.f32 2.0, %v1124_v23  ;;  %6320 = vrsqrt.f32 %v844_v48  ;;  %v848_v48 = vmax.f32 %v830_v13, 1e-24 }
 0x62c   :  { %v1126_v18 = vmul.f32 %v6313_v60, %v1110_v6  ;;  %v1139_v27 = vmul.f32 %v6309_v56, %v1131_v28  ;;  %6322 = vrsqrt.f32 %v845_v30 }
 0x62d   :  { %5816 = vmatprep.subr.bf16.mxu1 %v5815_v0  ;;  %v1140_v6 = vmul.f32 %v6311_v42, %v1132_v47  ;;  %6324 = vrsqrt.f32 %v846_v17 }
 0x62e   :  { %5818 = vmatpush3.bf16.msra.mxu1 %v5815_v0  ;;  %v1134_v15 = vsub.f32 2.0, %v1126_v18  ;;  %6326 = vrsqrt.f32 %v847_v62 }
 0x62f   :  { %v6315_v37 = vpop.eup %6314  ;;  %5821 = vmatprep.subr.msk.bf16.mxu1 %vm7077_vm1, %v5819_v21  ;;  %v1148_v1 = vmul.f32 %v7331_v7, %v1140_v6  ;;  %6328 = vrsqrt.f32 %v848_v48 }
 0x630   :  { %v1125_v59 = vmul.f32 %v6315_v37, %v1107_v50  ;;  %v1147_v50 = vmul.f32 %v7335_v54, %v1139_v27  ;;  %v1142_v45 = vmul.f32 %v6313_v60, %v1134_v15  ;;  %v6317_v42 = vpop.eup %6316  ;;  %v849_v54 = vmax.f32 %v833_v9, 1e-24 }
 0x631   :  { %5525 = vmatmul.mubr.msk.f32.vlgmr.msra.gmra.mrb[14].mxu1 %vm1038_vm2, %v1144_v10  ;;  %v874_v24 = vmul.f32 %v6317_v42, %v7158_v46 }
 0x632   :  { %v1133_v8 = vsub.f32 2.0, %v1125_v59  ;;  %5527 = vmatprep.mubr.msk.f32.mxu1 %vm1038_vm2, %v1145_v63  ;;  %v1150_v11 = vmul.f32 %v7339_v2, %v1142_v45  ;;  %6330 = vrsqrt.f32 %v849_v54 }
 0x634   :  { %v1141_v56 = vmul.f32 %v6315_v37, %v1133_v8  ;;  %v6319_v31 = vpop.eup %6318 }
 0x635   :  { %5528 = vmatmul.mubr.msk.f32.gmra.mrb[16].mxu1 %vm1038_vm2, %v1146_v16  ;;  %v6321_v38 = vpop.eup %6320  ;;  %v875_v7 = vmul.f32 %v6319_v31, %v7238_v39 }
 0x636   :  { %5530 = vmatprep.mubr.msk.f32.mxu1 %vm1038_vm2, %v1147_v50  ;;  %v1149_v25 = vmul.f32 %v7343_v57, %v1141_v56  ;;  %v6323_v57 = vpop.eup %6322  ;;  %v876_v55 = vmul.f32 %v6321_v38, %v7184_v61 }
 0x637   :  { %5824 = vmatpush3.bf16.xpose.msk.msra.mxu1 %vm7077_vm1, %v5819_v21  ;;  %v6325_v23 = vpop.eup %6324  ;;  %v877_v2 = vmul.f32 %v6323_v57, %v7263_v4 }
 0x638   :  { %v6327_v0 = vpop.eup %6326  ;;  %v878_v46 = vmul.f32 %v6325_v23, %v7219_v33 }
 0x639   :  { %5531 = vmatmul.mubr.msk.f32.gmra.mrb[18].mxu1 %vm1038_vm2, %v1148_v1  ;;  %v6329_v60 = vpop.eup %6328  ;;  %v879_v39 = vmul.f32 %v6327_v0, %v7287_v22 }
 0x63a   :  { %5533 = vmatprep.mubr.msk.f32.mxu1 %vm1038_vm2, %v1149_v25  ;;  %v880_v61 = vmul.f32 %v6329_v60, %v7240_v49 }
 0x63c   :  { %v6331_v5 = vpop.eup %6330 }
 0x63d   :  { %5534 = vmatmul.mubr.msk.f32.gmra.mrb[20].mxu1 %vm1038_vm2, %v1150_v11  ;;  %v881_v28 = vmul.f32 %v6331_v5, %v7301_v43 }
 0x63e   :  { %5540 = vmatprep.mubr.msk.f32.mxu1 %vm115_vm0, %v874_v24 }
 0x641   :  { %5541 = vmatmul.mubr.msk.f32.vlgmr.msra.gmra.mrb[22].mxu1 %vm115_vm0, %v875_v7 }
 0x642   :  { %5543 = vmatprep.mubr.msk.f32.mxu1 %vm115_vm0, %v876_v55 }
 0x645   :  { %5544 = vmatmul.mubr.msk.f32.gmra.mrb[24].mxu1 %vm115_vm0, %v877_v2 }
 0x646   :  { %5546 = vmatprep.mubr.msk.f32.mxu1 %vm115_vm0, %v878_v46 }
 0x649   :  { %5547 = vmatmul.mubr.msk.f32.gmra.mrb[26].mxu1 %vm115_vm0, %v879_v39 }
 0x64a   :  { %5549 = vmatprep.mubr.msk.f32.mxu1 %vm115_vm0, %v880_v61 }
 0x64d   :  { %5550 = vmatmul.mubr.msk.f32.gmra.mrb[28].mxu1 %vm115_vm0, %v881_v28 }
 0x704   :  { %v7404_v4 = vpop.f32.mrb[14].mxu1 }
 0x705   :  { %v7406_v33 = vpop.f32.mrb[15].mxu1 }
 0x708   :  { %v7408_v3 = vpop.f32.mrb[16].mxu1 }
 0x709   :  { %v7410_v21 = vpop.f32.mrb[17].mxu1 }
 0x70c   :  { %v7412_v22 = vpop.f32.mrb[18].mxu1 }
 0x70d   :  { %v6218_v49 = vpack.i.bf16 %v7412_v22, %v7404_v4  ;;  %v7416_v37 = vpop.f32.mrb[19].mxu1 }
 0x710   :  { %v7418_v10 = vpop.f32.mrb[20].mxu1 }
 0x711   :  { %v6213_v43 = vpack.i.bf16 %v7418_v10, %v7408_v3  ;;  %v7422_v51 = vpop.f32.mrb[21].mxu1 }
 0x714   :  { %v5542_v47 = vpop.f32.mrb[22].mxu1 }
 0x715   :  { %v1413_v18 = vadd.f32 %v5542_v47, %v7130_v20  ;;  %v1407_v27 = vpop.f32.mrb[23].mxu1 }
 0x716   :  { %v1408_v59 = vadd.f32 %v1407_v27, %v7138_v12 }
 0x717   :  { %v1449_v63 = vsel %vm1038_vm2, %v1413_v18, -inf }
 0x718   :  { %1450 = vmax.xlane.f32.xlu0 %v1449_v63  ;;  %v5545_v13 = vpop.f32.mrb[24].mxu1  ;;  %v1446_v6 = vsel %vm1038_vm2, %v1408_v59, -inf }
 0x719   :  { %v1417_v30 = vpop.f32.mrb[25].mxu1  ;;  %v1423_v17 = vadd.f32 %v5545_v13, %v7153_v36 }
 0x71a   :  { %v1418_v8 = vadd.f32 %v1417_v30, %v7171_v58 }
 0x71b   :  { %v1455_v12 = vsel %vm1038_vm2, %v1423_v17, -inf }
 0x71c   :  { %1447 = vmax.xlane.f32.xlu0 %v1446_v6  ;;  %v5548_v15 = vpop.f32.mrb[26].mxu1  ;;  %v1452_v16 = vsel %vm1038_vm2, %v1418_v8, -inf }
 0x71d   :  { %1453 = vmax.xlane.f32.xlu1 %v1452_v16  ;;  %v1427_v20 = vpop.f32.mrb[27].mxu1  ;;  %v1433_v56 = vadd.f32 %v5548_v15, %v7179_v52  ;;  %v1726_v15 = vld [vmem:[%s9234_s11 + $0x80] sm:$0xff]  ;;  %v1727_v16 = vld [vmem:[%s9234_s11 + $0x88] sm:$0xff] }
 0x71e   :  { %v1428_v48 = vadd.f32 %v1427_v20, %v7206_v19 }
 0x71f   :  { %v1461_v58 = vsel %vm1038_vm2, %v1433_v56, -inf }
 0x720   :  { %1456 = vmax.xlane.f32.xlu0 %v1455_v12  ;;  %v5551_v50 = vpop.f32.mrb[28].mxu1  ;;  %v1458_v9 = vsel %vm1038_vm2, %v1428_v48, -inf  ;;  %v1710_v12 = vld [vmem:[%s9234_s11] sm:$0xff] }
 0x721   :  { %v1437_v62 = vpop.f32.mrb[29].mxu1  ;;  %v1443_v45 = vadd.f32 %v5551_v50, %v7214_v41  ;;  %v1711_v50 = vld [vmem:[%s9234_s11 + $0x8] sm:$0xff] }
 0x722   :  { %v1438_v36 = vadd.f32 %v1437_v62, %v7236_v40  ;;  %v5831_v62 = vpack.c.bf16 %v1711_v50, %v1710_v12  ;;  %v1739_v12 = vld [vmem:[%s9234_s11 + $0xe8] sm:$0xff] }
 0x723   :  { %v1467_v52 = vsel %vm1038_vm2, %v1443_v45, -inf }
 0x724   :  { %1462 = vmax.xlane.f32.xlu0 %v1461_v58  ;;  %v1464_v1 = vsel %vm1038_vm2, %v1438_v36, -inf }
 0x728   :  { %1459 = vmax.xlane.f32.xlu0 %v1458_v9  ;;  %v1728_v9 = vld [vmem:[%s9234_s11 + $0x90] sm:$0xff] }
 0x72c   :  { %1465 = vmax.xlane.f32.xlu0 %v1464_v1 }
 0x730   :  { %1468 = vmax.xlane.f32.xlu0 %v1467_v52  ;;  %v1712_v52 = vld [vmem:[%s9234_s11 + $0x10] sm:$0xff] }
 0x7a5   :  { %v1451_v42 = vpop.xlane.xlu0 %1450 }
 0x7a6   :  { %v1471_v25 = vsub.f32 %v1413_v18, %v1451_v42  ;;  %v1713_v42 = vld [vmem:[%s9234_s11 + $0x18] sm:$0xff] }
 0x7a8   :  { %v1480_v54 = vmul.f32 1.442695, %v1471_v25  ;;  %v5835_v25 = vpack.c.bf16 %v1713_v42, %v1712_v52  ;;  %v1725_v52 = vld [vmem:[%s9234_s11 + $0x78] sm:$0xff] }
 0x7a9   :  { %v1448_v19 = vpop.xlane.xlu0 %1447 }
 0x7aa   :  { %6332 = vpow2.f32 %v1480_v54  ;;  %v1470_v31 = vsub.f32 %v1408_v59, %v1448_v19  ;;  %v1454_v11 = vpop.xlane.xlu1 %1453 }
 0x7ab   :  { %v1472_v38 = vsub.f32 %v1418_v8, %v1454_v11  ;;  %v1731_v11 = vld [vmem:[%s9234_s11 + $0xa8] sm:$0xff] }
 0x7ac   :  { %v1478_v40 = vmul.f32 1.442695, %v1470_v31  ;;  %v1730_v31 = vld [vmem:[%s9234_s11 + $0xa0] sm:$0xff] }
 0x7ad   :  { %v1482_v24 = vmul.f32 1.442695, %v1472_v38  ;;  %v1457_v7 = vpop.xlane.xlu0 %1456  ;;  %v5837_v38 = vpack.c.bf16 %v1731_v11, %v1730_v31 }
 0x7ae   :  { %6334 = vpow2.f32 %v1478_v40  ;;  %v1473_v57 = vsub.f32 %v1423_v17, %v1457_v7  ;;  %v1714_v40 = vld [vmem:[%s9234_s11 + $0x20] sm:$0xff] }
 0x7af   :  { %6336 = vpow2.f32 %v1482_v24  ;;  %v1715_v24 = vld [vmem:[%s9234_s11 + $0x28] sm:$0xff] }
 0x7b0   :  { %v1484_v41 = vmul.f32 1.442695, %v1473_v57  ;;  %v5839_v7 = vpack.c.bf16 %v1715_v24, %v1714_v40 }
 0x7b1   :  { %v1463_v55 = vpop.xlane.xlu0 %1462 }
 0x7b2   :  { %v1475_v23 = vsub.f32 %v1433_v56, %v1463_v55  ;;  %6338 = vpow2.f32 %v1484_v41  ;;  %v5829_v56 = vpack.c.bf16 %v1727_v16, %v1726_v15  ;;  %v1732_v55 = vld [vmem:[%s9234_s11 + $0xb0] sm:$0xff]  ;;  %v1721_v15 = vld [vmem:[%s9234_s11 + $0x58] sm:$0xff] }
 0x7b4   :  { %v7440_v2 = vpop.eup %6332  ;;  %v1488_v0 = vmul.f32 1.442695, %v1475_v23  ;;  %5830 = vmatprep.subr.bf16.mxu1 %v5829_v56  ;;  %v1733_v23 = vld [vmem:[%s9234_s11 + $0xb8] sm:$0xff]  ;;  %v1738_v56 = vld [vmem:[%s9234_s11 + $0xe0] sm:$0xff] }
 0x7b5   :  { %v1460_v46 = vpop.xlane.xlu0 %1459  ;;  %v1497_v60 = vsel %vm1038_vm2, %v7440_v2, 0.0  ;;  %5832 = vmatpush3.bf16.msra.mxu1 %v5831_v62  ;;  %v5853_v50 = vpack.c.bf16 %v1739_v12, %v1738_v56  ;;  %v1722_v62 = vld [vmem:[%s9234_s11 + $0x60] sm:$0xff] }
 0x7b6   :  { %v1474_v39 = vsub.f32 %v1428_v48, %v1460_v46  ;;  %1498 = vadd.xlane.f32.xlu0 %v1497_v60  ;;  %6340 = vpow2.f32 %v1488_v0  ;;  %v5841_v0 = vpack.c.bf16 %v1733_v23, %v1732_v55  ;;  %v1716_v46 = vld [vmem:[%s9234_s11 + $0x30] sm:$0xff]  ;;  %v1717_v60 = vld [vmem:[%s9234_s11 + $0x38] sm:$0xff] }
 0x7b8   :  { %v7444_v5 = vpop.eup %6334  ;;  %v1486_v61 = vmul.f32 1.442695, %v1474_v39  ;;  %v5843_v39 = vpack.c.bf16 %v1717_v60, %v1716_v46  ;;  %v1758_v46 = vld [vmem:[%s9234_s11 + $0x180] sm:$0xff]  ;;  %v1759_v60 = vld [vmem:[%s9234_s11 + $0x188] sm:$0xff] }
 0x7b9   :  { %v1466_v28 = vpop.xlane.xlu0 %1465  ;;  %v1494_v47 = vsel %vm1038_vm2, %v7444_v5, 0.0  ;;  %v7448_v18 = vpop.eup %6336 }
 0x7ba   :  { %6342 = vpow2.f32 %v1486_v61  ;;  %v1476_v27 = vsub.f32 %v1438_v36, %v1466_v28  ;;  %1495 = vadd.xlane.f32.xlu0 %v1494_v47  ;;  %v1500_v13 = vsel %vm1038_vm2, %v7448_v18, 0.0  ;;  %v1734_v61 = vld [vmem:[%s9234_s11 + $0xc0] sm:$0xff]  ;;  %v1735_v28 = vld [vmem:[%s9234_s11 + $0xc8] sm:$0xff] }
 0x7bb   :  { %v5845_v47 = vpack.c.bf16 %v1735_v28, %v1734_v61 }
 0x7bc   :  { %v1490_v59 = vmul.f32 1.442695, %v1476_v27  ;;  %v7452_v30 = vpop.eup %6338  ;;  %v1718_v27 = vld [vmem:[%s9234_s11 + $0x40] sm:$0xff] }
 0x7bd   :  { %v1469_v63 = vpop.xlane.xlu0 %1468  ;;  %v1503_v6 = vsel %vm1038_vm2, %v7452_v30, 0.0 }
 0x7be   :  { %6344 = vpow2.f32 %v1490_v59  ;;  %v1477_v8 = vsub.f32 %v1443_v45, %v1469_v63  ;;  %1501 = vadd.xlane.f32.xlu0 %v1500_v13  ;;  %v1729_v45 = vld [vmem:[%s9234_s11 + $0x98] sm:$0xff]  ;;  %v1719_v59 = vld [vmem:[%s9234_s11 + $0x48] sm:$0xff]  ;;  %v1736_v13 = vld [vmem:[%s9234_s11 + $0xd0] sm:$0xff] }
 0x7bf   :  { %v5833_v1 = vpack.c.bf16 %v1729_v45, %v1728_v9  ;;  %v5847_v63 = vpack.c.bf16 %v1719_v59, %v1718_v27  ;;  %v1740_v9 = vld [vmem:[%s9234_s11 + $0xf0] sm:$0xff]  ;;  %v1742_v27 = vld [vmem:[%s9234_s11 + $0x100] sm:$0xff] }
 0x7c0   :  { %v1492_v17 = vmul.f32 1.442695, %v1477_v8  ;;  %v7462_v20 = vpop.eup %6340  ;;  %v1737_v8 = vld [vmem:[%s9234_s11 + $0xd8] sm:$0xff] }
 0x7c1   :  { %v1509_v58 = vsel %vm1038_vm2, %v7462_v20, 0.0  ;;  %5834 = vmatprep.subr.bf16.mxu1 %v5833_v1  ;;  %v1724_v1 = vld [vmem:[%s9234_s11 + $0x70] sm:$0xff] }
 0x7c2   :  { %6346 = vpow2.f32 %v1492_v17  ;;  %1504 = vadd.xlane.f32.xlu0 %v1503_v6  ;;  %5836 = vmatpush3.bf16.msra.mxu1 %v5835_v25  ;;  %v5849_v17 = vpack.c.bf16 %v1737_v8, %v1736_v13  ;;  %v1720_v6 = vld [vmem:[%s9234_s11 + $0x50] sm:$0xff]  ;;  %v5859_v42 = vpack.c.bf16 %v1725_v52, %v1724_v1  ;;  %v1743_v13 = vld [vmem:[%s9234_s11 + $0x108] sm:$0xff] }
 0x7c3   :  { %5838 = vmatprep.subr.bf16.mxu1 %v5837_v38  ;;  %v5851_v16 = vpack.c.bf16 %v1721_v15, %v1720_v6  ;;  %v1760_v8 = vld [vmem:[%s9234_s11 + $0x190] sm:$0xff] }
 0x7c4   :  { %v7470_v48 = vpop.eup %6342 }
 0x7c5   :  { %v1506_v36 = vsel %vm1038_vm2, %v7470_v48, 0.0 }
 0x7c6   :  { %1510 = vadd.xlane.f32.xlu0 %v1509_v58  ;;  %1507 = vadd.xlane.f32.xlu1 %v1506_v36  ;;  %v1723_v58 = vld [vmem:[%s9234_s11 + $0x68] sm:$0xff] }
 0x7c7   :  { %5840 = vmatpush3.bf16.msra.mxu1 %v5839_v7  ;;  %v5855_v36 = vpack.c.bf16 %v1723_v58, %v1722_v62  ;;  %v1744_v58 = vld [vmem:[%s9234_s11 + $0x110] sm:$0xff] }
 0x7c8   :  { %v7488_v54 = vpop.eup %6344  ;;  %5842 = vmatprep.subr.bf16.mxu1 %v5841_v0 }
 0x7c9   :  { %v1512_v19 = vsel %vm1038_vm2, %v7488_v54, 0.0 }
 0x7ca   :  { %1513 = vadd.xlane.f32.xlu1 %v1512_v19 }
 0x7cb   :  { %5844 = vmatpush3.bf16.msra.mxu1 %v5843_v39 }
 0x7cc   :  { %v7504_v57 = vpop.eup %6346  ;;  %5846 = vmatprep.subr.bf16.mxu1 %v5845_v47 }
 0x7cd   :  { %v1515_v41 = vsel %vm1038_vm2, %v7504_v57, 0.0 }
 0x7ce   :  { %1516 = vadd.xlane.f32.xlu0 %v1515_v41 }
 0x7cf   :  { %5848 = vmatpush3.bf16.msra.mxu1 %v5847_v63  ;;  %v5861_v63 = vpack.c.bf16 %v1759_v60, %v1758_v46 }
 0x7d0   :  { %5850 = vmatprep.subr.bf16.mxu1 %v5849_v17  ;;  %v1761_v17 = vld [vmem:[%s9234_s11 + $0x198] sm:$0xff] }
 0x7d1   :  { %v5865_v62 = vpack.c.bf16 %v1761_v17, %v1760_v8  ;;  %v1751_v8 = vld [vmem:[%s9234_s11 + $0x148] sm:$0xff]  ;;  %v1768_v17 = vld [vmem:[%s9234_s11 + $0x1d0] sm:$0xff] }
 0x7d3   :  { %5852 = vmatpush3.bf16.msra.mxu1 %v5851_v16 }
 0x7d4   :  { %5854 = vmatprep.subr.bf16.mxu1 %v5853_v50  ;;  %v5863_v50 = vpack.c.bf16 %v1743_v13, %v1742_v27  ;;  %v1750_v13 = vld [vmem:[%s9234_s11 + $0x140] sm:$0xff] }
 0x7d7   :  { %5856 = vmatpush3.bf16.msra.mxu1 %v5855_v36  ;;  %v1745_v36 = vld [vmem:[%s9234_s11 + $0x118] sm:$0xff] }
 0x7db   :  { %1558 = vrot.lane.b32.xlu1 %v6919_v44, %s6597_s6  ;;  %v1741_v44 = vld [vmem:[%s9234_s11 + $0xf8] sm:$0xff] }
 0x7dc   :  { %v5857_v45 = vpack.c.bf16 %v1741_v44, %v1740_v9 }
 0x7de   :  { %5858 = vmatprep.subr.bf16.mxu1 %v5857_v45 }
 0x7df   :  { %6219 = vrot.lane.b32.xlu1 %v6218_v49, %s6597_s6  ;;  %5860 = vmatpush3.bf16.msra.mxu1 %v5859_v42 }
 0x7e4   :  { %6214 = vrot.lane.b32.xlu0 %v6213_v43, %s6597_s6 }
 0x843   :  { %v1499_v25 = vpop.xlane.xlu0 %1498 }
 0x844   :  { %6348 = vrcp.f32 %v1499_v25 }
 0x847   :  { %v1496_v4 = vpop.xlane.xlu0 %1495 }
 0x848   :  { %6350 = vrcp.f32 %v1496_v4 }
 0x84b   :  { %v1502_v22 = vpop.xlane.xlu0 %1501 }
 0x84c   :  { %6352 = vrcp.f32 %v1502_v22 }
 0x84e   :  { %v6349_v19 = vpop.eup %6348 }
 0x84f   :  { %v1505_v49 = vpop.xlane.xlu0 %1504  ;;  %v1527_v24 = vmul.f32 %v6349_v19, %v1499_v25 }
 0x850   :  { %6354 = vrcp.f32 %v1505_v49 }
 0x851   :  { %v1535_v55 = vsub.f32 2.0, %v1527_v24 }
 0x852   :  { %v6351_v31 = vpop.eup %6350 }
 0x853   :  { %v1526_v11 = vmul.f32 %v6351_v31, %v1496_v4  ;;  %v1508_v38 = vpop.xlane.xlu1 %1507  ;;  %v1511_v40 = vpop.xlane.xlu0 %1510  ;;  %v1543_v59 = vmul.f32 %v6349_v19, %v1535_v55  ;;  %v1762_v4 = vld [vmem:[%s9234_s11 + $0x1a0] sm:$0xff] }
 0x854   :  { %6356 = vrcp.f32 %v1508_v38 }
 0x855   :  { %v1534_v7 = vsub.f32 2.0, %v1526_v11  ;;  %6358 = vrcp.f32 %v1511_v40  ;;  %v1551_v9 = vmul.f32 %v7440_v2, %v1543_v59 }
 0x856   :  { %v6353_v41 = vpop.eup %6352 }
 0x857   :  { %v1542_v3 = vmul.f32 %v6351_v31, %v1534_v7  ;;  %v1528_v10 = vmul.f32 %v6353_v41, %v1502_v22  ;;  %v1514_v43 = vpop.xlane.xlu1 %1513  ;;  %v1763_v22 = vld [vmem:[%s9234_s11 + $0x1a8] sm:$0xff]  ;;  %v5867_v31 = vpack.c.bf16 %v1745_v36, %v1744_v58  ;;  %v1754_v58 = vld [vmem:[%s9234_s11 + $0x160] sm:$0xff] }
 0x858   :  { %6360 = vrcp.f32 %v1514_v43  ;;  %v5869_v7 = vpack.c.bf16 %v1763_v22, %v1762_v4  ;;  %v1755_v36 = vld [vmem:[%s9234_s11 + $0x168] sm:$0xff] }
 0x859   :  { %v1536_v23 = vsub.f32 2.0, %v1528_v10  ;;  %v1550_v0 = vmul.f32 %v7444_v5, %v1542_v3 }
 0x85a   :  { %v6355_v39 = vpop.eup %6354 }
 0x85b   :  { %v1529_v61 = vmul.f32 %v6355_v39, %v1505_v49  ;;  %v1559_v28 = vpop.permute.xlu1 %1558  ;;  %5556 = vmatprep.mubr.msk.f32.mxu0 %vm1038_vm2, %v1550_v0  ;;  %v1517_v47 = vpop.xlane.xlu0 %1516  ;;  %v1544_v6 = vmul.f32 %v6353_v41, %v1536_v23  ;;  %v1746_v41 = vld [vmem:[%s9234_s11 + $0x120] sm:$0xff] }
 0x85c   :  { %v5825_v5 = vpack.c.bf16 %v6212_v53, %v1559_v28  ;;  %6362 = vrcp.f32 %v1517_v47  ;;  %v1749_v28 = vld [vmem:[%s9234_s11 + $0x138] sm:$0xff] }
 0x85d   :  { %v1537_v15 = vsub.f32 2.0, %v1529_v61  ;;  %v1552_v25 = vmul.f32 %v7448_v18, %v1544_v6  ;;  %v1748_v61 = vld [vmem:[%s9234_s11 + $0x130] sm:$0xff]  ;;  %v1769_v6 = vld [vmem:[%s9234_s11 + $0x1d8] sm:$0xff] }
 0x85e   :  { %v6357_v16 = vpop.eup %6356  ;;  %5826 = vmatprep.subr.bf16.mxu0 %v5825_v5  ;;  %v5875_v59 = vpack.c.bf16 %v1749_v28, %v1748_v61 }
 0x85f   :  { %v6359_v14 = vpop.eup %6358  ;;  %v1530_v53 = vmul.f32 %v6357_v16, %v1508_v38  ;;  %5828 = vmatpush3.bf16.msra.mxu0 %v5825_v5  ;;  %v7600_v56 = vpop.permute.xlu1 %6219  ;;  %v1545_v44 = vmul.f32 %v6355_v39, %v1537_v15  ;;  %v5879_v15 = vpack.c.bf16 %v1751_v8, %v1750_v13 }
 0x860   :  { %v7602_v12 = vpop.permute.xlu0 %6214  ;;  %v1531_v45 = vmul.f32 %v6359_v14, %v1511_v40  ;;  %v6221_v1 = vunpack.i.l.bf16 %v7600_v56  ;;  %5862 = vmatprep.subr.bf16.mxu0 %v5861_v63  ;;  %v6222_v4 = vunpack.i.h.bf16 %v7600_v56 }
 0x861   :  { %v1538_v52 = vsub.f32 2.0, %v1530_v53  ;;  %v6216_v42 = vunpack.i.l.bf16 %v7602_v12  ;;  %v1553_v24 = vmul.f32 %v7452_v30, %v1545_v44  ;;  %v1765_v30 = vld [vmem:[%s9234_s11 + $0x1b8] sm:$0xff] }
 0x862   :  { %v6361_v49 = vpop.eup %6360  ;;  %v1539_v2 = vsub.f32 2.0, %v1531_v45  ;;  %5557 = vmatmul.mubr.msk.f32.vlgmr.msra.gmra.mrb[22].mxu0 %vm1038_vm2, %v1551_v9  ;;  %v1302_v19 = vsel %vm115_vm0, %v7406_v33, %v6221_v1  ;;  %v1747_v33 = vld [vmem:[%s9234_s11 + $0x128] sm:$0xff]  ;;  %v1753_v53 = vld [vmem:[%s9234_s11 + $0x158] sm:$0xff]  ;;  %v1772_v9 = vld [vmem:[%s9234_s11 + $0x1f0] sm:$0xff]  ;;  %v5887_v45 = vpack.c.bf16 %v1755_v36, %v1754_v58  ;;  %v1304_v22 = vsel %vm115_vm0, %v7416_v37, %v6222_v4 }
 0x863   :  { %v1546_v11 = vmul.f32 %v6357_v16, %v1538_v52  ;;  %v1532_v38 = vmul.f32 %v6361_v49, %v1514_v43  ;;  %5559 = vmatprep.mubr.msk.f32.mxu0 %vm1038_vm2, %v1552_v25  ;;  %v1303_v18 = vsel %vm115_vm0, %v7410_v21, %v6216_v42  ;;  %5864 = vmatpush3.bf16.msra.mxu0 %v5863_v50  ;;  %v1764_v21 = vld [vmem:[%s9234_s11 + $0x1b0] sm:$0xff]  ;;  %v1773_v44 = vld [vmem:[%s9234_s11 + $0x1f8] sm:$0xff]  ;;  %v4763_v58 = vld [vmem:[%s9235_s12] ss:$0 sm:$0xff] }
 0x864   :  { %v1547_v40 = vmul.f32 %v6359_v14, %v1539_v2  ;;  %1838 = vmatprep.mubr.f32.mxu1 %v1303_v18  ;;  %5866 = vmatprep.subr.bf16.mxu0 %v5865_v62  ;;  %v5871_v0 = vpack.c.bf16 %v1747_v33, %v1746_v41  ;;  %v5881_v16 = vpack.c.bf16 %v1769_v6, %v1768_v17  ;;  %v1752_v14 = vld [vmem:[%s9234_s11 + $0x150] sm:$0xff]  ;;  %v1757_v42 = vld [vmem:[%s9234_s11 + $0x178] sm:$0xff] }
 0x865   :  { %v1540_v3 = vsub.f32 2.0, %v1532_v38  ;;  %1839 = vmatmul.mubr.f32.vlgmr.msra.gmra.mrb[30].mxu1 %v1302_v19  ;;  %v1554_v10 = vmul.f32 %v7470_v48, %v1546_v11  ;;  %v5873_v48 = vpack.c.bf16 %v1765_v30, %v1764_v21  ;;  %v5883_v50 = vpack.c.bf16 %v1753_v53, %v1752_v14  ;;  %v1756_v52 = vld [vmem:[%s9234_s11 + $0x170] sm:$0xff] }
 0x866   :  { %v6363_v43 = vpop.eup %6362  ;;  %5560 = vmatmul.mubr.msk.f32.gmra.mrb[24].mxu0 %vm1038_vm2, %v1553_v24  ;;  %v1555_v46 = vmul.f32 %v7462_v20, %v1547_v40  ;;  %v1767_v20 = vld [vmem:[%s9234_s11 + $0x1c8] sm:$0xff]  ;;  %v5889_v1 = vpack.c.bf16 %v1773_v44, %v1772_v9  ;;  %v5891_v25 = vpack.c.bf16 %v1757_v42, %v1756_v52  ;;  %v6526_v52 = vld [vmem:[%s9250_s29] sm:$0xff] }
 0x867   :  { %v1548_v55 = vmul.f32 %v6361_v49, %v1540_v3  ;;  %v1533_v23 = vmul.f32 %v6363_v43, %v1517_v47  ;;  %5562 = vmatprep.mubr.msk.f32.mxu0 %vm1038_vm2, %v1554_v10  ;;  %5868 = vmatpush3.bf16.msra.mxu0 %v5867_v31  ;;  %v1766_v47 = vld [vmem:[%s9234_s11 + $0x1c0] sm:$0xff] }
 0x868   :  { %5870 = vmatprep.subr.bf16.mxu0 %v5869_v7  ;;  %v5877_v63 = vpack.c.bf16 %v1767_v20, %v1766_v47  ;;  %v9255_v47 = vmov 0.0  }
 0x869   :  { %v1541_v60 = vsub.f32 2.0, %v1533_v23  ;;  %v1556_v39 = vmul.f32 %v7488_v54, %v1548_v55  ;;  %v6217_v54 = vunpack.i.h.bf16 %v7602_v12  ;;  %v1770_v12 = vld [vmem:[%s9234_s11 + $0x1e0] sm:$0xff] }
 0x86a   :  { %5563 = vmatmul.mubr.msk.f32.gmra.mrb[26].mxu0 %vm1038_vm2, %v1555_v46 }
 0x86b   :  { %v1549_v27 = vmul.f32 %v6363_v43, %v1541_v60  ;;  %5565 = vmatprep.mubr.msk.f32.mxu0 %vm1038_vm2, %v1556_v39  ;;  %5872 = vmatpush3.bf16.msra.mxu0 %v5871_v0 }
 0x86c   :  { %5874 = vmatprep.subr.bf16.mxu0 %v5873_v48 }
 0x86d   :  { %v1557_v5 = vmul.f32 %v7504_v57, %v1549_v27  ;;  %v1305_v57 = vsel %vm115_vm0, %v7422_v51, %v6217_v54  ;;  %v1771_v51 = vld [vmem:[%s9234_s11 + $0x1e8] sm:$0xff] }
 0x86e   :  { %v5885_v62 = vpack.c.bf16 %v1771_v51, %v1770_v12 }
 0x86f   :  { %5566 = vmatmul.mubr.msk.f32.gmra.mrb[28].mxu0 %vm1038_vm2, %v1557_v5 }
 0x870   :  { %5876 = vmatpush3.bf16.msra.mxu0 %v5875_v59  ;;  %1913 = vmatprep.mubr.f32.mxu0 %v1305_v57 }
 0x871   :  { %5878 = vmatprep.subr.bf16.mxu0 %v5877_v63 }
 0x874   :  { %5880 = vmatpush3.bf16.msra.mxu0 %v5879_v15 }
 0x875   :  { %5882 = vmatprep.subr.bf16.mxu0 %v5881_v16 }
 0x878   :  { %5884 = vmatpush3.bf16.msra.mxu0 %v5883_v50 }
 0x879   :  { %5886 = vmatprep.subr.bf16.mxu0 %v5885_v62 }
 0x87c   :  { %5888 = vmatpush3.bf16.msra.mxu0 %v5887_v45 }
 0x87d   :  { %5890 = vmatprep.subr.bf16.mxu0 %v5889_v1 }
 0x880   :  { %5892 = vmatpush3.bf16.msra.mxu0 %v5891_v25 }
 0x883   :  { %1914 = vmatmul.mubr.f32.vlgmr.msra.gmra.mrb[30].mxu0 %v1304_v22 }
 0x935   :  { %v5558_v49 = vpop.f32.mrb[22].mxu0 }
 0x936   :  { %v1651_v2 = vpop.f32.mrb[23].mxu0 }
 0x938   :  { %v5136_v19 = vpop.f32.mrb[30].mxu1 }
 0x939   :  { %v5137_v31 = vpop.f32.mrb[31].mxu1  ;;  %v5561_v11 = vpop.f32.mrb[24].mxu0 }
 0x93a   :  { %v5138_v38 = vadd.f32 %v5137_v31, %v5136_v19  ;;  %v1661_v18 = vpop.f32.mrb[25].mxu0 }
 0x93d   :  { %v5564_v40 = vpop.f32.mrb[26].mxu0 }
 0x93e   :  { %v6228_v24 = vpack.i.bf16 %v5564_v40, %v5558_v49  ;;  %v1671_v7 = vpop.f32.mrb[27].mxu0 }
 0x942   :  { %v5567_v41 = vpop.f32.mrb[28].mxu0 }
 0x943   :  { %v6223_v33 = vpack.i.bf16 %v5567_v41, %v5561_v11  ;;  %v1681_v3 = vpop.f32.mrb[29].mxu0 }
 0x945   :  { %6224 = vrot.lane.b32.xlu1 %v6223_v33, %s6597_s6 }
 0x949   :  { %6229 = vrot.lane.b32.xlu1 %v6228_v24, %s6597_s6 }
 0x956   :  { %v5174_v56 = vpop.f32.mrb[30].mxu0 }
 0x957   :  { %v5175_v37 = vpop.f32.mrb[31].mxu0 }
 0x958   :  { %v5176_v10 = vadd.f32 %v5175_v37, %v5174_v56  ;;  %v2001_v56 = vld [vmem:[%s9237_s14 + $0x28] sm:$0xff]  ;;  %v1999_v37 = vld [vmem:[%s9237_s14 + $0x18] sm:$0xff] }
 0x95a   :  { %v1916_v21 = vadd.f32 %v5176_v10, %v5138_v38 }
 0x95c   :  { %v1925_v30 = vsel %vm115_vm0, %v1916_v21, 0.0 }
 0x95d   :  { %1926 = vadd.xlane.f32.xlu0 %v1925_v30  ;;  %v1996_v30 = vld [vmem:[%s9237_s14] sm:$0xff] }
 0x9b7   :  { %v6225_v43 = vpop.permute.xlu1 %6224 }
 0x9b8   :  { %v6227_v55 = vunpack.i.h.bf16 %v6225_v43  ;;  %v6226_v23 = vunpack.i.l.bf16 %v6225_v43  ;;  %v2000_v43 = vld [vmem:[%s9237_s14 + $0x20] sm:$0xff] }
 0x9ba   :  { %v1707_v0 = vsel %vm115_vm0, %v1661_v18, %v6226_v23  ;;  %v1709_v46 = vsel %vm115_vm0, %v1681_v3, %v6227_v55  ;;  %v1997_v3 = vld [vmem:[%s9237_s14 + $0x8] sm:$0xff]  ;;  %v5895_v23 = vpack.c.bf16 %v2000_v43, %v1996_v30 }
 0x9bb   :  { %v6230_v48 = vpop.permute.xlu1 %6229  ;;  %1843 = vmatprep.mubr.f32.mxu1 %v1707_v0  ;;  %1918 = vmatprep.mubr.f32.mxu0 %v1709_v46  ;;  %v5893_v10 = vpack.c.bf16 %v2001_v56, %v1997_v3  ;;  %v1998_v0 = vld [vmem:[%s9237_s14 + $0x10] sm:$0xff]  ;;  %v7845_v3 = vld [vmem:[%s9236_s13] ss:$0 sm:$0xff]  ;;  %v2237_v30 = vld [vmem:[%s9238_s15 + $0x88] sm:$0xff] }
 0x9bc   :  { %v6232_v60 = vunpack.i.h.bf16 %v6230_v48  ;;  %v6231_v39 = vunpack.i.l.bf16 %v6230_v48  ;;  %v2002_v46 = vld [vmem:[%s9237_s14 + $0x30] sm:$0xff] }
 0x9bd   :  { %5894 = vmatprep.subr.bf16.mxu1 %v5893_v10  ;;  %v5911_v48 = vpack.c.bf16 %v2002_v46, %v1998_v0  ;;  %v2238_v46 = vld [vmem:[%s9238_s15 + $0x90] sm:$0xff] }
 0x9be   :  { %v1706_v61 = vsel %vm115_vm0, %v1651_v2, %v6231_v39  ;;  %v1708_v28 = vsel %vm115_vm0, %v1671_v7, %v6232_v60  ;;  %v6527_v7 = vld [vmem:[%s9250_s29 + $0x8] sm:$0xff]  ;;  %5896 = vmatpush1.bf16.msra.mxu1 %v5895_v23 }
 0x9bf   :  { %1844 = vmatmul.mubr.f32.gmra.mrb[32].mxu1 %v1706_v61  ;;  %1919 = vmatmul.mubr.f32.gmra.mrb[32].mxu0 %v1708_v28  ;;  %v2005_v60 = vld [vmem:[%s9237_s14 + $0x48] sm:$0xff]  ;;  %v2007_v61 = vld [vmem:[%s9237_s14 + $0x58] sm:$0xff] }
 0x9c0   :  { %2098 = vmatprep.mubr.f32.mxu1 %v9255_v47  ;;  %2175 = vmatprep.mubr.f32.mxu0 %v9255_v47  ;;  %v2009_v39 = vld [vmem:[%s9237_s14 + $0x68] sm:$0xff] }
 0x9c1   :  { %v5897_v28 = vpack.c.bf16 %v2009_v39, %v2005_v60  ;;  %v2221_v23 = vld [vmem:[%s9238_s15 + $0x8] sm:$0xff]  ;;  %v2222_v39 = vld [vmem:[%s9238_s15 + $0x10] sm:$0xff] }
 0x9c3   :  { %5898 = vmatprep.subr.bf16.mxu1 %v5897_v28 }
 0x9ea   :  { %v1927_v20 = vpop.xlane.xlu0 %1926 }
 0x9eb   :  { %v1931_v27 = vmul.f32 0.015625, %v1927_v20  ;;  %v2011_v20 = vld [vmem:[%s9237_s14 + $0x78] sm:$0xff] }
 0x9ed   :  { %v1933_v54 = vsub.f32 %v1916_v21, %v1931_v27  ;;  %v2003_v21 = vld [vmem:[%s9237_s14 + $0x38] sm:$0xff]  ;;  %v2004_v27 = vld [vmem:[%s9237_s14 + $0x40] sm:$0xff] }
 0x9ee   :  { %v5909_v55 = vpack.c.bf16 %v2003_v21, %v1999_v37 }
 0x9ef   :  { %v1935_v59 = vmul.f32 %v1933_v54, %v1933_v54 }
 0x9f0   :  { %5910 = vmatprep.subr.bf16.mxu0 %v5909_v55  ;;  %v2220_v55 = vld [vmem:[%s9238_s15] sm:$0xff] }
 0x9f1   :  { %v1937_v5 = vsel %vm115_vm0, %v1935_v59, 0.0  ;;  %5912 = vmatpush1.bf16.msra.mxu0 %v5911_v48  ;;  %v5913_v59 = vpack.c.bf16 %v2011_v20, %v2007_v61  ;;  %v5927_v0 = vpack.c.bf16 %v2221_v23, %v2220_v55  ;;  %v2239_v48 = vld [vmem:[%s9238_s15 + $0x98] sm:$0xff]  ;;  %v2240_v20 = vld [vmem:[%s9238_s15 + $0xa0] sm:$0xff] }
 0x9f2   :  { %1938 = vadd.xlane.f32.xlu0 %v1937_v5  ;;  %v5929_v60 = vpack.c.bf16 %v2239_v48, %v2238_v46  ;;  %v2223_v61 = vld [vmem:[%s9238_s15 + $0x18] sm:$0xff] }
 0x9f3   :  { %5914 = vmatprep.subr.bf16.mxu0 %v5913_v59  ;;  %v5931_v28 = vpack.c.bf16 %v2223_v61, %v2222_v39  ;;  %v2224_v59 = vld [vmem:[%s9238_s15 + $0x20] sm:$0xff] }
 0xa7f   :  { %v1939_v14 = vpop.xlane.xlu0 %1938 }
 0xa80   :  { %v1943_v53 = vmul.f32 0.015625, %v1939_v14  ;;  %v2012_v14 = vld [vmem:[%s9237_s14 + $0x80] sm:$0xff] }
 0xa82   :  { %v1945_v12 = vadd.f32 1e-05, %v1943_v53  ;;  %v2016_v53 = vld [vmem:[%s9237_s14 + $0xa0] sm:$0xff] }
 0xa84   :  { %6364 = vrsqrt.f32 %v1945_v12 }
 0xa8e   :  { %v6365_v51 = vpop.eup %6364 }
 0xa8f   :  { %v1949_v50 = vmul.f32 %v6365_v51, %v1933_v54  ;;  %v2008_v54 = vld [vmem:[%s9237_s14 + $0x60] sm:$0xff]  ;;  %v5903_v51 = vpack.c.bf16 %v2016_v53, %v2012_v14  ;;  %v2245_v14 = vld [vmem:[%s9238_s15 + $0xc8] sm:$0xff] }
 0xa90   :  { %v5899_v5 = vpack.c.bf16 %v2008_v54, %v2004_v27  ;;  %v2241_v27 = vld [vmem:[%s9238_s15 + $0xa8] sm:$0xff] }
 0xa91   :  { %v1957_v44 = vmul.f32 %v4763_v58, %v1949_v50  ;;  %v2014_v50 = vld [vmem:[%s9237_s14 + $0x90] sm:$0xff]  ;;  %v5933_v54 = vpack.c.bf16 %v2241_v27, %v2240_v20 }
 0xa92   :  { %v5139_v63 = vpop.f32.mrb[32].mxu1  ;;  %v5177_v13 = vpop.f32.mrb[32].mxu0  ;;  %5900 = vmatpush1.bf16.msra.mxu1 %v5899_v5  ;;  %v2225_v5 = vld [vmem:[%s9238_s15 + $0x28] sm:$0xff] }
 0xa93   :  { %v5140_v8 = vpop.f32.mrb[33].mxu1  ;;  %v5178_v17 = vpop.f32.mrb[33].mxu0  ;;  %v7726_v42 = vadd.f32 %v6526_v52, %v1957_v44  ;;  %v2023_v44 = vld [vmem:[%s9237_s14 + $0xd8] sm:$0xff]  ;;  %v2020_v52 = vld [vmem:[%s9237_s14 + $0xc0] sm:$0xff] }
 0xa94   :  { %v5141_v6 = vadd.f32 %v5140_v8, %v5139_v63  ;;  %v5179_v57 = vadd.f32 %v5178_v17, %v5177_v13  ;;  %v2006_v63 = vld [vmem:[%s9237_s14 + $0x50] sm:$0xff]  ;;  %v2013_v17 = vld [vmem:[%s9237_s14 + $0x88] sm:$0xff] }
 0xa95   :  { %v1962_v25 = vsel %vm115_vm0, %v7726_v42, 0.0  ;;  %v2010_v13 = vld [vmem:[%s9237_s14 + $0x70] sm:$0xff] }
 0xa96   :  { %v1921_v15 = vadd.f32 %v5179_v57, %v5141_v6  ;;  %v5915_v8 = vpack.c.bf16 %v2010_v13, %v2006_v63  ;;  %v2017_v6 = vld [vmem:[%s9237_s14 + $0xa8] sm:$0xff]  ;;  %v2015_v57 = vld [vmem:[%s9237_s14 + $0x98] sm:$0xff]  ;;  %v5935_v63 = vpack.c.bf16 %v2225_v5, %v2224_v59  ;;  %v2242_v13 = vld [vmem:[%s9238_s15 + $0xb0] sm:$0xff] }
 0xa98   :  { %v1928_v16 = vsel %vm115_vm0, %v1921_v15, 0.0  ;;  %5916 = vmatpush1.bf16.msra.mxu0 %v5915_v8  ;;  %v2243_v8 = vld [vmem:[%s9238_s15 + $0xb8] sm:$0xff] }
 0xa99   :  { %1929 = vadd.xlane.f32.xlu1 %v1928_v16  ;;  %v2019_v16 = vld [vmem:[%s9237_s14 + $0xb8] sm:$0xff] }
 0xa9a   :  { %v5917_v12 = vpack.c.bf16 %v2019_v16, %v2015_v57  ;;  %v2227_v57 = vld [vmem:[%s9238_s15 + $0x38] sm:$0xff]  ;;  %v2244_v16 = vld [vmem:[%s9238_s15 + $0xc0] sm:$0xff] }
 0xa9b   :  { %v5941_v53 = vpack.c.bf16 %v2245_v14, %v2244_v16 }
 0xa9c   :  { %5918 = vmatprep.subr.bf16.mxu0 %v5917_v12  ;;  %v2228_v12 = vld [vmem:[%s9238_s15 + $0x40] sm:$0xff] }
 0xb26   :  { %v1930_v62 = vpop.xlane.xlu1 %1929 }
 0xb27   :  { %v1932_v36 = vmul.f32 0.015625, %v1930_v62  ;;  %v2018_v62 = vld [vmem:[%s9237_s14 + $0xb0] sm:$0xff] }
 0xb29   :  { %v1934_v9 = vsub.f32 %v1921_v15, %v1932_v36  ;;  %v5901_v15 = vpack.c.bf16 %v2017_v6, %v2013_v17  ;;  %v2021_v36 = vld [vmem:[%s9237_s14 + $0xc8] sm:$0xff]  ;;  %v5937_v17 = vpack.c.bf16 %v2243_v8, %v2242_v13  ;;  %v2226_v6 = vld [vmem:[%s9238_s15 + $0x30] sm:$0xff] }
 0xb2b   :  { %v1936_v45 = vmul.f32 %v1934_v9, %v1934_v9  ;;  %5902 = vmatprep.subr.bf16.mxu1 %v5901_v15  ;;  %v5939_v15 = vpack.c.bf16 %v2227_v57, %v2226_v6 }
 0xb2c   :  { %5904 = vmatpush1.bf16.msra.mxu1 %v5903_v51  ;;  %v2229_v51 = vld [vmem:[%s9238_s15 + $0x48] sm:$0xff] }
 0xb2d   :  { %v1940_v1 = vsel %vm115_vm0, %v1936_v45, 0.0 }
 0xb2e   :  { %1941 = vadd.xlane.f32.xlu0 %v1940_v1  ;;  %v2027_v1 = vld [vmem:[%s9237_s14 + $0xf8] sm:$0xff] }
 0xb32   :  { %1963 = vadd.xlane.f32.xlu0 %v1962_v25  ;;  %v2024_v25 = vld [vmem:[%s9237_s14 + $0xe0] sm:$0xff] }
 0xbbb   :  { %v1942_v4 = vpop.xlane.xlu0 %1941 }
 0xbbc   :  { %v1944_v22 = vmul.f32 0.015625, %v1942_v4  ;;  %v5921_v4 = vpack.c.bf16 %v2027_v1, %v2023_v44  ;;  %v2231_v44 = vld [vmem:[%s9238_s15 + $0x58] sm:$0xff]  ;;  %v2248_v1 = vld [vmem:[%s9238_s15 + $0xe0] sm:$0xff] }
 0xbbe   :  { %v1946_v49 = vadd.f32 1e-05, %v1944_v22  ;;  %v5907_v22 = vpack.c.bf16 %v2024_v25, %v2020_v52  ;;  %v2249_v52 = vld [vmem:[%s9238_s15 + $0xe8] sm:$0xff] }
 0xbbf   :  { %v1964_v2 = vpop.xlane.xlu0 %1963  ;;  %v5949_v25 = vpack.c.bf16 %v2249_v52, %v2248_v1 }
 0xbc0   :  { %6366 = vrsqrt.f32 %v1946_v49  ;;  %v1968_v19 = vmul.f32 0.015625, %v1964_v2  ;;  %v2022_v49 = vld [vmem:[%s9237_s14 + $0xd0] sm:$0xff] }
 0xbc1   :  { %v2026_v2 = vld [vmem:[%s9237_s14 + $0xf0] sm:$0xff] }
 0xbc2   :  { %v7731_v31 = vsub.f32 %v7726_v42, %v1968_v19  ;;  %v5923_v19 = vpack.c.bf16 %v2026_v2, %v2022_v49  ;;  %v2250_v2 = vld [vmem:[%s9238_s15 + $0xf0] sm:$0xff] }
 0xbc4   :  { %v1972_v11 = vmul.f32 %v7731_v31, %v7731_v31 }
 0xbc6   :  { %v1974_v38 = vsel %vm115_vm0, %v1972_v11, 0.0 }
 0xbc7   :  { %1975 = vadd.xlane.f32.xlu0 %v1974_v38 }
 0xbca   :  { %v6367_v18 = vpop.eup %6366 }
 0xbcb   :  { %v1950_v40 = vmul.f32 %v6367_v18, %v1934_v9  ;;  %v2025_v9 = vld [vmem:[%s9237_s14 + $0xe8] sm:$0xff] }
 0xbcc   :  { %v5905_v45 = vpack.c.bf16 %v2025_v9, %v2021_v36  ;;  %v2230_v9 = vld [vmem:[%s9238_s15 + $0x50] sm:$0xff] }
 0xbcd   :  { %v1958_v24 = vmul.f32 %v4763_v58, %v1950_v40  ;;  %v5919_v58 = vpack.c.bf16 %v2018_v62, %v2014_v50  ;;  %v5943_v50 = vpack.c.bf16 %v2229_v51, %v2228_v12  ;;  %v2246_v62 = vld [vmem:[%s9238_s15 + $0xd0] sm:$0xff] }
 0xbce   :  { %5906 = vmatprep.subr.bf16.mxu1 %v5905_v45  ;;  %v5947_v45 = vpack.c.bf16 %v2231_v44, %v2230_v9 }
 0xbcf   :  { %v7739_v41 = vadd.f32 %v6527_v7, %v1958_v24  ;;  %5920 = vmatpush1.bf16.msra.mxu0 %v5919_v58  ;;  %5908 = vmatpush1.bf16.msra.mxu1 %v5907_v22  ;;  %v2247_v58 = vld [vmem:[%s9238_s15 + $0xd8] sm:$0xff]  ;;  %v2233_v22 = vld [vmem:[%s9238_s15 + $0x68] sm:$0xff] }
 0xbd0   :  { %5922 = vmatprep.subr.bf16.mxu0 %v5921_v4  ;;  %v5945_v36 = vpack.c.bf16 %v2247_v58, %v2246_v62  ;;  %v2232_v4 = vld [vmem:[%s9238_s15 + $0x60] sm:$0xff] }
 0xbd1   :  { %v1965_v33 = vsel %vm115_vm0, %v7739_v41, 0.0  ;;  %v5951_v49 = vpack.c.bf16 %v2233_v22, %v2232_v4 }
 0xbd2   :  { %1966 = vadd.xlane.f32.xlu1 %v1965_v33 }
 0xbd3   :  { %5924 = vmatpush1.bf16.msra.mxu0 %v5923_v19  ;;  %v2251_v19 = vld [vmem:[%s9238_s15 + $0xf8] sm:$0xff] }
 0xc54   :  { %v1976_v11 = vpop.xlane.xlu0 %1975 }
 0xc55   :  { %v1980_v38 = vmul.f32 0.015625, %v1976_v11  ;;  %v5953_v11 = vpack.c.bf16 %v2251_v19, %v2250_v2 }
 0xc57   :  { %v1982_v18 = vadd.f32 1e-05, %v1980_v38  ;;  %v2234_v38 = vld [vmem:[%s9238_s15 + $0x70] sm:$0xff] }
 0xc59   :  { %6368 = vrsqrt.f32 %v1982_v18  ;;  %v2235_v18 = vld [vmem:[%s9238_s15 + $0x78] sm:$0xff] }
 0xc5f   :  { %v1967_v40 = vpop.xlane.xlu1 %1966 }
 0xc60   :  { %v1969_v24 = vmul.f32 0.015625, %v1967_v40  ;;  %v5955_v40 = vpack.c.bf16 %v2235_v18, %v2234_v38  ;;  %v4781_v38 = vld [vmem:[%s9231_s8 + $0x170] sm:$0xff] }
 0xc62   :  { %v7840_v7 = vsub.f32 %v7739_v41, %v1969_v24 }
 0xc63   :  { %v6369_v33 = vpop.eup %6368 }
 0xc64   :  { %v1986_v56 = vmul.f32 %v6369_v33, %v7731_v31  ;;  %v1973_v37 = vmul.f32 %v7840_v7, %v7840_v7  ;;  %v2236_v31 = vld [vmem:[%s9238_s15 + $0x80] sm:$0xff] }
 0xc65   :  { %v5925_v43 = vpack.c.bf16 %v2237_v30, %v2236_v31 }
 0xc66   :  { %v1994_v10 = vmul.f32 %v7845_v3, %v1986_v56  ;;  %v1977_v21 = vsel %vm115_vm0, %v1973_v37, 0.0 }
 0xc67   :  { %1978 = vadd.xlane.f32.xlu1 %v1977_v21  ;;  %5926 = vmatprep.subr.bf16.mxu1 %v5925_v43 }
 0xc68   :  { %4765 = vmatmul.mubr.msk.f32.vlgmr.msra.gmra.mrb[34].mxu1 %vm115_vm0, %v1994_v10  ;;  %4767 = vmatmul.mubr.msk.f32.vlgmr.msra.gmra.mrb[34].mxu0 %vm115_vm0, %v1994_v10 }
 0xc69   :  { %2104 = vmatprep.mubr.f32.mxu1 %v9255_v47  ;;  %2181 = vmatprep.mubr.f32.mxu0 %v9255_v47 }
 0xc6a   :  { %5928 = vmatpush3.bf16.msra.mxu1 %v5927_v0 }
 0xc6b   :  { %5930 = vmatprep.subr.bf16.mxu1 %v5929_v60 }
 0xc6e   :  { %5932 = vmatpush3.bf16.msra.mxu1 %v5931_v28 }
 0xc6f   :  { %5934 = vmatprep.subr.bf16.mxu1 %v5933_v54 }
 0xc72   :  { %5936 = vmatpush3.bf16.msra.mxu1 %v5935_v63 }
 0xc73   :  { %5938 = vmatprep.subr.bf16.mxu1 %v5937_v17 }
 0xc76   :  { %5940 = vmatpush3.bf16.msra.mxu1 %v5939_v15 }
 0xc77   :  { %5942 = vmatprep.subr.bf16.mxu1 %v5941_v53 }
 0xc7a   :  { %5944 = vmatpush3.bf16.msra.mxu1 %v5943_v50 }
 0xc7b   :  { %5946 = vmatprep.subr.bf16.mxu1 %v5945_v36 }
 0xc7e   :  { %5948 = vmatpush3.bf16.msra.mxu1 %v5947_v45 }
 0xc7f   :  { %5950 = vmatprep.subr.bf16.mxu1 %v5949_v25 }
 0xc82   :  { %5952 = vmatpush3.bf16.msra.mxu1 %v5951_v49 }
 0xc83   :  { %5954 = vmatprep.subr.bf16.mxu1 %v5953_v11  ;;  %v4776_v11 = vld [vmem:[%s9231_s8 + $0x148] sm:$0xff] }
 0xc84   :  { %v5957_v18 = vpack.c.bf16 %v4781_v38, %v4776_v11  ;;  %v4798_v38 = vld [vmem:[%s9231_s8 + $0x1f8] sm:$0xff] }
 0xc86   :  { %5956 = vmatpush3.bf16.msra.mxu1 %v5955_v40  ;;  %v4775_v40 = vld [vmem:[%s9231_s8 + $0x140] sm:$0xff]  ;;  %5958 = vmatprep.subr.bf16.mxu0 %v5957_v18 }
 0xc87   :  { %v4803_v18 = vld [vmem:[%s9231_s8 + $0x220] sm:$0xff] }
 0xcf4   :  { %v1979_v24 = vpop.xlane.xlu1 %1978 }
 0xcf5   :  { %v1981_v33 = vmul.f32 0.015625, %v1979_v24 }
 0xcf7   :  { %v1983_v56 = vadd.f32 1e-05, %v1981_v33  ;;  %v4786_v33 = vld [vmem:[%s9231_s8 + $0x198] sm:$0xff] }
 0xcf9   :  { %6370 = vrsqrt.f32 %v1983_v56  ;;  %v4791_v56 = vld [vmem:[%s9231_s8 + $0x1c0] sm:$0xff] }
 0xd03   :  { %v6371_v37 = vpop.eup %6370 }
 0xd04   :  { %v1987_v10 = vmul.f32 %v6371_v37, %v7840_v7  ;;  %v5961_v37 = vpack.c.bf16 %v4791_v56, %v4786_v33  ;;  %v4797_v33 = vld [vmem:[%s9231_s8 + $0x1f0] sm:$0xff]  ;;  %v4802_v56 = vld [vmem:[%s9231_s8 + $0x218] sm:$0xff] }
 0xd06   :  { %v1995_v21 = vmul.f32 %v7845_v3, %v1987_v10  ;;  %v4785_v10 = vld [vmem:[%s9231_s8 + $0x190] sm:$0xff] }
 0xd08   :  { %4766 = vmatmul.mubr.msk.f32.gmra.mrb[36].mxu1 %vm115_vm0, %v1995_v21  ;;  %4768 = vmatmul.mubr.msk.f32.gmra.mrb[36].mxu0 %vm115_vm0, %v1995_v21  ;;  %v4790_v21 = vld [vmem:[%s9231_s8 + $0x1b8] sm:$0xff] }
 0xd09   :  { %2476 = vmatprep.mubr.f32.mxu0 %v9255_v47 }
 0xd3b   :  { %v2100_v31 = vpop.f32.mrb[34].mxu1  ;;  %v2177_v30 = vpop.f32.mrb[34].mxu0 }
 0xd3c   :  { %v4769_v43 = vmul.f32 -1.442695, %v2177_v30  ;;  %v2102_v55 = vpop.f32.mrb[35].mxu1  ;;  %v2179_v23 = vpop.f32.mrb[35].mxu0 }
 0xd3d   :  { %v4770_v0 = vmul.f32 -1.442695, %v2179_v23 }
 0xd3e   :  { %6372 = vpow2.f32 %v4769_v43  ;;  %v4801_v43 = vld [vmem:[%s9231_s8 + $0x210] sm:$0xff] }
 0xd3f   :  { %6374 = vpow2.f32 %v4770_v0  ;;  %v4800_v0 = vld [vmem:[%s9231_s8 + $0x208] sm:$0xff] }
 0xd48   :  { %v6373_v46 = vpop.eup %6372 }
 0xd49   :  { %v6375_v48 = vpop.eup %6374  ;;  %v2200_v60 = vadd.f32 1.0, %v6373_v46 }
 0xd4a   :  { %v2201_v7 = vadd.f32 1.0, %v6375_v48  ;;  %v4806_v48 = vld [vmem:[%s9231_s8 + $0x238] sm:$0xff] }
 0xd4b   :  { %6376 = vrcp.f32 %v2200_v60  ;;  %v4811_v60 = vld [vmem:[%s9231_s8 + $0x260] sm:$0xff] }
 0xd4c   :  { %6378 = vrcp.f32 %v2201_v7  ;;  %v5969_v7 = vpack.c.bf16 %v4811_v60, %v4806_v48 }
 0xd55   :  { %v6377_v3 = vpop.eup %6376 }
 0xd56   :  { %v6379_v39 = vpop.eup %6378  ;;  %v2212_v61 = vmul.f32 %v6377_v3, %v2177_v30  ;;  %v4796_v30 = vld [vmem:[%s9231_s8 + $0x1e8] sm:$0xff]  ;;  %v4805_v3 = vld [vmem:[%s9231_s8 + $0x230] sm:$0xff] }
 0xd57   :  { %v2213_v28 = vmul.f32 %v6379_v39, %v2179_v23  ;;  %v4795_v23 = vld [vmem:[%s9231_s8 + $0x1e0] sm:$0xff]  ;;  %v4810_v39 = vld [vmem:[%s9231_s8 + $0x258] sm:$0xff] }
 0xd58   :  { %v2216_v20 = vmul.f32 %v2212_v61, %v2100_v31  ;;  %v5963_v31 = vpack.c.bf16 %v4790_v21, %v4785_v10  ;;  %v5967_v46 = vpack.c.bf16 %v4800_v0, %v4795_v23  ;;  %v5971_v61 = vpack.c.bf16 %v4810_v39, %v4805_v3  ;;  %v4808_v21 = vld [vmem:[%s9231_s8 + $0x248] sm:$0xff] }
 0xd59   :  { %v2217_v27 = vmul.f32 %v2213_v28, %v2102_v55  ;;  %v5965_v55 = vpack.c.bf16 %v4801_v43, %v4796_v30  ;;  %v5983_v10 = vpack.c.bf16 %v4802_v56, %v4797_v33  ;;  %v4807_v43 = vld [vmem:[%s9231_s8 + $0x240] sm:$0xff] }
 0xd5b   :  { %2316 = vmatprep.mubr.f32.mxu1 %v2217_v27 }
 0xd5c   :  { %2317 = vmatmul.mubr.f32.vlgmr.msra.gmra.mrb[38].mxu1 %v2216_v20 }
 0xddb   :  { %v2106_v54 = vpop.f32.mrb[36].mxu1  ;;  %v2183_v59 = vpop.f32.mrb[36].mxu0 }
 0xddc   :  { %v4771_v5 = vmul.f32 -1.442695, %v2183_v59  ;;  %v2108_v63 = vpop.f32.mrb[37].mxu1  ;;  %v2185_v13 = vpop.f32.mrb[37].mxu0 }
 0xddd   :  { %v4772_v8 = vmul.f32 -1.442695, %v2185_v13 }
 0xdde   :  { %6380 = vpow2.f32 %v4771_v5 }
 0xddf   :  { %6382 = vpow2.f32 %v4772_v8 }
 0xde8   :  { %v6381_v17 = vpop.eup %6380 }
 0xde9   :  { %v6383_v6 = vpop.eup %6382  ;;  %v2202_v57 = vadd.f32 1.0, %v6381_v17 }
 0xdea   :  { %v2203_v15 = vadd.f32 1.0, %v6383_v6 }
 0xdeb   :  { %6384 = vrcp.f32 %v2202_v57 }
 0xdec   :  { %6386 = vrcp.f32 %v2203_v15  ;;  %v4779_v15 = vld [vmem:[%s9231_s8 + $0x160] sm:$0xff] }
 0xdf5   :  { %v6385_v16 = vpop.eup %6384 }
 0xdf6   :  { %v6387_v14 = vpop.eup %6386  ;;  %v2214_v53 = vmul.f32 %v6385_v16, %v2183_v59  ;;  %v4784_v16 = vld [vmem:[%s9231_s8 + $0x188] sm:$0xff] }
 0xdf7   :  { %v2215_v12 = vmul.f32 %v6387_v14, %v2185_v13  ;;  %v8023_v13 = vld [vmem:[%s9230_s7 + $0x1] ss:$0 sm:$0xff]  ;;  %v5989_v14 = vpack.c.bf16 %v4784_v16, %v4779_v15  ;;  %v6528_v15 = vld [vmem:[%s9227_s4 + $0x8] sm:$0xff] }
 0xdf8   :  { %v2218_v51 = vmul.f32 %v2214_v53, %v2106_v54  ;;  %v4778_v53 = vld [vmem:[%s9231_s8 + $0x158] sm:$0xff] }
 0xdf9   :  { %v2219_v50 = vmul.f32 %v2215_v12, %v2108_v63  ;;  %5990 = vmatprep.subr.bf16.mxu1 %v5989_v14  ;;  %v4783_v12 = vld [vmem:[%s9231_s8 + $0x180] sm:$0xff] }
 0xdfa   :  { %5992 = vmatpush3.bf16.msra.mxu1 %v5989_v14  ;;  %v6529_v14 = vld [vmem:[%s9228_s5 + $0x8] sm:$0xff] }
 0xdfb   :  { %2321 = vmatprep.mubr.f32.mxu1 %v2219_v50  ;;  %v5973_v50 = vpack.c.bf16 %v4783_v12, %v4778_v53 }
 0xdfc   :  { %2322 = vmatmul.mubr.f32.gmra.mrb[40].mxu1 %v2218_v51  ;;  %v4789_v51 = vld [vmem:[%s9231_s8 + $0x1b0] sm:$0xff] }
 0xe2f   :  { %v5212_v62 = vpop.f32.mrb[38].mxu1 }
 0xe30   :  { %v5213_v58 = vpop.f32.mrb[39].mxu1 }
 0xe31   :  { %v5214_v36 = vadd.f32 %v5213_v58, %v5212_v62  ;;  %v4794_v62 = vld [vmem:[%s9231_s8 + $0x1d8] sm:$0xff]  ;;  %v4777_v58 = vld [vmem:[%s9231_s8 + $0x150] sm:$0xff] }
 0xe33   :  { %v7958_v9 = vadd.f32 %v5214_v36, %v7726_v42  ;;  %v4782_v36 = vld [vmem:[%s9231_s8 + $0x178] sm:$0xff] }
 0xe35   :  { %v2331_v44 = vsel %vm115_vm0, %v7958_v9, 0.0 }
 0xe36   :  { %2332 = vadd.xlane.f32.xlu0 %v2331_v44  ;;  %v5993_v44 = vpack.c.bf16 %v4794_v62, %v4789_v51  ;;  %v6530_v51 = vld [vmem:[%s9227_s4] sm:$0xff] }
 0xe37   :  { %v6531_v62 = vld [vmem:[%s9228_s5] sm:$0xff] }
 0xe38   :  { %5994 = vmatprep.subr.bf16.mxu1 %v5993_v44 }
 0xe39   :  { %5996 = vmatpush3.bf16.msra.mxu1 %v5993_v44 }
 0xec3   :  { %v2333_v45 = vpop.xlane.xlu0 %2332 }
 0xec4   :  { %v2337_v1 = vmul.f32 0.015625, %v2333_v45  ;;  %v5975_v45 = vpack.c.bf16 %v4782_v36, %v4777_v58 }
 0xec6   :  { %v2339_v52 = vsub.f32 %v7958_v9, %v2337_v1  ;;  %v4788_v1 = vld [vmem:[%s9231_s8 + $0x1a8] sm:$0xff] }
 0xec8   :  { %v2341_v25 = vmul.f32 %v2339_v52, %v2339_v52 }
 0xeca   :  { %v2343_v4 = vsel %vm115_vm0, %v2341_v25, 0.0  ;;  %v4799_v25 = vld [vmem:[%s9231_s8 + $0x200] sm:$0xff] }
 0xecb   :  { %2344 = vadd.xlane.f32.xlu0 %v2343_v4 }
 0xecf   :  { %v5215_v22 = vpop.f32.mrb[40].mxu1 }
 0xed0   :  { %v5216_v49 = vpop.f32.mrb[41].mxu1 }
 0xed1   :  { %v5217_v2 = vadd.f32 %v5216_v49, %v5215_v22  ;;  %v4804_v22 = vld [vmem:[%s9231_s8 + $0x228] sm:$0xff]  ;;  %v4787_v49 = vld [vmem:[%s9231_s8 + $0x1a0] sm:$0xff] }
 0xed3   :  { %v7965_v19 = vadd.f32 %v5217_v2, %v7739_v41  ;;  %v4780_v41 = vld [vmem:[%s9231_s8 + $0x168] sm:$0xff] }
 0xed4   :  { %v5959_v24 = vpack.c.bf16 %v4780_v41, %v4775_v40  ;;  %v4792_v2 = vld [vmem:[%s9231_s8 + $0x1c8] sm:$0xff]  ;;  %v4809_v40 = vld [vmem:[%s9231_s8 + $0x250] sm:$0xff]  ;;  %v5981_v41 = vpack.c.bf16 %v4803_v18, %v4798_v38 }
 0xed5   :  { %v2334_v42 = vsel %vm115_vm0, %v7965_v19, 0.0  ;;  %v5979_v11 = vpack.c.bf16 %v4792_v2, %v4787_v49  ;;  %v6534_v2 = vld [vmem:[%s9227_s4 + $0x10] sm:$0xff] }
 0xed6   :  { %2335 = vadd.xlane.f32.xlu1 %v2334_v42  ;;  %5960 = vmatpush1.bf16.msra.mxu0 %v5959_v24  ;;  %v5997_v42 = vpack.c.bf16 %v4804_v22, %v4799_v25  ;;  %v4814_v24 = vld [vmem:[%s9231_s8 + $0x278] sm:$0xff] }
 0xed7   :  { %5962 = vmatprep.subr.bf16.mxu0 %v5961_v37  ;;  %v6001_v37 = vpack.c.bf16 %v4814_v24, %v4809_v40  ;;  %v6533_v25 = vld [vmem:[%s9228_s5 + $0x18] sm:$0xff] }
 0xed8   :  { %5998 = vmatprep.subr.bf16.mxu1 %v5997_v42 }
 0xed9   :  { %6000 = vmatpush3.bf16.msra.mxu1 %v5997_v42 }
 0xeda   :  { %5964 = vmatpush1.bf16.msra.mxu0 %v5963_v31  ;;  %6002 = vmatprep.subr.bf16.mxu1 %v6001_v37  ;;  %v4813_v31 = vld [vmem:[%s9231_s8 + $0x270] sm:$0xff] }
 0xedb   :  { %5966 = vmatprep.subr.bf16.mxu0 %v5965_v55  ;;  %v5985_v30 = vpack.c.bf16 %v4813_v31, %v4808_v21  ;;  %v4812_v55 = vld [vmem:[%s9231_s8 + $0x268] sm:$0xff] }
 0xedc   :  { %v5987_v23 = vpack.c.bf16 %v4812_v55, %v4807_v43  ;;  %v6537_v55 = vld [vmem:[%s9226_s3 + $0x8] sm:$0xff] }
 0xedd   :  { %6004 = vmatpush3.bf16.msra.mxu1 %v6001_v37 }
 0xede   :  { %5968 = vmatpush1.bf16.msra.mxu0 %v5967_v46  ;;  %6022 = vmatprep.subr.bf16.mxu1 %v6855_v26 }
 0xedf   :  { %5970 = vmatprep.subr.bf16.mxu0 %v5969_v7 }
 0xee2   :  { %5972 = vmatpush1.bf16.msra.mxu0 %v5971_v61 }
 0xee3   :  { %5974 = vmatprep.subr.bf16.mxu0 %v5973_v50 }
 0xf58   :  { %v2345_v28 = vpop.xlane.xlu0 %2344 }
 0xf59   :  { %v2349_v20 = vmul.f32 0.015625, %v2345_v28 }
 0xf5b   :  { %v2351_v27 = vadd.f32 1e-05, %v2349_v20 }
 0xf5d   :  { %6388 = vrsqrt.f32 %v2351_v27 }
 0xf63   :  { %v2336_v54 = vpop.xlane.xlu1 %2335 }
 0xf64   :  { %v2338_v59 = vmul.f32 0.015625, %v2336_v54 }
 0xf66   :  { %v8018_v5 = vsub.f32 %v7965_v19, %v2338_v59 }
 0xf67   :  { %v6389_v63 = vpop.eup %6388 }
 0xf68   :  { %v2355_v8 = vmul.f32 %v6389_v63, %v2339_v52  ;;  %v2342_v17 = vmul.f32 %v8018_v5, %v8018_v5  ;;  %v4793_v52 = vld [vmem:[%s9231_s8 + $0x1d0] sm:$0xff]  ;;  %v8168_v63 = vld [vmem:[%s9232_s9 + $0x8] sm:$0xff] }
 0xf69   :  { %v5977_v4 = vpack.c.bf16 %v4793_v52, %v4788_v1  ;;  %v6532_v1 = vld [vmem:[%s9227_s4 + $0x18] sm:$0xff] }
 0xf6a   :  { %v8028_v6 = vmul.f32 %v8023_v13, %v2355_v8  ;;  %v2346_v57 = vsel %vm115_vm0, %v2342_v17, 0.0 }
 0xf6b   :  { %2347 = vadd.xlane.f32.xlu1 %v2346_v57 }
 0xf6c   :  { %4815 = vmatmul.mubr.msk.f32.vlgmr.msra.gmra.mrb[38].mxu0 %vm115_vm0, %v8028_v6  ;;  %5584 = vmatprep.mubr.msk.f32.mxu1 %vm115_vm0, %v8028_v6 }
 0xf6d   :  { %2482 = vmatprep.mubr.f32.mxu0 %v9255_v47  ;;  %5976 = vmatpush1.bf16.msra.mxu0 %v5975_v45 }
 0xf6e   :  { %5978 = vmatprep.subr.bf16.mxu0 %v5977_v4 }
 0xf71   :  { %5980 = vmatpush1.bf16.msra.mxu0 %v5979_v11  ;;  %v6535_v11 = vld [vmem:[%s9228_s5 + $0x10] sm:$0xff] }
 0xf72   :  { %5982 = vmatprep.subr.bf16.mxu0 %v5981_v41 }
 0xf75   :  { %5984 = vmatpush1.bf16.msra.mxu0 %v5983_v10 }
 0xf76   :  { %5986 = vmatprep.subr.bf16.mxu0 %v5985_v30  ;;  %v6536_v30 = vld [vmem:[%s9251_s22 + $0x8] sm:$0xff] }
 0xf79   :  { %5988 = vmatpush1.bf16.msra.mxu0 %v5987_v23 }
 0xf7a   :  { %6006 = vmatprep.subr.bf16.mxu0 %v6855_v26 }
 0xff8   :  { %v2348_v0 = vpop.xlane.xlu1 %2347 }
 0xff9   :  { %v2350_v46 = vmul.f32 0.015625, %v2348_v0 }
 0xffb   :  { %v2352_v48 = vadd.f32 1e-05, %v2350_v46  ;;  %v6538_v46 = vld [vmem:[%s9251_s22] sm:$0xff]  ;;  %s6598_s22 = smov [#allocation2]  }
 0xffd   :  { %6390 = vrsqrt.f32 %v2352_v48 }
0x1007   :  { %v6391_v60 = vpop.eup %6390 }
0x1008   :  { %v2356_v7 = vmul.f32 %v6391_v60, %v8018_v5  ;;  %v6539_v60 = vld [vmem:[%s9226_s3] sm:$0xff] }
0x100a   :  { %v2364_v3 = vmul.f32 %v8023_v13, %v2356_v7  ;;  %v3105_v13 = vmul.f32 %v8168_v63, %v8168_v63 }
0x100c   :  { %4816 = vmatmul.mubr.msk.f32.gmra.mrb[40].mxu0 %vm115_vm0, %v2364_v3  ;;  %5585 = vmatmul.mubr.msk.f32.vlgmr.msra.gmra.mrb[42].mxu1 %vm115_vm0, %v2364_v3  ;;  %v3109_v8 = vsel %vm115_vm0, %v3105_v13, 0.0 }
0x100d   :  { %2553 = vmatprep.mubr.f32.mxu0 %v9255_v47  ;;  %6024 = vmatpush3.bf16.msra.mxu1 %v6855_v26 }
0x100e   :  { %6026 = vmatprep.subr.bf16.mxu1 %v6867_v29 }
0x1010   :  { %4817 = vmatmul.mubr.msk.f32.vlgmr.msra.gmra.mrb[42].mxu0 %vm115_vm0, %v8028_v6 }
0x1011   :  { %2559 = vmatprep.mubr.f32.mxu0 %v9255_v47  ;;  %6028 = vmatpush3.bf16.msra.mxu1 %v6867_v29 }
0x1012   :  { %6030 = vmatprep.subr.bf16.mxu1 %v6876_v32  ;;  %6008 = vmatpush3.bf16.msra.mxu0 %v6855_v26 }
0x1013   :  { %6010 = vmatprep.subr.bf16.mxu0 %v6867_v29 }
0x1014   :  { %4818 = vmatmul.mubr.msk.f32.gmra.mrb[44].mxu0 %vm115_vm0, %v2364_v3 }
0x1015   :  { %6032 = vmatpush3.bf16.msra.mxu1 %v6876_v32 }
0x1016   :  { %6034 = vmatprep.subr.bf16.mxu1 %v6889_v35  ;;  %6012 = vmatpush3.bf16.msra.mxu0 %v6867_v29 }
0x1017   :  { %6014 = vmatprep.subr.bf16.mxu0 %v6876_v32 }
0x1019   :  { %6036 = vmatpush3.bf16.msra.mxu1 %v6889_v35 }
0x101a   :  { %6016 = vmatpush3.bf16.msra.mxu0 %v6876_v32 }
0x101b   :  { %6018 = vmatprep.subr.bf16.mxu0 %v6889_v35 }
0x101e   :  { %6020 = vmatpush3.bf16.msra.mxu0 %v6889_v35 }
0x103f   :  { %v2478_v26 = vpop.f32.mrb[38].mxu0 }
0x1040   :  { %2729 = vrot.lane.b32.xlu0 %v2478_v26, %s6597_s6  ;;  %v2480_v39 = vpop.f32.mrb[39].mxu0  ;;  %5622 = vmatprep.mubr.msk.f32.mxu1 %vm115_vm0, %v2478_v26  ;;  %v2760_v50 = vmul.f32 %v6530_v51, %v2478_v26 }
0x1041   :  { %2733 = vrot.lane.b32.xlu1 %v2480_v39, %s6597_s6  ;;  %v2762_v42 = vmul.f32 %v6534_v2, %v2480_v39 }
0x10b2   :  { %v2730_v61 = vpop.permute.xlu0 %2729 }
0x10b3   :  { %5623 = vmatmul.mubr.msk.f32.vlgmr.msra.gmra.mrb[44].mxu1 %vm115_vm0, %v2730_v61  ;;  %v2734_v29 = vpop.permute.xlu1 %2733  ;;  %v2761_v16 = vmul.f32 %v6528_v15, %v2730_v61  ;;  %v6540_v15 = vld [vmem:[%s9227_s4 + $0x28] sm:$0xff] }
0x10b4   :  { %5625 = vmatprep.mubr.msk.f32.mxu1 %vm115_vm0, %v2480_v39  ;;  %v2763_v52 = vmul.f32 %v6532_v1, %v2734_v29 }
0x10b7   :  { %5626 = vmatmul.mubr.msk.f32.gmra.mrb[46].mxu1 %vm115_vm0, %v2734_v29 }
0x10df   :  { %v8139_v32 = vpop.f32.mrb[40].mxu0  ;;  %v8141_v28 = vpop.f32.mrb[42].mxu1 }
0x10e0   :  { %v8143_v35 = vpop.f32.mrb[41].mxu0  ;;  %v8145_v20 = vpop.f32.mrb[43].mxu1  ;;  %v2642_v43 = vmul.f32 %v6536_v30, %v8141_v28 }
0x10e1   :  { %5603 = vmatprep.mubr.msk.f32.mxu0 %vm115_vm0, %v8145_v20  ;;  %v2641_v48 = vmul.f32 %v6538_v46, %v8145_v20 }
0x10e2   :  { %5604 = vmatmul.mubr.msk.f32.vlgmr.msra.gmra.mrb[46].mxu0 %vm115_vm0, %v8141_v28 }
0x10e3   :  { %v8151_v27 = vpop.f32.mrb[42].mxu0 }
0x10e4   :  { %2737 = vrot.lane.b32.xlu1 %v8151_v27, %s6597_s6  ;;  %v8155_v54 = vpop.f32.mrb[43].mxu0  ;;  %5628 = vmatprep.mubr.msk.f32.mxu1 %vm115_vm0, %v8151_v27 }
0x10e7   :  { %v8159_v59 = vpop.f32.mrb[44].mxu0 }
0x10e8   :  { %2741 = vrot.lane.b32.xlu1 %v8155_v54, %s6597_s6  ;;  %v8163_v5 = vpop.f32.mrb[45].mxu0 }
0x110c   :  { %3110 = vadd.xlane.f32.xlu1 %v3109_v8 }
0x1156   :  { %v8173_v17 = vpop.permute.xlu1 %2737 }
0x1157   :  { %5629 = vmatmul.mubr.msk.f32.gmra.mrb[48].mxu1 %vm115_vm0, %v8173_v17 }
0x1158   :  { %5631 = vmatprep.mubr.msk.f32.mxu1 %vm115_vm0, %v8155_v54 }
0x115a   :  { %v8179_v6 = vpop.permute.xlu1 %2741 }
0x115b   :  { %5632 = vmatmul.mubr.msk.f32.gmra.mrb[50].mxu1 %vm115_vm0, %v8179_v6 }
0x115c   :  { %5634 = vmatprep.mubr.msk.f32.mxu1 %vm115_vm0, %v8139_v32 }
0x1186   :  { %v5624_v57 = vpop.f32.mrb[44].mxu1 }
0x1187   :  { %v2954_v53 = vmul.f32 %v6529_v14, %v5624_v57  ;;  %v2874_v12 = vpop.f32.mrb[45].mxu1  ;;  %v6541_v14 = vld [vmem:[%s9228_s5 + $0x28] sm:$0xff] }
0x1188   :  { %v2953_v58 = vmul.f32 %v6531_v62, %v2874_v12 }
0x1189   :  { %v8197_v36 = vadd.f32 %v2954_v53, %v2761_v16  ;;  %v2765_v16 = vmul.f32 %v6540_v15, %v8173_v17 }
0x118a   :  { %v2969_v44 = vadd.f32 %v2953_v58, %v2760_v50  ;;  %v5627_v45 = vpop.f32.mrb[46].mxu1  ;;  %v6542_v50 = vld [vmem:[%s9227_s4 + $0x20] sm:$0xff] }
0x118b   :  { %v2956_v4 = vmul.f32 %v6533_v25, %v5627_v45  ;;  %v2884_v22 = vpop.f32.mrb[47].mxu1  ;;  %v2986_v49 = vmul.f32 %v8197_v36, %v8197_v36  ;;  %v2764_v62 = vmul.f32 %v6542_v50, %v8151_v27  ;;  %v6543_v58 = vld [vmem:[%s9228_s5 + $0x20] sm:$0xff]  ;;  %v6545_v27 = vld [vmem:[%s9228_s5 + $0x38] sm:$0xff] }
0x118c   :  { %v2955_v38 = vmul.f32 %v6535_v11, %v2884_v22  ;;  %v2985_v41 = vmul.f32 %v2969_v44, %v2969_v44 }
0x118d   :  { %v8213_v18 = vadd.f32 %v2956_v4, %v2763_v52  ;;  %v3004_v40 = vsel %vm115_vm0, %v2986_v49, 0.0  ;;  %v6544_v4 = vld [vmem:[%s9227_s4 + $0x38] sm:$0xff] }
0x118e   :  { %v8216_v24 = vadd.f32 %v2955_v38, %v2762_v42  ;;  %3005 = vadd.xlane.f32.xlu0 %v3004_v40  ;;  %v3001_v56 = vsel %vm115_vm0, %v2985_v41, 0.0  ;;  %v2767_v22 = vmul.f32 %v6544_v4, %v8179_v6  ;;  %v6546_v42 = vld [vmem:[%s9227_s4 + $0x30] sm:$0xff] }
0x118f   :  { %v2988_v33 = vmul.f32 %v8213_v18, %v8213_v18  ;;  %v2766_v11 = vmul.f32 %v6546_v42, %v8155_v54  ;;  %v6547_v6 = vld [vmem:[%s9228_s5 + $0x30] sm:$0xff] }
0x1190   :  { %v2987_v10 = vmul.f32 %v8216_v24, %v8216_v24 }
0x1191   :  { %v3010_v37 = vsel %vm115_vm0, %v2988_v33, 0.0 }
0x1192   :  { %3002 = vadd.xlane.f32.xlu0 %v3001_v56  ;;  %3011 = vadd.xlane.f32.xlu1 %v3010_v37  ;;  %v3007_v21 = vsel %vm115_vm0, %v2987_v10, 0.0 }
0x1196   :  { %3008 = vadd.xlane.f32.xlu0 %v3007_v21 }
0x1199   :  { %v3111_v30 = vpop.xlane.xlu1 %3110 }
0x11b5   :  { %v5605_v31 = vpop.f32.mrb[46].mxu0 }
0x11b6   :  { %v2725_v23 = vmul.f32 %v6537_v55, %v5605_v31  ;;  %v2715_v0 = vpop.f32.mrb[47].mxu0 }
0x11b7   :  { %v2724_v7 = vmul.f32 %v6539_v60, %v2715_v0 }
0x11b8   :  { %v8239_v3 = vadd.f32 %v2725_v23, %v2642_v43  ;;  %v3113_v43 = vmax.f32 %v3111_v30, 1e-24 }
0x11b9   :  { %v8241_v26 = vadd.f32 %v2724_v7, %v2641_v48 }
0x11bb   :  { %v3104_v39 = vmul.f32 %v8241_v26, %v8241_v26 }
0x11bd   :  { %v3106_v61 = vsel %vm115_vm0, %v3104_v39, 0.0 }
0x11be   :  { %3107 = vadd.xlane.f32.xlu0 %v3106_v61 }
0x121b   :  { %v3006_v29 = vpop.xlane.xlu0 %3005 }
0x121c   :  { %v3050_v48 = vmax.f32 %v3006_v29, 1e-24 }
0x121f   :  { %v3003_v13 = vpop.xlane.xlu0 %3002  ;;  %v3012_v29 = vpop.xlane.xlu1 %3011 }
0x1220   :  { %v3049_v8 = vmax.f32 %v3003_v13, 1e-24 }
0x1222   :  { %6392 = vrsqrt.f32 %v3049_v8 }
0x1223   :  { %v3009_v55 = vpop.xlane.xlu0 %3008  ;;  %6394 = vrsqrt.f32 %v3113_v43 }
0x122a   :  { %v5630_v57 = vpop.f32.mrb[48].mxu1 }
0x122b   :  { %v2958_v53 = vmul.f32 %v6541_v14, %v5630_v57  ;;  %v2894_v12 = vpop.f32.mrb[49].mxu1 }
0x122c   :  { %v6393_v51 = vpop.eup %6392  ;;  %v2957_v45 = vmul.f32 %v6543_v58, %v2894_v12  ;;  %v3052_v12 = vmax.f32 %v3012_v29, 1e-24 }
0x122d   :  { %v8260_v1 = vadd.f32 %v2958_v53, %v2765_v16  ;;  %v3081_v17 = vmul.f32 %v6393_v51, %v2969_v44  ;;  %v6395_v46 = vpop.eup %6394  ;;  %v3051_v16 = vmax.f32 %v3009_v55, 1e-24  ;;  %v6551_v55 = vld [vmem:[%s9227_s4 + $0x58] sm:$0xff] }
0x122e   :  { %v8262_v52 = vadd.f32 %v2957_v45, %v2764_v62  ;;  %v5633_v25 = vpop.f32.mrb[50].mxu1  ;;  %v3117_v60 = vmul.f32 %v6395_v46, %v8168_v63 }
0x122f   :  { %v2960_v49 = vmul.f32 %v6545_v27, %v5633_v25  ;;  %v2904_v2 = vpop.f32.mrb[51].mxu1  ;;  %5650 = vmatprep.mubr.msk.f32.mxu0 %vm115_vm0, %v3081_v17  ;;  %v2990_v44 = vmul.f32 %v8260_v1, %v8260_v1 }
0x1230   :  { %v2959_v38 = vmul.f32 %v6547_v6, %v2904_v2  ;;  %v2989_v40 = vmul.f32 %v8262_v52, %v8262_v52  ;;  %v8305_v61 = vmul.f32 16.0, %v3117_v60 }
0x1231   :  { %v8283_v41 = vadd.f32 %v2960_v49, %v2767_v22  ;;  %v3016_v33 = vsel %vm115_vm0, %v2990_v44, 0.0 }
0x1232   :  { %v8286_v56 = vadd.f32 %v2959_v38, %v2766_v11  ;;  %3017 = vadd.xlane.f32.xlu1 %v3016_v33  ;;  %v3013_v37 = vsel %vm115_vm0, %v2989_v40, 0.0 }
0x1233   :  { %3014 = vadd.xlane.f32.xlu0 %v3013_v37  ;;  %v2992_v54 = vmul.f32 %v8283_v41, %v8283_v41 }
0x1234   :  { %v2991_v10 = vmul.f32 %v8286_v56, %v8286_v56 }
0x1235   :  { %v3022_v21 = vsel %vm115_vm0, %v2992_v54, 0.0 }
0x1236   :  { %3023 = vadd.xlane.f32.xlu1 %v3022_v21  ;;  %v3019_v31 = vsel %vm115_vm0, %v2991_v10, 0.0  ;;  %v6550_v21 = vld [vmem:[%s9228_s5 + $0x40] sm:$0xff] }
0x1237   :  { %3020 = vadd.xlane.f32.xlu0 %v3019_v31 }
0x1247   :  { %2749 = vrot.lane.b32.xlu1 %v8143_v35, %s6597_s6 }
0x124b   :  { %v3108_v23 = vpop.xlane.xlu0 %3107  ;;  %2753 = vrot.lane.b32.xlu1 %v8159_v59, %s6597_s6 }
0x124c   :  { %v3112_v0 = vmax.f32 %v3108_v23, 1e-24 }
0x124d   :  { %2745 = vrot.lane.b32.xlu0 %v8139_v32, %s6597_s6 }
0x124e   :  { %6396 = vrsqrt.f32 %v3112_v0  ;;  %v6552_v0 = vld [vmem:[%s9228_s5 + $0x58] sm:$0xff] }
0x124f   :  { %2757 = vrot.lane.b32.xlu1 %v8163_v5, %s6597_s6  ;;  %6398 = vrsqrt.f32 %v3050_v48 }
0x1250   :  { %6400 = vrsqrt.f32 %v3051_v16  ;;  %v6557_v16 = vld [vmem:[%s9227_s4 + $0x60] sm:$0xff] }
0x1251   :  { %6402 = vrsqrt.f32 %v3052_v12 }
0x1258   :  { %v6397_v7 = vpop.eup %6396 }
0x1259   :  { %v3116_v39 = vmul.f32 %v6397_v7, %v8241_v26  ;;  %v6399_v63 = vpop.eup %6398  ;;  %v6554_v7 = vld [vmem:[%s9228_s5 + $0x50] sm:$0xff] }
0x125a   :  { %v3082_v26 = vmul.f32 %v6399_v63, %v8197_v36  ;;  %v6401_v25 = vpop.eup %6400 }
0x125b   :  { %v3118_v13 = vmul.f32 16.0, %v3116_v39  ;;  %v6403_v4 = vpop.eup %6402  ;;  %v3083_v27 = vmul.f32 %v6401_v25, %v8216_v24 }
0x125c   :  { %v3084_v2 = vmul.f32 %v6403_v4, %v8213_v18 }
0x125d   :  { %v6037_v8 = vpack.c.bf16 %v8305_v61, %v3118_v13 }
0x125f   :  { %6039 = vmatprep.subr.msk.bf16.mxu0 %vm7077_vm1, %v6037_v8  ;;  %6201 = vmatprep.subr.msk.bf16.mxu1 %vm7077_vm1, %v6037_v8 }
0x1260   :  { %6042 = vmatpush3.bf16.xpose.msk.msra.mxu0 %vm7077_vm1, %v6037_v8  ;;  %6202 = vmatpush3.bf16.xpose.msk.msra.mxu1 %vm7077_vm1, %v6037_v8 }
0x1267   :  { %5651 = vmatmul.mubr.msk.f32.vlgmr.msra.gmra.mrb[48].mxu0 %vm115_vm0, %v3082_v26  ;;  %v6555_v26 = vld [vmem:[%s9227_s4 + $0x68] sm:$0xff] }
0x12bf   :  { %v3018_v57 = vpop.xlane.xlu1 %3017 }
0x12c0   :  { %v3015_v15 = vpop.xlane.xlu0 %3014  ;;  %v3054_v58 = vmax.f32 %v3018_v57, 1e-24  ;;  %v6556_v57 = vld [vmem:[%s9228_s5 + $0x68] sm:$0xff] }
0x12c1   :  { %v3053_v51 = vmax.f32 %v3015_v15, 1e-24 }
0x12c3   :  { %v3024_v14 = vpop.xlane.xlu1 %3023  ;;  %6404 = vrsqrt.f32 %v3053_v51 }
0x12c4   :  { %v3021_v53 = vpop.xlane.xlu0 %3020  ;;  %6406 = vrsqrt.f32 %v3054_v58  ;;  %v3056_v45 = vmax.f32 %v3024_v14, 1e-24  ;;  %v2772_v14 = vmul.f32 %v6557_v16, %v8159_v59 }
0x12c5   :  { %v3055_v36 = vmax.f32 %v3021_v53, 1e-24  ;;  %v6558_v53 = vld [vmem:[%s9228_s5 + $0x60] sm:$0xff] }
0x12c7   :  { %v2750_v50 = vpop.permute.xlu1 %2749  ;;  %6408 = vrsqrt.f32 %v3055_v36 }
0x12c8   :  { %v8318_v62 = vpop.permute.xlu0 %2745  ;;  %6410 = vrsqrt.f32 %v3056_v45  ;;  %v2771_v23 = vmul.f32 %v6551_v55, %v2750_v50  ;;  %v6559_v45 = vld [vmem:[%s9227_s4 + $0x70] sm:$0xff] }
0x12c9   :  { %5635 = vmatmul.mubr.msk.f32.gmra.mrb[52].mxu1 %vm115_vm0, %v8318_v62 }
0x12ca   :  { %5637 = vmatprep.mubr.msk.f32.mxu1 %vm115_vm0, %v8143_v35 }
0x12cb   :  { %v2754_v17 = vpop.permute.xlu1 %2753 }
0x12cc   :  { %v2773_v29 = vmul.f32 %v6555_v26, %v2754_v17 }
0x12cd   :  { %5638 = vmatmul.mubr.msk.f32.gmra.mrb[54].mxu1 %vm115_vm0, %v2750_v50  ;;  %v6405_v49 = vpop.eup %6404 }
0x12ce   :  { %5640 = vmatprep.mubr.msk.f32.mxu1 %vm115_vm0, %v8159_v59  ;;  %v6407_v44 = vpop.eup %6406  ;;  %v3085_v42 = vmul.f32 %v6405_v49, %v8262_v52  ;;  %v8349_v52 = vld [vmem:[%s9254_s25 + $0x8] sm:$0xff]  ;;  %v6560_v59 = vld [vmem:[%s9228_s5 + $0x70] sm:$0xff]  ;;  %v8413_v49 = vld [vmem:[%s9254_s25 + $0x18] sm:$0xff] }
0x12cf   :  { %v8330_v22 = vpop.permute.xlu1 %2757  ;;  %v3086_v6 = vmul.f32 %v6407_v44, %v8260_v1 }
0x12d1   :  { %5641 = vmatmul.mubr.msk.f32.gmra.mrb[56].mxu1 %vm115_vm0, %v2754_v17  ;;  %v6409_v11 = vpop.eup %6408  ;;  %v2774_v17 = vmul.f32 %v6559_v45, %v8163_v5 }
0x12d2   :  { %5643 = vmatprep.mubr.msk.f32.mxu1 %vm115_vm0, %v8163_v5  ;;  %v6411_v38 = vpop.eup %6410  ;;  %v3087_v24 = vmul.f32 %v6409_v11, %v8286_v56  ;;  %v8421_v5 = vld [vmem:[%s9254_s25] sm:$0xff] }
0x12d3   :  { %v3088_v40 = vmul.f32 %v6411_v38, %v8283_v41  ;;  %v6549_v41 = vld [vmem:[%s9227_s4 + $0x40] sm:$0xff]  ;;  %v8431_v38 = vld [vmem:[%s9254_s25 + $0x28] sm:$0xff] }
0x12d4   :  { %v2768_v10 = vmul.f32 %v6549_v41, %v8139_v32  ;;  %v6553_v32 = vld [vmem:[%s9227_s4 + $0x50] sm:$0xff] }
0x12d5   :  { %5644 = vmatmul.mubr.msk.f32.gmra.mrb[58].mxu1 %vm115_vm0, %v8330_v22  ;;  %v2770_v60 = vmul.f32 %v6553_v32, %v8143_v35 }
0x12d6   :  { %5653 = vmatprep.mubr.msk.f32.mxu1 %vm115_vm0, %v3083_v27 }
0x12d9   :  { %5654 = vmatmul.mubr.msk.f32.vlgmr.msra.gmra.mrb[60].mxu1 %vm115_vm0, %v3084_v2 }
0x12da   :  { %5656 = vmatprep.mubr.msk.f32.mxu1 %vm115_vm0, %v3085_v42 }
0x12dd   :  { %5657 = vmatmul.mubr.msk.f32.gmra.mrb[62].mxu1 %vm115_vm0, %v3086_v6 }
0x12de   :  { %5659 = vmatprep.mubr.msk.f32.mxu1 %vm115_vm0, %v3087_v24 }
0x12e1   :  { %5660 = vmatmul.mubr.msk.f32.gmra.mrb[64].mxu1 %vm115_vm0, %v3088_v40 }
0x133a   :  { %v5652_v18 = vpop.f32.mrb[48].mxu0 }
0x133b   :  { %v8352_v33 = vadd.f32 %v8349_v52, %v5652_v18  ;;  %v3216_v1 = vpop.f32.mrb[49].mxu0  ;;  %v6564_v18 = vld [vmem:[%s9228_s5 + $0x48] sm:$0xff] }
0x133c   :  { %v8424_v42 = vadd.f32 %v8421_v5, %v3216_v1 }
0x133d   :  { %v3258_v56 = vsel %vm1038_vm2, %v8352_v33, -inf }
0x133e   :  { %3259 = vmax.xlane.f32.xlu1 %v3258_v56  ;;  %v8442_v56 = vld [vmem:[%s9254_s25 + $0x10] sm:$0xff]  ;;  %v3255_v41 = vsel %vm1038_vm2, %v8424_v42, -inf }
0x139c   :  { %v5636_v37 = vpop.f32.mrb[52].mxu1 }
0x139d   :  { %v2914_v54 = vpop.f32.mrb[53].mxu1  ;;  %v2962_v1 = vmul.f32 %v6564_v18, %v5636_v37 }
0x139e   :  { %v2961_v31 = vmul.f32 %v6550_v21, %v2914_v54  ;;  %v6566_v21 = vld [vmem:[%s9227_s4 + $0x48] sm:$0xff] }
0x139f   :  { %v2769_v37 = vmul.f32 %v6566_v21, %v8318_v62 }
0x13a0   :  { %v8363_v30 = vadd.f32 %v2961_v31, %v2768_v10  ;;  %v5639_v43 = vpop.f32.mrb[54].mxu1 }
0x13a1   :  { %v2964_v46 = vmul.f32 %v6552_v0, %v5639_v43  ;;  %v2924_v48 = vpop.f32.mrb[55].mxu1  ;;  %v8458_v43 = vld [vmem:[%s9254_s25 + $0x38] sm:$0xff]  ;;  %v8463_v0 = vadd.f32 %v2962_v1, %v2769_v37 }
0x13a2   :  { %v2963_v39 = vmul.f32 %v6554_v7, %v2924_v48  ;;  %v8482_v7 = vld [vmem:[%s9254_s25 + $0x30] sm:$0xff]  ;;  %v6571_v1 = vld [vmem:[%s9227_s4 + $0x78] sm:$0xff] }
0x13a3   :  { %v8378_v13 = vadd.f32 %v2964_v46, %v2771_v23  ;;  %v8468_v46 = vld [vmem:[%s9254_s25 + $0x20] sm:$0xff] }
0x13a4   :  { %v8380_v8 = vadd.f32 %v2963_v39, %v2770_v60  ;;  %v5642_v63 = vpop.f32.mrb[56].mxu1  ;;  %v2993_v60 = vmul.f32 %v8363_v30, %v8363_v30 }
0x13a5   :  { %v2966_v35 = vmul.f32 %v6556_v57, %v5642_v63  ;;  %v2934_v15 = vpop.f32.mrb[57].mxu1 }
0x13a6   :  { %v2965_v12 = vmul.f32 %v6558_v53, %v2934_v15  ;;  %v3025_v63 = vsel %vm115_vm0, %v2993_v60, 0.0  ;;  %v2995_v15 = vmul.f32 %v8380_v8, %v8380_v8 }
0x13a7   :  { %v8395_v51 = vadd.f32 %v2966_v35, %v2773_v29  ;;  %v2994_v29 = vmul.f32 %v8463_v0, %v8463_v0 }
0x13a8   :  { %v8397_v50 = vadd.f32 %v2965_v12, %v2772_v14  ;;  %v8399_v58 = vpop.f32.mrb[58].mxu1  ;;  %v3031_v16 = vsel %vm115_vm0, %v2995_v15, 0.0  ;;  %v2996_v14 = vmul.f32 %v8378_v13, %v8378_v13 }
0x13a9   :  { %v2944_v36 = vpop.f32.mrb[59].mxu1  ;;  %v3028_v57 = vsel %vm115_vm0, %v2994_v29, 0.0  ;;  %v2998_v18 = vmul.f32 %v8395_v51, %v8395_v51 }
0x13aa   :  { %v2967_v25 = vmul.f32 %v6560_v59, %v2944_v36  ;;  %v3034_v53 = vsel %vm115_vm0, %v2996_v14, 0.0  ;;  %v2997_v12 = vmul.f32 %v8397_v50, %v8397_v50 }
0x13ab   :  { %v3040_v21 = vsel %vm115_vm0, %v2998_v18, 0.0 }
0x13ac   :  { %v8408_v4 = vadd.f32 %v2967_v25, %v2774_v17  ;;  %v5655_v27 = vpop.f32.mrb[60].mxu1  ;;  %v3037_v45 = vsel %vm115_vm0, %v2997_v12, 0.0  ;;  %v4840_v25 = vld [vmem:[%s9233_s10 + $0x8] sm:$0xff] }
0x13ad   :  { %v8416_v2 = vadd.f32 %v8413_v49, %v5655_v27  ;;  %v3226_v44 = vpop.f32.mrb[61].mxu1 }
0x13ae   :  { %v8445_v54 = vadd.f32 %v8442_v56, %v3226_v44  ;;  %v2999_v37 = vmul.f32 %v8408_v4, %v8408_v4 }
0x13af   :  { %v3264_v11 = vsel %vm1038_vm2, %v8416_v2, -inf }
0x13b0   :  { %3265 = vmax.xlane.f32.xlu0 %v3264_v11  ;;  %v5658_v6 = vpop.f32.mrb[62].mxu1  ;;  %v3261_v32 = vsel %vm1038_vm2, %v8445_v54, -inf  ;;  %v3522_v11 = vmul.f32 %v8239_v3, %v8239_v3 }
0x13b1   :  { %v8434_v24 = vadd.f32 %v8431_v38, %v5658_v6  ;;  %v3236_v40 = vpop.f32.mrb[63].mxu1 }
0x13b2   :  { %v8471_v62 = vadd.f32 %v8468_v46, %v3236_v40  ;;  %v3523_v40 = vsel %vm115_vm0, %v3522_v11, 0.0 }
0x13b3   :  { %v3270_v10 = vsel %vm1038_vm2, %v8434_v24, -inf }
0x13b4   :  { %3256 = vmax.xlane.f32.xlu0 %v3255_v41  ;;  %3271 = vmax.xlane.f32.xlu1 %v3270_v10  ;;  %v5661_v31 = vpop.f32.mrb[64].mxu1  ;;  %v3267_v26 = vsel %vm1038_vm2, %v8471_v62, -inf  ;;  %v2775_v41 = vmul.f32 %v6571_v1, %v8330_v22 }
0x13b5   :  { %v8461_v55 = vadd.f32 %v8458_v43, %v5661_v31  ;;  %v3246_v23 = vpop.f32.mrb[65].mxu1 }
0x13b6   :  { %v8485_v39 = vadd.f32 %v8482_v7, %v3246_v23 }
0x13b7   :  { %v3276_v48 = vsel %vm1038_vm2, %v8461_v55, -inf }
0x13b8   :  { %3277 = vmax.xlane.f32.xlu1 %v3276_v48  ;;  %3262 = vmax.xlane.f32.xlu0 %v3261_v32  ;;  %v3273_v35 = vsel %vm1038_vm2, %v8485_v39, -inf }
0x13bc   :  { %3026 = vadd.xlane.f32.xlu1 %v3025_v63  ;;  %3268 = vmax.xlane.f32.xlu0 %v3267_v26 }
0x13c0   :  { %3029 = vadd.xlane.f32.xlu1 %v3028_v57  ;;  %3274 = vmax.xlane.f32.xlu0 %v3273_v35 }
0x13c4   :  { %3032 = vadd.xlane.f32.xlu1 %v3031_v16 }
0x13c8   :  { %3035 = vadd.xlane.f32.xlu1 %v3034_v53 }
0x13cb   :  { %v3260_v36 = vpop.xlane.xlu1 %3259 }
0x13cc   :  { %v3280_v17 = vsub.f32 %v8352_v33, %v3260_v36  ;;  %3038 = vadd.xlane.f32.xlu1 %v3037_v45  ;;  %v6570_v33 = vld [vmem:[%s9228_s5 + $0x78] sm:$0xff] }
0x13cd   :  { %v2968_v6 = vmul.f32 %v6570_v33, %v8399_v58  ;;  %v3043_v58 = vsel %vm115_vm0, %v2999_v37, 0.0 }
0x13ce   :  { %v3289_v59 = vmul.f32 1.442695, %v3280_v17 }
0x13cf   :  { %v8526_v10 = vadd.f32 %v2968_v6, %v2775_v41 }
0x13d0   :  { %6412 = vpow2.f32 %v3289_v59 }
0x13d1   :  { %v3000_v31 = vmul.f32 %v8526_v10, %v8526_v10 }
0x13d3   :  { %v3046_v23 = vsel %vm115_vm0, %v3000_v31, 0.0 }
0x13d6   :  { %3102 = vrot.lane.b32.xlu0 %v4840_v25, %s6597_s6 }
0x13da   :  { %v8509_v27 = vpop.eup %6412 }
0x13db   :  { %v3306_v44 = vsel %vm1038_vm2, %v8509_v27, 0.0 }
0x13dc   :  { %3307 = vadd.xlane.f32.xlu1 %v3306_v44 }
0x13f5   :  { %3524 = vadd.xlane.f32.xlu0 %v3523_v40 }
0x13f9   :  { %3041 = vadd.xlane.f32.xlu0 %v3040_v21 }
0x13fd   :  { %3044 = vadd.xlane.f32.xlu0 %v3043_v58 }
0x1401   :  { %3047 = vadd.xlane.f32.xlu0 %v3046_v23 }
0x143d   :  { %v3266_v48 = vpop.xlane.xlu0 %3265 }
0x143e   :  { %v3282_v22 = vsub.f32 %v8416_v2, %v3266_v48 }
0x1440   :  { %v3293_v32 = vmul.f32 1.442695, %v3282_v22 }
0x1441   :  { %v3257_v60 = vpop.xlane.xlu0 %3256  ;;  %v3272_v63 = vpop.xlane.xlu1 %3271 }
0x1442   :  { %6414 = vpow2.f32 %v3293_v32  ;;  %v3279_v26 = vsub.f32 %v8424_v42, %v3257_v60  ;;  %v3284_v57 = vsub.f32 %v8434_v24, %v3272_v63 }
0x1444   :  { %v3287_v29 = vmul.f32 1.442695, %v3279_v26  ;;  %v3297_v16 = vmul.f32 1.442695, %v3284_v57 }
0x1445   :  { %v3263_v35 = vpop.xlane.xlu0 %3262  ;;  %v3278_v53 = vpop.xlane.xlu1 %3277 }
0x1446   :  { %6416 = vpow2.f32 %v3287_v29  ;;  %v3281_v15 = vsub.f32 %v8445_v54, %v3263_v35  ;;  %v3286_v45 = vsub.f32 %v8461_v55, %v3278_v53 }
0x1448   :  { %v3291_v14 = vmul.f32 1.442695, %v3281_v15  ;;  %v3301_v54 = vmul.f32 1.442695, %v3286_v45 }
0x1449   :  { %v3269_v12 = vpop.xlane.xlu0 %3268  ;;  %v3027_v31 = vpop.xlane.xlu1 %3026 }
0x144a   :  { %6418 = vpow2.f32 %v3291_v14  ;;  %v3283_v2 = vsub.f32 %v8471_v62, %v3269_v12 }
0x144b   :  { %6420 = vpow2.f32 %v3297_v16 }
0x144c   :  { %v8540_v36 = vpop.eup %6414  ;;  %v3295_v42 = vmul.f32 1.442695, %v3283_v2 }
0x144d   :  { %v3275_v17 = vpop.xlane.xlu0 %3274  ;;  %v3312_v24 = vsel %vm1038_vm2, %v8540_v36, 0.0  ;;  %v8569_v23 = vpop.xlane.xlu1 %3029 }
0x144e   :  { %3313 = vadd.xlane.f32.xlu1 %v3312_v24  ;;  %6422 = vpow2.f32 %v3295_v42  ;;  %v3285_v25 = vsub.f32 %v8485_v39, %v3275_v17 }
0x144f   :  { %6424 = vpow2.f32 %v3301_v54 }
0x1450   :  { %v6417_v59 = vpop.eup %6416  ;;  %v3299_v11 = vmul.f32 1.442695, %v3285_v25 }
0x1451   :  { %v3303_v44 = vsel %vm1038_vm2, %v6417_v59, 0.0  ;;  %v3103_v37 = vpop.permute.xlu0 %3102  ;;  %v8571_v48 = vpop.xlane.xlu1 %3032 }
0x1452   :  { %3304 = vadd.xlane.f32.xlu1 %v3303_v44  ;;  %6426 = vpow2.f32 %v3299_v11  ;;  %v6233_v58 = vpack.i.bf16 %v3103_v37, %v8145_v20 }
0x1454   :  { %v8547_v62 = vpop.eup %6418 }
0x1455   :  { %v3309_v55 = vsel %vm1038_vm2, %v8547_v62, 0.0  ;;  %v8551_v33 = vpop.eup %6420  ;;  %v8573_v22 = vpop.xlane.xlu1 %3035 }
0x1456   :  { %3310 = vadd.xlane.f32.xlu1 %v3309_v55  ;;  %v3318_v6 = vsel %vm1038_vm2, %v8551_v33, 0.0 }
0x1458   :  { %v8555_v40 = vpop.eup %6422 }
0x1459   :  { %v3315_v39 = vsel %vm1038_vm2, %v8555_v40, 0.0  ;;  %v8559_v18 = vpop.eup %6424  ;;  %v8575_v32 = vpop.xlane.xlu1 %3038 }
0x145a   :  { %3319 = vadd.xlane.f32.xlu1 %v3318_v6  ;;  %v3324_v1 = vsel %vm1038_vm2, %v8559_v18, 0.0 }
0x145c   :  { %v8563_v41 = vpop.eup %6426 }
0x145d   :  { %v3321_v21 = vsel %vm1038_vm2, %v8563_v41, 0.0 }
0x145e   :  { %3316 = vadd.xlane.f32.xlu1 %v3315_v39 }
0x1462   :  { %3325 = vadd.xlane.f32.xlu1 %v3324_v1 }
0x1466   :  { %3322 = vadd.xlane.f32.xlu1 %v3321_v21 }
0x1469   :  { %v3308_v60 = vpop.xlane.xlu1 %3307 }
0x1477   :  { %6234 = vrot.lane.b32.xlu1 %v6233_v58, %s6597_s6 }
0x1482   :  { %v3525_v29 = vpop.xlane.xlu0 %3524 }
0x1483   :  { %v3526_v57 = vmax.f32 %v3525_v29, 1e-24 }
0x14db   :  { %v3314_v63 = vpop.xlane.xlu1 %3313 }
0x14df   :  { %v3305_v26 = vpop.xlane.xlu1 %3304 }
0x14e0   :  { %6428 = vrcp.f32 %v3305_v26 }
0x14e1   :  { %6430 = vrcp.f32 %v3308_v60 }
0x14e3   :  { %v3311_v35 = vpop.xlane.xlu1 %3310 }
0x14e4   :  { %6432 = vrcp.f32 %v3311_v35 }
0x14e5   :  { %6434 = vrsqrt.f32 %v3526_v57  ;;  %v3057_v57 = vmax.f32 %v3027_v31, 1e-24 }
0x14e6   :  { %6436 = vrcp.f32 %v3314_v63 }
0x14e7   :  { %v3320_v20 = vpop.xlane.xlu1 %3319 }
0x14ea   :  { %v6429_v15 = vpop.eup %6428 }
0x14eb   :  { %v3335_v16 = vmul.f32 %v6429_v15, %v3305_v26  ;;  %v3317_v14 = vpop.xlane.xlu1 %3316  ;;  %v6431_v12 = vpop.eup %6430 }
0x14ec   :  { %6438 = vrcp.f32 %v3317_v14  ;;  %v3336_v54 = vmul.f32 %v6431_v12, %v3308_v60 }
0x14ed   :  { %v3343_v53 = vsub.f32 2.0, %v3335_v16  ;;  %6440 = vrcp.f32 %v3320_v20 }
0x14ee   :  { %v6433_v42 = vpop.eup %6432  ;;  %v3344_v39 = vsub.f32 2.0, %v3336_v54  ;;  %v3059_v54 = vmax.f32 %v8571_v48, 1e-24 }
0x14ef   :  { %v3351_v2 = vmul.f32 %v6429_v15, %v3343_v53  ;;  %v3326_v45 = vpop.xlane.xlu1 %3325  ;;  %v6435_v17 = vpop.eup %6434  ;;  %v3337_v44 = vmul.f32 %v6433_v42, %v3311_v35 }
0x14f0   :  { %6442 = vrcp.f32 %v3326_v45  ;;  %v6437_v25 = vpop.eup %6436  ;;  %v3528_v55 = vmul.f32 %v6435_v17, %v8239_v3  ;;  %v3352_v35 = vmul.f32 %v6431_v12, %v3344_v39  ;;  %v3042_v15 = vpop.xlane.xlu0 %3041 }
0x14f1   :  { %v3359_v24 = vmul.f32 %v6417_v59, %v3351_v2  ;;  %v3338_v1 = vmul.f32 %v6437_v25, %v3314_v63  ;;  %v3345_v37 = vsub.f32 2.0, %v3337_v44 }
0x14f2   :  { %v3529_v29 = vmul.f32 16.0, %v3528_v55  ;;  %v3360_v12 = vmul.f32 %v8509_v27, %v3352_v35  ;;  %v3061_v27 = vmax.f32 %v8575_v32, 1e-24 }
0x14f3   :  { %5666 = vmatprep.mubr.msk.f32.mxu0 %vm1038_vm2, %v3359_v24  ;;  %v3323_v11 = vpop.xlane.xlu1 %3322  ;;  %v3346_v16 = vsub.f32 2.0, %v3338_v1  ;;  %v3353_v63 = vmul.f32 %v6433_v42, %v3345_v37 }
0x14f4   :  { %6444 = vrcp.f32 %v3323_v11  ;;  %v6047_v24 = vpack.c.bf16 %v8305_v61, %v3529_v29  ;;  %v3045_v1 = vpop.xlane.xlu0 %3044  ;;  %v3060_v61 = vmax.f32 %v8573_v22, 1e-24 }
0x14f5   :  { %6446 = vrsqrt.f32 %v3057_v57  ;;  %v3354_v44 = vmul.f32 %v6437_v25, %v3346_v16  ;;  %v3361_v42 = vmul.f32 %v8547_v62, %v3353_v63  ;;  %v3063_v22 = vmax.f32 %v3045_v1, 1e-24 }
0x14f6   :  { %v6439_v6 = vpop.eup %6438 }
0x14f7   :  { %v6441_v21 = vpop.eup %6440  ;;  %v3339_v58 = vmul.f32 %v6439_v6, %v3317_v14  ;;  %v8579_v26 = vpop.permute.xlu1 %6234  ;;  %v3058_v14 = vmax.f32 %v8569_v23, 1e-24 }
0x14f8   :  { %v6237_v59 = vunpack.i.h.bf16 %v8579_v26  ;;  %v6236_v60 = vunpack.i.l.bf16 %v8579_v26  ;;  %v3340_v53 = vmul.f32 %v6441_v21, %v3320_v20 }
0x14f9   :  { %v3347_v17 = vsub.f32 2.0, %v3339_v58  ;;  %6448 = vrsqrt.f32 %v3058_v14  ;;  %v3048_v58 = vpop.xlane.xlu0 %3047 }
0x14fa   :  { %v6043_v3 = vpack.c.bf16 %v6237_v59, %v6236_v60  ;;  %v6443_v2 = vpop.eup %6442  ;;  %v3348_v20 = vsub.f32 2.0, %v3340_v53  ;;  %6450 = vrsqrt.f32 %v3059_v54 }
0x14fb   :  { %v3342_v55 = vmul.f32 %v6443_v2, %v3326_v45  ;;  %v3355_v39 = vmul.f32 %v6439_v6, %v3347_v17  ;;  %v3362_v45 = vmul.f32 %v8540_v36, %v3354_v44  ;;  %6452 = vrsqrt.f32 %v3060_v61 }
0x14fc   :  { %6044 = vmatprep.subr.bf16.mxu0 %v6043_v3  ;;  %v3356_v25 = vmul.f32 %v6441_v21, %v3348_v20  ;;  %6454 = vrsqrt.f32 %v3061_v27 }
0x14fd   :  { %6046 = vmatpush3.bf16.msra.mxu0 %v6043_v3  ;;  %v3350_v37 = vsub.f32 2.0, %v3342_v55  ;;  %v3363_v62 = vmul.f32 %v8555_v40, %v3355_v39  ;;  %v3064_v40 = vmax.f32 %v3048_v58, 1e-24 }
0x14fe   :  { %v6445_v31 = vpop.eup %6444  ;;  %6049 = vmatprep.subr.msk.bf16.mxu0 %vm7077_vm1, %v6047_v24  ;;  %v3364_v60 = vmul.f32 %v8551_v33, %v3356_v25 }
0x14ff   :  { %v3341_v23 = vmul.f32 %v6445_v31, %v3323_v11  ;;  %v3062_v11 = vmax.f32 %v3042_v15, 1e-24  ;;  %v3358_v29 = vmul.f32 %v6443_v2, %v3350_v37  ;;  %v6447_v36 = vpop.eup %6446 }
0x1500   :  { %5667 = vmatmul.mubr.msk.f32.vlgmr.msra.gmra.mrb[50].mxu0 %vm1038_vm2, %v3360_v12  ;;  %v3089_v33 = vmul.f32 %v6447_v36, %v8363_v30 }
0x1501   :  { %v3349_v48 = vsub.f32 2.0, %v3341_v23  ;;  %5669 = vmatprep.mubr.msk.f32.mxu0 %vm1038_vm2, %v3361_v42  ;;  %6456 = vrsqrt.f32 %v3062_v11  ;;  %v3366_v57 = vmul.f32 %v8559_v18, %v3358_v29 }
0x1502   :  { %6458 = vrsqrt.f32 %v3063_v22 }
0x1503   :  { %v3357_v6 = vmul.f32 %v6445_v31, %v3349_v48  ;;  %v6449_v21 = vpop.eup %6448  ;;  %6460 = vrsqrt.f32 %v3064_v40 }
0x1504   :  { %5670 = vmatmul.mubr.msk.f32.gmra.mrb[52].mxu0 %vm1038_vm2, %v3362_v45  ;;  %v6451_v35 = vpop.eup %6450  ;;  %v3090_v34 = vmul.f32 %v6449_v21, %v8463_v0 }
0x1505   :  { %5672 = vmatprep.mubr.msk.f32.mxu0 %vm1038_vm2, %v3363_v62  ;;  %v3365_v32 = vmul.f32 %v8563_v41, %v3357_v6  ;;  %v6453_v41 = vpop.eup %6452  ;;  %v3091_v15 = vmul.f32 %v6451_v35, %v8380_v8 }
0x1506   :  { %6052 = vmatpush3.bf16.xpose.msk.msra.mxu0 %vm7077_vm1, %v6047_v24  ;;  %v6455_v16 = vpop.eup %6454  ;;  %v3092_v18 = vmul.f32 %v6453_v41, %v8378_v13 }
0x1507   :  { %v3093_v30 = vmul.f32 %v6455_v16, %v8397_v50 }
0x1508   :  { %5673 = vmatmul.mubr.msk.f32.gmra.mrb[54].mxu0 %vm1038_vm2, %v3364_v60 }
0x1509   :  { %5675 = vmatprep.mubr.msk.f32.mxu0 %vm1038_vm2, %v3365_v32 }
0x150b   :  { %v6457_v53 = vpop.eup %6456 }
0x150c   :  { %5676 = vmatmul.mubr.msk.f32.gmra.mrb[56].mxu0 %vm1038_vm2, %v3366_v57  ;;  %v6459_v3 = vpop.eup %6458  ;;  %v3094_v0 = vmul.f32 %v6457_v53, %v8395_v51 }
0x150d   :  { %5682 = vmatprep.mubr.msk.f32.mxu0 %vm115_vm0, %v3089_v33  ;;  %v6461_v2 = vpop.eup %6460  ;;  %v3095_v8 = vmul.f32 %v6459_v3, %v8408_v4 }
0x150e   :  { %v3096_v63 = vmul.f32 %v6461_v2, %v8526_v10 }
0x1510   :  { %5683 = vmatmul.mubr.msk.f32.vlgmr.msra.gmra.mrb[58].mxu0 %vm115_vm0, %v3090_v34 }
0x1511   :  { %5685 = vmatprep.mubr.msk.f32.mxu0 %vm115_vm0, %v3091_v15 }
0x1514   :  { %5686 = vmatmul.mubr.msk.f32.gmra.mrb[60].mxu0 %vm115_vm0, %v3092_v18 }
0x1515   :  { %5688 = vmatprep.mubr.msk.f32.mxu0 %vm115_vm0, %v3093_v30 }
0x1518   :  { %5689 = vmatmul.mubr.msk.f32.gmra.mrb[62].mxu0 %vm115_vm0, %v3094_v0 }
0x1519   :  { %5691 = vmatprep.mubr.msk.f32.mxu0 %vm115_vm0, %v3095_v8 }
0x151c   :  { %5692 = vmatmul.mubr.msk.f32.gmra.mrb[64].mxu0 %vm115_vm0, %v3096_v63 }
0x15d3   :  { %v8624_v13 = vpop.f32.mrb[50].mxu0 }
0x15d4   :  { %v8626_v50 = vpop.f32.mrb[51].mxu0 }
0x15d7   :  { %v8628_v17 = vpop.f32.mrb[52].mxu0 }
0x15d8   :  { %v8630_v14 = vpop.f32.mrb[53].mxu0 }
0x15db   :  { %v8632_v51 = vpop.f32.mrb[54].mxu0 }
0x15dc   :  { %v6243_v4 = vpack.i.bf16 %v8632_v51, %v8624_v13  ;;  %v8636_v24 = vpop.f32.mrb[55].mxu0 }
0x15df   :  { %v8638_v54 = vpop.f32.mrb[56].mxu0 }
0x15e0   :  { %v6238_v10 = vpack.i.bf16 %v8638_v54, %v8628_v17  ;;  %v8642_v31 = vpop.f32.mrb[57].mxu0 }
0x15e3   :  { %v5684_v12 = vpop.f32.mrb[58].mxu0 }
0x15e4   :  { %v3629_v44 = vadd.f32 %v8349_v52, %v5684_v12  ;;  %v3623_v20 = vpop.f32.mrb[59].mxu0 }
0x15e5   :  { %v3624_v55 = vadd.f32 %v8421_v5, %v3623_v20 }
0x15e6   :  { %v3665_v42 = vsel %vm1038_vm2, %v3629_v44, -inf }
0x15e7   :  { %3666 = vmax.xlane.f32.xlu0 %v3665_v42  ;;  %v5687_v39 = vpop.f32.mrb[60].mxu0  ;;  %v3662_v48 = vsel %vm1038_vm2, %v3624_v55, -inf }
0x15e8   :  { %v3633_v23 = vpop.f32.mrb[61].mxu0  ;;  %v3639_v61 = vadd.f32 %v8413_v49, %v5687_v39 }
0x15e9   :  { %v3634_v1 = vadd.f32 %v8442_v56, %v3633_v23 }
0x15ea   :  { %v3671_v5 = vsel %vm1038_vm2, %v3639_v61, -inf }
0x15eb   :  { %v5690_v27 = vpop.f32.mrb[62].mxu0  ;;  %3663 = vmax.xlane.f32.xlu0 %v3662_v48  ;;  %v3668_v45 = vsel %vm1038_vm2, %v3634_v1, -inf  ;;  %v4893_v48 = vld [vmem:[%s9234_s11 + $0x280] sm:$0xff] }
0x15ec   :  { %v3643_v25 = vpop.f32.mrb[63].mxu0  ;;  %3669 = vmax.xlane.f32.xlu1 %v3668_v45  ;;  %v3649_v52 = vadd.f32 %v8431_v38, %v5690_v27  ;;  %v4894_v27 = vld [vmem:[%s9234_s11 + $0x288] sm:$0xff] }
0x15ed   :  { %v3644_v6 = vadd.f32 %v8468_v46, %v3643_v25  ;;  %v6057_v45 = vpack.c.bf16 %v4894_v27, %v4893_v48  ;;  %v4877_v25 = vld [vmem:[%s9234_s11 + $0x200] sm:$0xff]  ;;  %v4906_v27 = vld [vmem:[%s9234_s11 + $0x2e8] sm:$0xff] }
0x15ee   :  { %v3677_v56 = vsel %vm1038_vm2, %v3649_v52, -inf  ;;  %v4905_v48 = vld [vmem:[%s9234_s11 + $0x2e0] sm:$0xff] }
0x15ef   :  { %v5693_v37 = vpop.f32.mrb[64].mxu0  ;;  %3672 = vmax.xlane.f32.xlu0 %v3671_v5  ;;  %v3674_v11 = vsel %vm1038_vm2, %v3644_v6, -inf  ;;  %6058 = vmatprep.subr.bf16.mxu0 %v6057_v45  ;;  %v6081_v45 = vpack.c.bf16 %v4906_v27, %v4905_v48 }
0x15f0   :  { %v3653_v62 = vpop.f32.mrb[65].mxu0  ;;  %v3659_v22 = vadd.f32 %v8458_v43, %v5693_v37 }
0x15f1   :  { %v3654_v49 = vadd.f32 %v8482_v7, %v3653_v62 }
0x15f2   :  { %v3683_v38 = vsel %vm1038_vm2, %v3659_v22, -inf }
0x15f3   :  { %3678 = vmax.xlane.f32.xlu0 %v3677_v56  ;;  %v3680_v58 = vsel %vm1038_vm2, %v3654_v49, -inf  ;;  %v4895_v56 = vld [vmem:[%s9234_s11 + $0x290] sm:$0xff] }
0x15f7   :  { %3675 = vmax.xlane.f32.xlu0 %v3674_v11 }
0x15fb   :  { %3681 = vmax.xlane.f32.xlu0 %v3680_v58  ;;  %v4880_v58 = vld [vmem:[%s9234_s11 + $0x218] sm:$0xff] }
0x15ff   :  { %3684 = vmax.xlane.f32.xlu0 %v3683_v38 }
0x1674   :  { %v3667_v60 = vpop.xlane.xlu0 %3666 }
0x1675   :  { %v3687_v29 = vsub.f32 %v3629_v44, %v3667_v60 }
0x1677   :  { %v3696_v36 = vmul.f32 1.442695, %v3687_v29 }
0x1678   :  { %v3664_v46 = vpop.xlane.xlu0 %3663 }
0x1679   :  { %6462 = vpow2.f32 %v3696_v36  ;;  %v3686_v32 = vsub.f32 %v3624_v55, %v3664_v46  ;;  %v3670_v40 = vpop.xlane.xlu1 %3669  ;;  %v4897_v36 = vld [vmem:[%s9234_s11 + $0x2a0] sm:$0xff]  ;;  %v4898_v46 = vld [vmem:[%s9234_s11 + $0x2a8] sm:$0xff] }
0x167a   :  { %v3688_v21 = vsub.f32 %v3634_v1, %v3670_v40  ;;  %v4881_v40 = vld [vmem:[%s9234_s11 + $0x220] sm:$0xff] }
0x167b   :  { %v3694_v7 = vmul.f32 1.442695, %v3686_v32  ;;  %v6065_v32 = vpack.c.bf16 %v4898_v46, %v4897_v36 }
0x167c   :  { %v3698_v57 = vmul.f32 1.442695, %v3688_v21  ;;  %v3673_v35 = vpop.xlane.xlu0 %3672  ;;  %v4882_v21 = vld [vmem:[%s9234_s11 + $0x228] sm:$0xff] }
0x167d   :  { %6464 = vpow2.f32 %v3694_v7  ;;  %v3689_v33 = vsub.f32 %v3639_v61, %v3673_v35 }
0x167e   :  { %6466 = vpow2.f32 %v3698_v57  ;;  %v6067_v57 = vpack.c.bf16 %v4882_v21, %v4881_v40 }
0x167f   :  { %v3700_v43 = vmul.f32 1.442695, %v3689_v33  ;;  %v4899_v33 = vld [vmem:[%s9234_s11 + $0x2b0] sm:$0xff] }
0x1680   :  { %v3679_v34 = vpop.xlane.xlu0 %3678 }
0x1681   :  { %v3691_v41 = vsub.f32 %v3649_v52, %v3679_v34  ;;  %6468 = vpow2.f32 %v3700_v43  ;;  %v4878_v52 = vld [vmem:[%s9234_s11 + $0x208] sm:$0xff]  ;;  %v4900_v43 = vld [vmem:[%s9234_s11 + $0x2b8] sm:$0xff] }
0x1682   :  { %v6059_v37 = vpack.c.bf16 %v4878_v52, %v4877_v25  ;;  %v6069_v34 = vpack.c.bf16 %v4900_v43, %v4899_v33  ;;  %v4889_v25 = vld [vmem:[%s9234_s11 + $0x260] sm:$0xff]  ;;  %v4890_v52 = vld [vmem:[%s9234_s11 + $0x268] sm:$0xff] }
0x1683   :  { %v8660_v15 = vpop.eup %6462  ;;  %v3704_v16 = vmul.f32 1.442695, %v3691_v41  ;;  %v4883_v41 = vld [vmem:[%s9234_s11 + $0x230] sm:$0xff]  ;;  %v4925_v43 = vld [vmem:[%s9234_s11 + $0x380] sm:$0xff] }
0x1684   :  { %v3676_v18 = vpop.xlane.xlu0 %3675  ;;  %v3713_v53 = vsel %vm1038_vm2, %v8660_v15, 0.0  ;;  %6060 = vmatpush3.bf16.msra.mxu0 %v6059_v37  ;;  %v6083_v37 = vpack.c.bf16 %v4890_v52, %v4889_v25  ;;  %v4912_v25 = vld [vmem:[%s9234_s11 + $0x318] sm:$0xff] }
0x1685   :  { %v3690_v30 = vsub.f32 %v3644_v6, %v3676_v18  ;;  %3714 = vadd.xlane.f32.xlu0 %v3713_v53  ;;  %6470 = vpow2.f32 %v3704_v16  ;;  %v4884_v16 = vld [vmem:[%s9234_s11 + $0x238] sm:$0xff]  ;;  %v4901_v53 = vld [vmem:[%s9234_s11 + $0x2c0] sm:$0xff] }
0x1686   :  { %v6071_v18 = vpack.c.bf16 %v4884_v16, %v4883_v41 }
0x1687   :  { %v8664_v3 = vpop.eup %6464  ;;  %v3702_v0 = vmul.f32 1.442695, %v3690_v30  ;;  %v4902_v30 = vld [vmem:[%s9234_s11 + $0x2c8] sm:$0xff] }
0x1688   :  { %v3682_v2 = vpop.xlane.xlu0 %3681  ;;  %v3710_v8 = vsel %vm1038_vm2, %v8664_v3, 0.0  ;;  %v8668_v63 = vpop.eup %6466 }
0x1689   :  { %6472 = vpow2.f32 %v3702_v0  ;;  %v3692_v12 = vsub.f32 %v3654_v49, %v3682_v2  ;;  %3711 = vadd.xlane.f32.xlu0 %v3710_v8  ;;  %v3716_v55 = vsel %vm1038_vm2, %v8668_v63, 0.0  ;;  %v4896_v49 = vld [vmem:[%s9234_s11 + $0x298] sm:$0xff]  ;;  %v6073_v0 = vpack.c.bf16 %v4902_v30, %v4901_v53  ;;  %v4885_v2 = vld [vmem:[%s9234_s11 + $0x240] sm:$0xff]  ;;  %v4886_v8 = vld [vmem:[%s9234_s11 + $0x248] sm:$0xff] }
0x168a   :  { %v6061_v11 = vpack.c.bf16 %v4896_v49, %v4895_v56  ;;  %v4891_v56 = vld [vmem:[%s9234_s11 + $0x270] sm:$0xff]  ;;  %v4892_v49 = vld [vmem:[%s9234_s11 + $0x278] sm:$0xff]  ;;  %v4909_v30 = vld [vmem:[%s9234_s11 + $0x300] sm:$0xff] }
0x168b   :  { %v3706_v44 = vmul.f32 1.442695, %v3692_v12  ;;  %v8672_v42 = vpop.eup %6468  ;;  %v6075_v12 = vpack.c.bf16 %v4886_v8, %v4885_v2  ;;  %v4910_v8 = vld [vmem:[%s9234_s11 + $0x308] sm:$0xff] }
0x168c   :  { %v3685_v20 = vpop.xlane.xlu0 %3684  ;;  %v3719_v1 = vsel %vm1038_vm2, %v8672_v42, 0.0  ;;  %6062 = vmatprep.subr.bf16.mxu0 %v6061_v11  ;;  %v6087_v11 = vpack.c.bf16 %v4892_v49, %v4891_v56  ;;  %v6091_v48 = vpack.c.bf16 %v4910_v8, %v4909_v30  ;;  %v4935_v8 = vld [vmem:[%s9234_s11 + $0x3d0] sm:$0xff] }
0x168d   :  { %6474 = vpow2.f32 %v3706_v44  ;;  %v3693_v39 = vsub.f32 %v3659_v22, %v3685_v20  ;;  %3717 = vadd.xlane.f32.xlu0 %v3716_v55  ;;  %v4879_v22 = vld [vmem:[%s9234_s11 + $0x210] sm:$0xff]  ;;  %v4904_v20 = vld [vmem:[%s9234_s11 + $0x2d8] sm:$0xff] }
0x168e   :  { %v6063_v60 = vpack.c.bf16 %v4880_v58, %v4879_v22  ;;  %v4903_v44 = vld [vmem:[%s9234_s11 + $0x2d0] sm:$0xff] }
0x168f   :  { %v3708_v23 = vmul.f32 1.442695, %v3693_v39  ;;  %v8676_v61 = vpop.eup %6470  ;;  %v6077_v55 = vpack.c.bf16 %v4904_v20, %v4903_v44  ;;  %v4887_v39 = vld [vmem:[%s9234_s11 + $0x250] sm:$0xff]  ;;  %v4928_v44 = vld [vmem:[%s9234_s11 + $0x398] sm:$0xff] }
0x1690   :  { %v3725_v62 = vsel %vm1038_vm2, %v8676_v61, 0.0  ;;  %6064 = vmatpush3.bf16.msra.mxu0 %v6063_v60 }
0x1691   :  { %6476 = vpow2.f32 %v3708_v23  ;;  %3720 = vadd.xlane.f32.xlu0 %v3719_v1  ;;  %6066 = vmatprep.subr.bf16.mxu0 %v6065_v32  ;;  %v4888_v23 = vld [vmem:[%s9234_s11 + $0x258] sm:$0xff] }
0x1692   :  { %v6079_v1 = vpack.c.bf16 %v4888_v23, %v4887_v39 }
0x1693   :  { %v8690_v5 = vpop.eup %6472 }
0x1694   :  { %v3722_v6 = vsel %vm1038_vm2, %v8690_v5, 0.0  ;;  %6068 = vmatpush3.bf16.msra.mxu0 %v6067_v57 }
0x1695   :  { %3726 = vadd.xlane.f32.xlu0 %v3725_v62  ;;  %3723 = vadd.xlane.f32.xlu1 %v3722_v6  ;;  %v4907_v62 = vld [vmem:[%s9234_s11 + $0x2f0] sm:$0xff] }
0x1696   :  { %6070 = vmatprep.subr.bf16.mxu0 %v6069_v34  ;;  %v4926_v34 = vld [vmem:[%s9234_s11 + $0x388] sm:$0xff] }
0x1697   :  { %v8708_v38 = vpop.eup %6474  ;;  %v6089_v2 = vpack.c.bf16 %v4926_v34, %v4925_v43  ;;  %v4915_v34 = vld [vmem:[%s9234_s11 + $0x330] sm:$0xff] }
0x1698   :  { %v3728_v29 = vsel %vm1038_vm2, %v8708_v38, 0.0  ;;  %6072 = vmatpush3.bf16.msra.mxu0 %v6071_v18 }
0x1699   :  { %3729 = vadd.xlane.f32.xlu1 %v3728_v29  ;;  %6074 = vmatprep.subr.bf16.mxu0 %v6073_v0 }
0x169b   :  { %v8724_v7 = vpop.eup %6476 }
0x169c   :  { %v3731_v35 = vsel %vm1038_vm2, %v8724_v7, 0.0  ;;  %6076 = vmatpush3.bf16.msra.mxu0 %v6075_v12  ;;  %v4927_v12 = vld [vmem:[%s9234_s11 + $0x390] sm:$0xff] }
0x169d   :  { %3732 = vadd.xlane.f32.xlu0 %v3731_v35  ;;  %6078 = vmatprep.subr.bf16.mxu0 %v6077_v55  ;;  %v6093_v27 = vpack.c.bf16 %v4928_v44, %v4927_v12  ;;  %v4936_v12 = vld [vmem:[%s9234_s11 + $0x3d8] sm:$0xff] }
0x16a0   :  { %6080 = vmatpush3.bf16.msra.mxu0 %v6079_v1 }
0x16a1   :  { %6082 = vmatprep.subr.bf16.mxu0 %v6081_v45  ;;  %v4911_v45 = vld [vmem:[%s9234_s11 + $0x310] sm:$0xff] }
0x16a4   :  { %6084 = vmatpush3.bf16.msra.mxu0 %v6083_v37 }
0x16aa   :  { %3774 = vrot.lane.b32.xlu1 %v8141_v28, %s6597_s6  ;;  %v4908_v28 = vld [vmem:[%s9234_s11 + $0x2f8] sm:$0xff] }
0x16ab   :  { %v6085_v6 = vpack.c.bf16 %v4908_v28, %v4907_v62 }
0x16ad   :  { %6086 = vmatprep.subr.bf16.mxu0 %v6085_v6 }
0x16ae   :  { %6244 = vrot.lane.b32.xlu1 %v6243_v4, %s6597_s6  ;;  %6088 = vmatpush3.bf16.msra.mxu0 %v6087_v11  ;;  %v4929_v11 = vld [vmem:[%s9234_s11 + $0x3a0] sm:$0xff] }
0x16b3   :  { %6239 = vrot.lane.b32.xlu0 %v6238_v10, %s6597_s6 }
0x1712   :  { %v3715_v13 = vpop.xlane.xlu0 %3714 }
0x1713   :  { %6478 = vrcp.f32 %v3715_v13 }
0x1716   :  { %v3712_v51 = vpop.xlane.xlu0 %3711 }
0x1717   :  { %6480 = vrcp.f32 %v3712_v51 }
0x171a   :  { %v3718_v4 = vpop.xlane.xlu0 %3717 }
0x171b   :  { %6482 = vrcp.f32 %v3718_v4 }
0x171d   :  { %v6479_v58 = vpop.eup %6478 }
0x171e   :  { %v3721_v22 = vpop.xlane.xlu0 %3720  ;;  %v3743_v32 = vmul.f32 %v6479_v58, %v3715_v13  ;;  %v4930_v13 = vld [vmem:[%s9234_s11 + $0x3a8] sm:$0xff] }
0x171f   :  { %6484 = vrcp.f32 %v3721_v22 }
0x1720   :  { %v3751_v57 = vsub.f32 2.0, %v3743_v32  ;;  %v4913_v32 = vld [vmem:[%s9234_s11 + $0x320] sm:$0xff] }
0x1721   :  { %v6481_v60 = vpop.eup %6480 }
0x1722   :  { %v3742_v29 = vmul.f32 %v6481_v60, %v3712_v51  ;;  %v3724_v36 = vpop.xlane.xlu1 %3723  ;;  %v3727_v46 = vpop.xlane.xlu0 %3726 }
0x1723   :  { %6486 = vrcp.f32 %v3724_v36 }
0x1724   :  { %v3750_v40 = vsub.f32 2.0, %v3742_v29  ;;  %6488 = vrcp.f32 %v3727_v46 }
0x1725   :  { %v6483_v21 = vpop.eup %6482 }
0x1726   :  { %v3758_v17 = vmul.f32 %v6481_v60, %v3750_v40  ;;  %v3744_v54 = vmul.f32 %v6483_v21, %v3718_v4  ;;  %v3730_v10 = vpop.xlane.xlu1 %3729 }
0x1727   :  { %6490 = vrcp.f32 %v3730_v10 }
0x1728   :  { %v3766_v35 = vmul.f32 %v8664_v3, %v3758_v17  ;;  %v3752_v33 = vsub.f32 2.0, %v3744_v54  ;;  %v3759_v3 = vmul.f32 %v6479_v58, %v3751_v57 }
0x1729   :  { %v6485_v41 = vpop.eup %6484 }
0x172a   :  { %v3745_v16 = vmul.f32 %v6485_v41, %v3721_v22  ;;  %v3775_v18 = vpop.permute.xlu1 %3774  ;;  %5698 = vmatprep.mubr.msk.f32.mxu1 %vm1038_vm2, %v3766_v35  ;;  %v3733_v53 = vpop.xlane.xlu0 %3732  ;;  %v3760_v20 = vmul.f32 %v6483_v21, %v3752_v33  ;;  %v3767_v52 = vmul.f32 %v8660_v15, %v3759_v3  ;;  %v6095_v22 = vpack.c.bf16 %v4912_v25, %v4911_v45  ;;  %v4939_v45 = vld [vmem:[%s9234_s11 + $0x3f0] sm:$0xff]  ;;  %v4940_v25 = vld [vmem:[%s9234_s11 + $0x3f8] sm:$0xff] }
0x172b   :  { %v6053_v0 = vpack.c.bf16 %v6237_v59, %v3775_v18  ;;  %6492 = vrcp.f32 %v3733_v53 }
0x172c   :  { %v3753_v55 = vsub.f32 2.0, %v3745_v16  ;;  %v3768_v6 = vmul.f32 %v8668_v63, %v3760_v20  ;;  %v4933_v16 = vld [vmem:[%s9234_s11 + $0x3c0] sm:$0xff]  ;;  %v6109_v20 = vpack.c.bf16 %v4936_v12, %v4935_v8 }
0x172d   :  { %v6487_v39 = vpop.eup %6486  ;;  %6054 = vmatprep.subr.bf16.mxu1 %v6053_v0 }
0x172e   :  { %v6489_v26 = vpop.eup %6488  ;;  %v3746_v59 = vmul.f32 %v6487_v39, %v3724_v36  ;;  %6056 = vmatpush3.bf16.msra.mxu1 %v6053_v0  ;;  %v8820_v23 = vpop.permute.xlu1 %6244  ;;  %v3761_v37 = vmul.f32 %v6485_v41, %v3753_v55  ;;  %v4916_v41 = vld [vmem:[%s9234_s11 + $0x338] sm:$0xff]  ;;  %v4917_v0 = vld [vmem:[%s9234_s11 + $0x340] sm:$0xff]  ;;  %v4919_v55 = vld [vmem:[%s9234_s11 + $0x350] sm:$0xff] }
0x172f   :  { %v8822_v1 = vpop.permute.xlu0 %6239  ;;  %v3747_v62 = vmul.f32 %v6489_v26, %v3727_v46  ;;  %v6246_v28 = vunpack.i.l.bf16 %v8820_v23  ;;  %6090 = vmatprep.subr.bf16.mxu1 %v6089_v2  ;;  %v6097_v46 = vpack.c.bf16 %v4930_v13, %v4929_v11  ;;  %v4918_v2 = vld [vmem:[%s9234_s11 + $0x348] sm:$0xff] }
0x1730   :  { %v3754_v56 = vsub.f32 2.0, %v3746_v59  ;;  %v6241_v49 = vunpack.i.l.bf16 %v8822_v1  ;;  %v3769_v29 = vmul.f32 %v8672_v42, %v3761_v37  ;;  %v4932_v42 = vld [vmem:[%s9234_s11 + $0x3b8] sm:$0xff]  ;;  %v6242_v18 = vunpack.i.h.bf16 %v8822_v1 }
0x1731   :  { %v6491_v51 = vpop.eup %6490  ;;  %v3755_v15 = vsub.f32 2.0, %v3747_v62  ;;  %5699 = vmatmul.mubr.msk.f32.vlgmr.msra.gmra.mrb[66].mxu1 %vm1038_vm2, %v3767_v52  ;;  %v3518_v4 = vsel %vm115_vm0, %v8626_v50, %v6246_v28  ;;  %v4914_v50 = vld [vmem:[%s9234_s11 + $0x328] sm:$0xff]  ;;  %v6107_v44 = vpack.c.bf16 %v4918_v2, %v4917_v0  ;;  %v6117_v37 = vpack.c.bf16 %v4940_v25, %v4939_v45  ;;  %v4923_v62 = vld [vmem:[%s9234_s11 + $0x370] sm:$0xff]  ;;  %v4924_v28 = vld [vmem:[%s9234_s11 + $0x378] sm:$0xff] }
0x1732   :  { %v3762_v63 = vmul.f32 %v6487_v39, %v3754_v56  ;;  %v3748_v58 = vmul.f32 %v6491_v51, %v3730_v10  ;;  %5701 = vmatprep.mubr.msk.f32.mxu1 %vm1038_vm2, %v3768_v6  ;;  %v3519_v60 = vsel %vm115_vm0, %v8630_v14, %v6241_v49  ;;  %6092 = vmatpush3.bf16.msra.mxu1 %v6091_v48  ;;  %v4931_v14 = vld [vmem:[%s9234_s11 + $0x3b0] sm:$0xff]  ;;  %v4920_v39 = vld [vmem:[%s9234_s11 + $0x358] sm:$0xff]  ;;  %v4921_v48 = vld [vmem:[%s9234_s11 + $0x360] sm:$0xff]  ;;  %v6247_v56 = vunpack.i.h.bf16 %v8820_v23 }
0x1733   :  { %v3763_v36 = vmul.f32 %v6489_v26, %v3755_v15  ;;  %4055 = vmatprep.mubr.f32.mxu0 %v3519_v60  ;;  %6094 = vmatprep.subr.bf16.mxu1 %v6093_v27  ;;  %v6099_v57 = vpack.c.bf16 %v4914_v50, %v4913_v32  ;;  %v6101_v35 = vpack.c.bf16 %v4932_v42, %v4931_v14  ;;  %v4937_v26 = vld [vmem:[%s9234_s11 + $0x3e0] sm:$0xff]  ;;  %v4922_v27 = vld [vmem:[%s9234_s11 + $0x368] sm:$0xff] }
0x1734   :  { %v3770_v40 = vmul.f32 %v8690_v5, %v3762_v63  ;;  %v3756_v21 = vsub.f32 2.0, %v3748_v58  ;;  %4056 = vmatmul.mubr.f32.vlgmr.msra.gmra.mrb[66].mxu0 %v3518_v4  ;;  %v6111_v59 = vpack.c.bf16 %v4920_v39, %v4919_v55  ;;  %v6115_v52 = vpack.c.bf16 %v4922_v27, %v4921_v48 }
0x1735   :  { %v6493_v17 = vpop.eup %6492  ;;  %5702 = vmatmul.mubr.msk.f32.gmra.mrb[68].mxu1 %vm1038_vm2, %v3769_v29  ;;  %v3771_v5 = vmul.f32 %v8676_v61, %v3763_v36  ;;  %v4934_v61 = vld [vmem:[%s9234_s11 + $0x3c8] sm:$0xff]  ;;  %v6119_v6 = vpack.c.bf16 %v4924_v28, %v4923_v62  ;;  %v3520_v49 = vsel %vm115_vm0, %v8636_v24, %v6247_v56 }
0x1736   :  { %v3764_v54 = vmul.f32 %v6491_v51, %v3756_v21  ;;  %v3749_v10 = vmul.f32 %v6493_v17, %v3733_v53  ;;  %5704 = vmatprep.mubr.msk.f32.mxu1 %vm1038_vm2, %v3770_v40  ;;  %6096 = vmatpush3.bf16.msra.mxu1 %v6095_v22  ;;  %v6103_v53 = vpack.c.bf16 %v4916_v41, %v4915_v34 }
0x1737   :  { %6098 = vmatprep.subr.bf16.mxu1 %v6097_v46  ;;  %v6105_v3 = vpack.c.bf16 %v4934_v61, %v4933_v16 }
0x1738   :  { %v3772_v33 = vmul.f32 %v8708_v38, %v3764_v54  ;;  %v3757_v43 = vsub.f32 2.0, %v3749_v10 }
0x1739   :  { %5705 = vmatmul.mubr.msk.f32.gmra.mrb[70].mxu1 %vm1038_vm2, %v3771_v5 }
0x173a   :  { %v3765_v38 = vmul.f32 %v6493_v17, %v3757_v43  ;;  %5707 = vmatprep.mubr.msk.f32.mxu1 %vm1038_vm2, %v3772_v33  ;;  %6100 = vmatpush3.bf16.msra.mxu1 %v6099_v57 }
0x173b   :  { %6102 = vmatprep.subr.bf16.mxu1 %v6101_v35 }
0x173c   :  { %v3773_v30 = vmul.f32 %v8724_v7, %v3765_v38  ;;  %v3521_v7 = vsel %vm115_vm0, %v8642_v31, %v6242_v18  ;;  %v4938_v31 = vld [vmem:[%s9234_s11 + $0x3e8] sm:$0xff] }
0x173d   :  { %v6113_v1 = vpack.c.bf16 %v4938_v31, %v4937_v26  ;;  %v4942_v31 = vld [vmem:[%s9235_s12 + $0x1] ss:$0 sm:$0xff] }
0x173e   :  { %5708 = vmatmul.mubr.msk.f32.gmra.mrb[72].mxu1 %vm1038_vm2, %v3773_v30 }
0x173f   :  { %6104 = vmatpush3.bf16.msra.mxu1 %v6103_v53  ;;  %4130 = vmatprep.mubr.f32.mxu1 %v3521_v7 }
0x1740   :  { %6106 = vmatprep.subr.bf16.mxu1 %v6105_v3 }
0x1743   :  { %6108 = vmatpush3.bf16.msra.mxu1 %v6107_v44 }
0x1744   :  { %6110 = vmatprep.subr.bf16.mxu1 %v6109_v20 }
0x1747   :  { %6112 = vmatpush3.bf16.msra.mxu1 %v6111_v59 }
0x1748   :  { %6114 = vmatprep.subr.bf16.mxu1 %v6113_v1 }
0x174b   :  { %6116 = vmatpush3.bf16.msra.mxu1 %v6115_v52 }
0x174c   :  { %6118 = vmatprep.subr.bf16.mxu1 %v6117_v37 }
0x174f   :  { %6120 = vmatpush3.bf16.msra.mxu1 %v6119_v6 }
0x1752   :  { %4131 = vmatmul.mubr.f32.vlgmr.msra.gmra.mrb[74].mxu1 %v3520_v49 }
0x1804   :  { %v5700_v11 = vpop.f32.mrb[66].mxu1 }
0x1805   :  { %v3867_v13 = vpop.f32.mrb[67].mxu1 }
0x1807   :  { %v5334_v51 = vpop.f32.mrb[66].mxu0 }
0x1808   :  { %v5335_v15 = vpop.f32.mrb[67].mxu0  ;;  %v5703_v4 = vpop.f32.mrb[68].mxu1 }
0x1809   :  { %v5336_v22 = vadd.f32 %v5335_v15, %v5334_v51  ;;  %v3877_v63 = vpop.f32.mrb[69].mxu1 }
0x180c   :  { %v5706_v58 = vpop.f32.mrb[70].mxu1 }
0x180d   :  { %v6253_v60 = vpack.i.bf16 %v5706_v58, %v5700_v11  ;;  %v3887_v29 = vpop.f32.mrb[71].mxu1  ;;  %v4950_v58 = vld [vmem:[%s9237_s14 + $0x128] sm:$0xff] }
0x1811   :  { %v5709_v36 = vpop.f32.mrb[72].mxu1 }
0x1812   :  { %v6248_v46 = vpack.i.bf16 %v5709_v36, %v5703_v4  ;;  %v3897_v32 = vpop.f32.mrb[73].mxu1  ;;  %v4945_v36 = vld [vmem:[%s9237_s14 + $0x100] sm:$0xff] }
0x1814   :  { %6249 = vrot.lane.b32.xlu1 %v6248_v46, %s6597_s6  ;;  %v4949_v46 = vld [vmem:[%s9237_s14 + $0x120] sm:$0xff] }
0x1818   :  { %6254 = vrot.lane.b32.xlu1 %v6253_v60, %s6597_s6  ;;  %v4948_v60 = vld [vmem:[%s9237_s14 + $0x118] sm:$0xff] }
0x1825   :  { %v5372_v23 = vpop.f32.mrb[74].mxu1 }
0x1826   :  { %v5373_v24 = vpop.f32.mrb[75].mxu1 }
0x1827   :  { %v5374_v50 = vadd.f32 %v5373_v24, %v5372_v23  ;;  %v6123_v23 = vpack.c.bf16 %v4949_v46, %v4945_v36  ;;  %v4947_v24 = vld [vmem:[%s9237_s14 + $0x110] sm:$0xff]  ;;  %v5004_v36 = vld [vmem:[%s9238_s15 + $0x198] sm:$0xff] }
0x1829   :  { %v4133_v40 = vadd.f32 %v5374_v50, %v5336_v22  ;;  %v4951_v50 = vld [vmem:[%s9237_s14 + $0x130] sm:$0xff] }
0x182b   :  { %v4143_v21 = vsel %vm115_vm0, %v4133_v40, 0.0 }
0x182c   :  { %4144 = vadd.xlane.f32.xlu0 %v4143_v21  ;;  %v4954_v21 = vld [vmem:[%s9237_s14 + $0x148] sm:$0xff] }
0x1886   :  { %v6250_v14 = vpop.permute.xlu1 %6249 }
0x1887   :  { %v6252_v42 = vunpack.i.h.bf16 %v6250_v14  ;;  %v6251_v17 = vunpack.i.l.bf16 %v6250_v14  ;;  %v4958_v14 = vld [vmem:[%s9237_s14 + $0x168] sm:$0xff] }
0x1889   :  { %v3923_v54 = vsel %vm115_vm0, %v3877_v63, %v6251_v17  ;;  %v3925_v10 = vsel %vm115_vm0, %v3897_v32, %v6252_v42  ;;  %v4946_v63 = vld [vmem:[%s9237_s14 + $0x108] sm:$0xff]  ;;  %v4956_v42 = vld [vmem:[%s9237_s14 + $0x158] sm:$0xff]  ;;  %v6125_v17 = vpack.c.bf16 %v4958_v14, %v4954_v21  ;;  %v4989_v14 = vld [vmem:[%s9238_s15 + $0x120] sm:$0xff] }
0x188a   :  { %v6255_v57 = vpop.permute.xlu1 %6254  ;;  %4060 = vmatprep.mubr.f32.mxu0 %v3923_v54  ;;  %4135 = vmatprep.mubr.f32.mxu1 %v3925_v10  ;;  %v4960_v54 = vld [vmem:[%s9237_s14 + $0x178] sm:$0xff]  ;;  %v4953_v10 = vld [vmem:[%s9237_s14 + $0x140] sm:$0xff] }
0x188b   :  { %v6257_v5 = vunpack.i.h.bf16 %v6255_v57  ;;  %v6256_v35 = vunpack.i.l.bf16 %v6255_v57  ;;  %v4957_v57 = vld [vmem:[%s9237_s14 + $0x160] sm:$0xff] }
0x188d   :  { %v3922_v33 = vsel %vm115_vm0, %v3867_v13, %v6256_v35  ;;  %v3924_v43 = vsel %vm115_vm0, %v3887_v29, %v6257_v5  ;;  %v6121_v29 = vpack.c.bf16 %v4950_v58, %v4946_v63  ;;  %v6141_v5 = vpack.c.bf16 %v4960_v54, %v4956_v42  ;;  %v5002_v63 = vld [vmem:[%s9238_s15 + $0x188] sm:$0xff]  ;;  %v5007_v54 = vld [vmem:[%s9238_s15 + $0x1b0] sm:$0xff] }
0x188e   :  { %4061 = vmatmul.mubr.f32.gmra.mrb[68].mxu0 %v3922_v33  ;;  %4136 = vmatmul.mubr.f32.gmra.mrb[76].mxu1 %v3924_v43  ;;  %v6127_v35 = vpack.c.bf16 %v4957_v57, %v4953_v10  ;;  %v4955_v33 = vld [vmem:[%s9237_s14 + $0x150] sm:$0xff]  ;;  %v4990_v42 = vld [vmem:[%s9238_s15 + $0x128] sm:$0xff]  ;;  %v5008_v10 = vld [vmem:[%s9238_s15 + $0x1b8] sm:$0xff] }
0x188f   :  { %4318 = vmatprep.mubr.f32.mxu0 %v9255_v47  ;;  %4395 = vmatprep.mubr.f32.mxu1 %v9255_v47  ;;  %v4959_v43 = vld [vmem:[%s9237_s14 + $0x170] sm:$0xff]  ;;  %v6165_v57 = vpack.c.bf16 %v5008_v10, %v5007_v54 }
0x1890   :  { %6122 = vmatprep.subr.bf16.mxu0 %v6121_v29  ;;  %v4986_v29 = vld [vmem:[%s9238_s15 + $0x108] sm:$0xff] }
0x1891   :  { %6124 = vmatpush1.bf16.msra.mxu0 %v6123_v23  ;;  %v4988_v23 = vld [vmem:[%s9238_s15 + $0x118] sm:$0xff] }
0x1892   :  { %6126 = vmatprep.subr.bf16.mxu0 %v6125_v17  ;;  %v6163_v17 = vpack.c.bf16 %v4990_v42, %v4989_v14 }
0x1895   :  { %6128 = vmatpush1.bf16.msra.mxu0 %v6127_v35  ;;  %v4992_v35 = vld [vmem:[%s9238_s15 + $0x138] sm:$0xff] }
0x18b9   :  { %v4145_v34 = vpop.xlane.xlu0 %4144 }
0x18ba   :  { %v4149_v41 = vmul.f32 0.015625, %v4145_v34  ;;  %v6143_v34 = vpack.c.bf16 %v4959_v43, %v4955_v33  ;;  %v5009_v43 = vld [vmem:[%s9238_s15 + $0x1c0] sm:$0xff] }
0x18bc   :  { %v4151_v16 = vsub.f32 %v4133_v40, %v4149_v41  ;;  %v6139_v40 = vpack.c.bf16 %v4951_v50, %v4947_v24  ;;  %v4962_v41 = vld [vmem:[%s9237_s14 + $0x188] sm:$0xff]  ;;  %v5005_v50 = vld [vmem:[%s9238_s15 + $0x1a0] sm:$0xff] }
0x18be   :  { %v4153_v61 = vmul.f32 %v4151_v16, %v4151_v16 }
0x18c0   :  { %v4155_v38 = vsel %vm115_vm0, %v4153_v61, 0.0  ;;  %v4964_v61 = vld [vmem:[%s9237_s14 + $0x198] sm:$0xff] }
0x18c1   :  { %4156 = vadd.xlane.f32.xlu0 %v4155_v38 }
0x194e   :  { %v4157_v7 = vpop.xlane.xlu0 %4156 }
0x194f   :  { %v4161_v44 = vmul.f32 0.015625, %v4157_v7  ;;  %v4970_v7 = vld [vmem:[%s9237_s14 + $0x1c8] sm:$0xff] }
0x1951   :  { %v4163_v20 = vadd.f32 1e-05, %v4161_v44  ;;  %v4974_v44 = vld [vmem:[%s9237_s14 + $0x1e8] sm:$0xff] }
0x1953   :  { %6494 = vrsqrt.f32 %v4163_v20  ;;  %v4972_v20 = vld [vmem:[%s9237_s14 + $0x1d8] sm:$0xff] }
0x195d   :  { %v6495_v55 = vpop.eup %6494 }
0x195e   :  { %v4167_v39 = vmul.f32 %v6495_v55, %v4151_v16  ;;  %v4966_v16 = vld [vmem:[%s9237_s14 + $0x1a8] sm:$0xff]  ;;  %v6133_v55 = vpack.c.bf16 %v4974_v44, %v4970_v7  ;;  %v4997_v44 = vld [vmem:[%s9238_s15 + $0x160] sm:$0xff] }
0x195f   :  { %v6129_v38 = vpack.c.bf16 %v4966_v16, %v4962_v41  ;;  %v4993_v16 = vld [vmem:[%s9238_s15 + $0x140] sm:$0xff] }
0x1960   :  { %v4175_v48 = vmul.f32 %v4942_v31, %v4167_v39  ;;  %v4976_v39 = vld [vmem:[%s9237_s14 + $0x1f8] sm:$0xff] }
0x1961   :  { %v5337_v18 = vpop.f32.mrb[68].mxu0  ;;  %v5375_v53 = vpop.f32.mrb[76].mxu1  ;;  %6130 = vmatprep.subr.bf16.mxu0 %v6129_v38 }
0x1962   :  { %v5338_v30 = vpop.f32.mrb[69].mxu0  ;;  %v5376_v3 = vpop.f32.mrb[77].mxu1  ;;  %v8944_v25 = vadd.f32 %v4175_v48, %v7958_v9  ;;  %v4971_v48 = vld [vmem:[%s9237_s14 + $0x1d0] sm:$0xff] }
0x1963   :  { %v5339_v0 = vadd.f32 %v5338_v30, %v5337_v18  ;;  %v5377_v2 = vadd.f32 %v5376_v3, %v5375_v53  ;;  %v4968_v18 = vld [vmem:[%s9237_s14 + $0x1b8] sm:$0xff]  ;;  %v4961_v53 = vld [vmem:[%s9237_s14 + $0x180] sm:$0xff] }
0x1964   :  { %v4181_v52 = vsel %vm115_vm0, %v8944_v25, 0.0  ;;  %v4965_v30 = vld [vmem:[%s9237_s14 + $0x1a0] sm:$0xff]  ;;  %v6145_v3 = vpack.c.bf16 %v4968_v18, %v4964_v61  ;;  %v4994_v61 = vld [vmem:[%s9238_s15 + $0x148] sm:$0xff]  ;;  %v5011_v18 = vld [vmem:[%s9238_s15 + $0x1d0] sm:$0xff] }
0x1965   :  { %v4138_v8 = vadd.f32 %v5377_v2, %v5339_v0  ;;  %v6131_v0 = vpack.c.bf16 %v4965_v30, %v4961_v53  ;;  %v4963_v2 = vld [vmem:[%s9237_s14 + $0x190] sm:$0xff]  ;;  %v6171_v38 = vpack.c.bf16 %v4994_v61, %v4993_v16  ;;  %v5012_v53 = vld [vmem:[%s9238_s15 + $0x1d8] sm:$0xff] }
0x1966   :  { %v6173_v30 = vpack.c.bf16 %v5012_v53, %v5011_v18 }
0x1967   :  { %v4146_v12 = vsel %vm115_vm0, %v4138_v8, 0.0  ;;  %6132 = vmatpush1.bf16.msra.mxu0 %v6131_v0  ;;  %v4996_v0 = vld [vmem:[%s9238_s15 + $0x158] sm:$0xff] }
0x1968   :  { %4147 = vadd.xlane.f32.xlu1 %v4146_v12  ;;  %6134 = vmatprep.subr.bf16.mxu0 %v6133_v55 }
0x19f5   :  { %v4148_v26 = vpop.xlane.xlu1 %4147 }
0x19f6   :  { %v4150_v59 = vmul.f32 0.015625, %v4148_v26  ;;  %v4969_v26 = vld [vmem:[%s9237_s14 + $0x1c0] sm:$0xff] }
0x19f8   :  { %v4152_v1 = vsub.f32 %v4138_v8, %v4150_v59  ;;  %v4967_v8 = vld [vmem:[%s9237_s14 + $0x1b0] sm:$0xff]  ;;  %v6149_v59 = vpack.c.bf16 %v4976_v39, %v4972_v20  ;;  %v4998_v20 = vld [vmem:[%s9238_s15 + $0x168] sm:$0xff] }
0x19f9   :  { %v6147_v12 = vpack.c.bf16 %v4967_v8, %v4963_v2  ;;  %v5013_v8 = vld [vmem:[%s9238_s15 + $0x1e0] sm:$0xff]  ;;  %v6179_v55 = vpack.c.bf16 %v4998_v20, %v4997_v44  ;;  %v5015_v39 = vld [vmem:[%s9238_s15 + $0x1f0] sm:$0xff] }
0x19fa   :  { %v4154_v27 = vmul.f32 %v4152_v1, %v4152_v1 }
0x19fc   :  { %v4158_v45 = vsel %vm115_vm0, %v4154_v27, 0.0  ;;  %v4975_v27 = vld [vmem:[%s9237_s14 + $0x1f0] sm:$0xff] }
0x19fd   :  { %4159 = vadd.xlane.f32.xlu0 %v4158_v45  ;;  %v6151_v45 = vpack.c.bf16 %v4975_v27, %v4971_v48 }
0x1a01   :  { %4182 = vadd.xlane.f32.xlu0 %v4181_v52 }
0x1a8a   :  { %v4160_v37 = vpop.xlane.xlu0 %4159 }
0x1a8b   :  { %v4162_v62 = vmul.f32 0.015625, %v4160_v37 }
0x1a8d   :  { %v4164_v28 = vadd.f32 1e-05, %v4162_v62 }
0x1a8e   :  { %v4183_v6 = vpop.xlane.xlu0 %4182 }
0x1a8f   :  { %6496 = vrsqrt.f32 %v4164_v28  ;;  %v4187_v56 = vmul.f32 0.015625, %v4183_v6 }
0x1a91   :  { %v8949_v49 = vsub.f32 %v8944_v25, %v4187_v56 }
0x1a93   :  { %v4191_v11 = vmul.f32 %v8949_v49, %v8949_v49 }
0x1a95   :  { %v4193_v9 = vsel %vm115_vm0, %v4191_v11, 0.0 }
0x1a96   :  { %4194 = vadd.xlane.f32.xlu0 %v4193_v9  ;;  %v9061_v9 = vld [vmem:[%s9236_s13 + $0x1] ss:$0 sm:$0xff]  ;;  %s4691_s13 = sshll.u32 %s6598_s22, 4  ;;  %s4692_s13 = int_to_ptr.vmem [resolvable:$true] %s4691_s13 }
0x1a97   :  { %p6577_p1 = scmp.lt.s32.totalorder %s4692_s13, %s4692_s13 }
0x1a99   :  { %v6497_v13 = vpop.eup %6496 }
0x1a9a   :  { %v4168_v51 = vmul.f32 %v6497_v13, %v4152_v1 }
0x1a9c   :  { %v4176_v15 = vmul.f32 %v4942_v31, %v4168_v51  ;;  %v4973_v31 = vld [vmem:[%s9237_s14 + $0x1e0] sm:$0xff] }
0x1a9d   :  { %v6135_v1 = vpack.c.bf16 %v4973_v31, %v4969_v26  ;;  %v5016_v26 = vld [vmem:[%s9238_s15 + $0x1f8] sm:$0xff] }
0x1a9e   :  { %v8955_v4 = vadd.f32 %v4176_v15, %v7965_v19  ;;  %v4952_v19 = vld [vmem:[%s9237_s14 + $0x138] sm:$0xff]  ;;  %v6181_v31 = vpack.c.bf16 %v5016_v26, %v5015_v39 }
0x1a9f   :  { %v6137_v32 = vpack.c.bf16 %v4952_v19, %v4948_v60  ;;  %6136 = vmatpush1.bf16.msra.mxu0 %v6135_v1  ;;  %v4985_v60 = vld [vmem:[%s9238_s15 + $0x100] sm:$0xff]  ;;  %v5000_v1 = vld [vmem:[%s9238_s15 + $0x178] sm:$0xff] }
0x1aa0   :  { %v4184_v22 = vsel %vm115_vm0, %v8955_v4, 0.0  ;;  %v6155_v19 = vpack.c.bf16 %v4986_v29, %v4985_v60 }
0x1aa1   :  { %4185 = vadd.xlane.f32.xlu1 %v4184_v22  ;;  %6138 = vmatprep.subr.bf16.mxu1 %v6137_v32  ;;  %v4987_v32 = vld [vmem:[%s9238_s15 + $0x110] sm:$0xff] }
0x1aa2   :  { %6140 = vmatpush1.bf16.msra.mxu1 %v6139_v40  ;;  %v6159_v24 = vpack.c.bf16 %v4988_v23, %v4987_v32  ;;  %v5006_v40 = vld [vmem:[%s9238_s15 + $0x1a8] sm:$0xff] }
0x1aa3   :  { %6142 = vmatprep.subr.bf16.mxu1 %v6141_v5  ;;  %v6161_v21 = vpack.c.bf16 %v5006_v40, %v5005_v50  ;;  %v4991_v5 = vld [vmem:[%s9238_s15 + $0x130] sm:$0xff] }
0x1aa4   :  { %v6167_v33 = vpack.c.bf16 %v4992_v35, %v4991_v5 }
0x1aa6   :  { %6144 = vmatpush1.bf16.msra.mxu1 %v6143_v34  ;;  %v5010_v34 = vld [vmem:[%s9238_s15 + $0x1c8] sm:$0xff] }
0x1aa7   :  { %6146 = vmatprep.subr.bf16.mxu1 %v6145_v3  ;;  %v6169_v41 = vpack.c.bf16 %v5010_v34, %v5009_v43  ;;  %v4995_v3 = vld [vmem:[%s9238_s15 + $0x150] sm:$0xff] }
0x1aa8   :  { %v6175_v2 = vpack.c.bf16 %v4996_v0, %v4995_v3 }
0x1aaa   :  { %6148 = vmatpush1.bf16.msra.mxu1 %v6147_v12  ;;  %v5014_v12 = vld [vmem:[%s9238_s15 + $0x1e8] sm:$0xff] }
0x1aab   :  { %6150 = vmatprep.subr.bf16.mxu1 %v6149_v59  ;;  %v6177_v7 = vpack.c.bf16 %v5014_v12, %v5013_v8  ;;  %v4999_v59 = vld [vmem:[%s9238_s15 + $0x170] sm:$0xff] }
0x1aac   :  { %v6183_v48 = vpack.c.bf16 %v5000_v1, %v4999_v59 }
0x1aae   :  { %6152 = vmatpush1.bf16.msra.mxu1 %v6151_v45 }
0x1b23   :  { %v4195_v52 = vpop.xlane.xlu0 %4194 }
0x1b24   :  { %v4199_v37 = vmul.f32 0.015625, %v4195_v52 }
0x1b26   :  { %v4201_v62 = vadd.f32 1e-05, %v4199_v37 }
0x1b28   :  { %6498 = vrsqrt.f32 %v4201_v62 }
0x1b2e   :  { %v4186_v28 = vpop.xlane.xlu1 %4185 }
0x1b2f   :  { %v4188_v6 = vmul.f32 0.015625, %v4186_v28 }
0x1b31   :  { %v9056_v56 = vsub.f32 %v8955_v4, %v4188_v6 }
0x1b32   :  { %v6499_v11 = vpop.eup %6498 }
0x1b33   :  { %v4205_v13 = vmul.f32 %v6499_v11, %v8949_v49  ;;  %v4192_v51 = vmul.f32 %v9056_v56, %v9056_v56  ;;  %v5001_v49 = vld [vmem:[%s9238_s15 + $0x180] sm:$0xff] }
0x1b34   :  { %v6153_v58 = vpack.c.bf16 %v5002_v63, %v5001_v49 }
0x1b35   :  { %v4213_v15 = vmul.f32 %v9061_v9, %v4205_v13  ;;  %v4196_v22 = vsel %vm115_vm0, %v4192_v51, 0.0 }
0x1b36   :  { %4197 = vadd.xlane.f32.xlu1 %v4196_v22  ;;  %6154 = vmatprep.subr.bf16.mxu0 %v6153_v58 }
0x1b37   :  { %4977 = vmatmul.mubr.msk.f32.vlgmr.msra.gmra.mrb[70].mxu0 %vm115_vm0, %v4213_v15  ;;  %4979 = vmatmul.mubr.msk.f32.vlgmr.msra.gmra.mrb[78].mxu1 %vm115_vm0, %v4213_v15 }
0x1b38   :  { %4324 = vmatprep.mubr.f32.mxu0 %v9255_v47  ;;  %4401 = vmatprep.mubr.f32.mxu1 %v9255_v47  ;;  %v5003_v47 = vld [vmem:[%s9238_s15 + $0x190] sm:$0xff] }
0x1b39   :  { %6156 = vmatpush3.bf16.msra.mxu0 %v6155_v19  ;;  %v6157_v46 = vpack.c.bf16 %v5004_v36, %v5003_v47 }
0x1b3b   :  { %6158 = vmatprep.subr.bf16.mxu0 %v6157_v46 }
0x1b3d   :  { %6160 = vmatpush3.bf16.msra.mxu0 %v6159_v24 }
0x1b3e   :  { %6162 = vmatprep.subr.bf16.mxu0 %v6161_v21 }
0x1b41   :  { %6164 = vmatpush3.bf16.msra.mxu0 %v6163_v17 }
0x1b42   :  { %6166 = vmatprep.subr.bf16.mxu0 %v6165_v57 }
0x1b45   :  { %6168 = vmatpush3.bf16.msra.mxu0 %v6167_v33 }
0x1b46   :  { %6170 = vmatprep.subr.bf16.mxu0 %v6169_v41 }
0x1b49   :  { %6172 = vmatpush3.bf16.msra.mxu0 %v6171_v38 }
0x1b4a   :  { %6174 = vmatprep.subr.bf16.mxu0 %v6173_v30 }
0x1b4d   :  { %6176 = vmatpush3.bf16.msra.mxu0 %v6175_v2 }
0x1b4e   :  { %6178 = vmatprep.subr.bf16.mxu0 %v6177_v7 }
0x1b51   :  { %6180 = vmatpush3.bf16.msra.mxu0 %v6179_v55 }
0x1b52   :  { %6182 = vmatprep.subr.bf16.mxu0 %v6181_v31 }
0x1b55   :  { %6184 = vmatpush3.bf16.msra.mxu0 %v6183_v48 }
0x1bc3   :  { %v4198_v27 = vpop.xlane.xlu1 %4197 }
0x1bc4   :  { %v4200_v45 = vmul.f32 0.015625, %v4198_v27 }
0x1bc6   :  { %v4202_v52 = vadd.f32 1e-05, %v4200_v45 }
0x1bc8   :  { %6500 = vrsqrt.f32 %v4202_v52 }
0x1bd2   :  { %v6501_v37 = vpop.eup %6500 }
0x1bd3   :  { %v4206_v62 = vmul.f32 %v6501_v37, %v9056_v56 }
0x1bd5   :  { %v4214_v28 = vmul.f32 %v9061_v9, %v4206_v62  ;;  %v5017_v62 = vld [vmem:[%s9239_s16] ss:$0 sm:$0xff] }
0x1bd7   :  { %4978 = vmatmul.mubr.msk.f32.gmra.mrb[72].mxu0 %vm115_vm0, %v4214_v28  ;;  %4980 = vmatmul.mubr.msk.f32.gmra.mrb[80].mxu1 %vm115_vm0, %v4214_v28 }
0x1c0a   :  { %v4320_v6 = vpop.f32.mrb[70].mxu0  ;;  %v4397_v11 = vpop.f32.mrb[78].mxu1 }
0x1c0b   :  { %v4981_v13 = vmul.f32 -1.442695, %v4397_v11  ;;  %v4322_v51 = vpop.f32.mrb[71].mxu0  ;;  %v4399_v15 = vpop.f32.mrb[79].mxu1 }
0x1c0c   :  { %v4982_v22 = vmul.f32 -1.442695, %v4399_v15 }
0x1c0d   :  { %6502 = vpow2.f32 %v4981_v13 }
0x1c0e   :  { %6504 = vpow2.f32 %v4982_v22 }
0x1c17   :  { %v6503_v49 = vpop.eup %6502 }
0x1c18   :  { %v6505_v63 = vpop.eup %6504  ;;  %v4420_v58 = vadd.f32 1.0, %v6503_v49  ;;  %v4597_v49 = vld [vmem:[%s9240_s17 + $0x10] sm:$0xff] }
0x1c19   :  { %v4421_v60 = vadd.f32 1.0, %v6505_v63  ;;  %v4598_v63 = vld [vmem:[%s9240_s17 + $0x18] sm:$0xff] }
0x1c1a   :  { %6506 = vrcp.f32 %v4420_v58  ;;  %v6189_v58 = vpack.c.bf16 %v4598_v63, %v4597_v49 }
0x1c1b   :  { %6508 = vrcp.f32 %v4421_v60  ;;  %v4599_v60 = vld [vmem:[%s9240_s17 + $0x20] sm:$0xff] }
0x1c24   :  { %v6507_v56 = vpop.eup %6506 }
0x1c25   :  { %v6509_v9 = vpop.eup %6508  ;;  %v4432_v29 = vmul.f32 %v6507_v56, %v4397_v11  ;;  %v4600_v56 = vld [vmem:[%s9240_s17 + $0x28] sm:$0xff] }
0x1c26   :  { %v4433_v19 = vmul.f32 %v6509_v9, %v4399_v15  ;;  %v4596_v15 = vld [vmem:[%s9240_s17 + $0x8] sm:$0xff]  ;;  %v6193_v9 = vpack.c.bf16 %v4600_v56, %v4599_v60 }
0x1c27   :  { %v4436_v47 = vmul.f32 %v4432_v29, %v4320_v6  ;;  %v4601_v29 = vld [vmem:[%s9240_s17 + $0x30] sm:$0xff] }
0x1c28   :  { %v4437_v36 = vmul.f32 %v4433_v19, %v4322_v51  ;;  %v4595_v51 = vld [vmem:[%s9240_s17] sm:$0xff]  ;;  %v4602_v19 = vld [vmem:[%s9240_s17 + $0x38] sm:$0xff]  ;;  %s6572_s17 = scalar_lea.vmem %s4692_s13, 256 }
0x1c29   :  { %v6185_v22 = vpack.c.bf16 %v4596_v15, %v4595_v51  ;;  %p6573_p0 = scmp.ne.s32.totalorder %s4692_s13, %s6572_s17  ;;  %p6578_p2 = scmp.lt.s32.totalorder %s6572_s17, %s6572_s17 }
0x1c2a   :  { %4537 = vmatprep.mubr.f32.mxu0 %v4437_v36 }
0x1c2b   :  { %4538 = vmatmul.mubr.f32.vlgmr.msra.gmra.mrb[74].mxu0 %v4436_v47  ;;  %6186 = vmatprep.subr.bf16.mxu1 %v6185_v22  ;;  %v6197_v47 = vpack.c.bf16 %v4602_v19, %v4601_v29  ;;  %p6579_p3 = por %p6578_p2, %p6577_p1 }
0x1c2c   :  { %6188 = vmatpush3.bf16.msra.mxu1 %v6185_v22 }
0x1c2d   :  { %6190 = vmatprep.subr.bf16.mxu1 %v6189_v58  ;;  %p6580_p4 = pnand %p6579_p3, %p6573_p0 }
0x1c30   :  { %6192 = vmatpush3.bf16.msra.mxu1 %v6189_v58 }
0x1c31   :  { %6194 = vmatprep.subr.bf16.mxu1 %v6193_v9 }
0x1c34   :  { %6196 = vmatpush3.bf16.msra.mxu1 %v6193_v9 }
0x1c35   :  { %6198 = vmatprep.subr.bf16.mxu1 %v6197_v47 }
0x1c38   :  { %6200 = vmatpush3.bf16.msra.mxu1 %v6197_v47 }
0x1caa   :  { %v4326_v46 = vpop.f32.mrb[72].mxu0  ;;  %v4403_v32 = vpop.f32.mrb[80].mxu1 }
0x1cab   :  { %v4983_v23 = vmul.f32 -1.442695, %v4403_v32  ;;  %v4328_v24 = vpop.f32.mrb[73].mxu0  ;;  %v4405_v50 = vpop.f32.mrb[81].mxu1 }
0x1cac   :  { %v4984_v40 = vmul.f32 -1.442695, %v4405_v50 }
0x1cad   :  { %6510 = vpow2.f32 %v4983_v23 }
0x1cae   :  { %6512 = vpow2.f32 %v4984_v40 }
0x1cb7   :  { %v6511_v21 = vpop.eup %6510 }
0x1cb8   :  { %v6513_v14 = vpop.eup %6512  ;;  %v4422_v42 = vadd.f32 1.0, %v6511_v21 }
0x1cb9   :  { %v4423_v17 = vadd.f32 1.0, %v6513_v14 }
0x1cba   :  { %6514 = vrcp.f32 %v4422_v42 }
0x1cbb   :  { %6516 = vrcp.f32 %v4423_v17 }
0x1cc4   :  { %v6515_v54 = vpop.eup %6514 }
0x1cc5   :  { %v6517_v10 = vpop.eup %6516  ;;  %v4434_v57 = vmul.f32 %v6515_v54, %v4403_v32 }
0x1cc6   :  { %v4435_v5 = vmul.f32 %v6517_v10, %v4405_v50 }
0x1cc7   :  { %v4438_v35 = vmul.f32 %v4434_v57, %v4326_v46 }
0x1cc8   :  { %v4439_v33 = vmul.f32 %v4435_v5, %v4328_v24 }
0x1cca   :  { %4542 = vmatprep.mubr.f32.mxu0 %v4439_v33 }
0x1ccb   :  { %4543 = vmatmul.mubr.f32.gmra.mrb[76].mxu0 %v4438_v35 }
0x1cfe   :  { %v5410_v43 = vpop.f32.mrb[74].mxu0 }
0x1cff   :  { %v5411_v34 = vpop.f32.mrb[75].mxu0 }
0x1d00   :  { %v5412_v41 = vadd.f32 %v5411_v34, %v5410_v43 }
0x1d02   :  { %v4548_v16 = vadd.f32 %v5412_v41, %v8944_v25 }
0x1d04   :  { %v4551_v61 = vsel %vm115_vm0, %v4548_v16, -inf }
0x1d05   :  { %4552 = vmax.xlane.f32.xlu0 %v4551_v61 }
0x1d92   :  { %v4553_v38 = vpop.xlane.xlu0 %4552 }
0x1d93   :  { %6518 = vrcp.f32 %v4553_v38 }
0x1d9d   :  { %v6519_v18 = vpop.eup %6518 }
0x1d9e   :  { %v5413_v53 = vpop.f32.mrb[76].mxu0  ;;  %v4558_v30 = vmul.f32 %v6519_v18, %v4548_v16 }
0x1d9f   :  { %v5414_v3 = vpop.f32.mrb[77].mxu0 }
0x1da0   :  { %v5415_v0 = vadd.f32 %v5414_v3, %v5413_v53  ;;  %v4561_v2 = vsel %vm115_vm0, %v4558_v30, 0.0 }
0x1da1   :  { %4562 = vadd.xlane.f32.xlu0 %v4561_v2 }
0x1da2   :  { %v4549_v8 = vadd.f32 %v5415_v0, %v8955_v4 }
0x1da4   :  { %v4554_v12 = vsel %vm115_vm0, %v4549_v8, -inf }
0x1da5   :  { %4555 = vmax.xlane.f32.xlu1 %v4554_v12 }
0x1e2e   :  { %v4563_v7 = vpop.xlane.xlu0 %4562 }
0x1e2f   :  { %v4567_v25 = vmul.f32 0.015625, %v4563_v7 }
0x1e31   :  { %v4569_v44 = vsub.f32 %v4558_v30, %v4567_v25 }
0x1e32   :  { %v4556_v20 = vpop.xlane.xlu1 %4555 }
0x1e33   :  { %6520 = vrcp.f32 %v4556_v20  ;;  %v4571_v55 = vmul.f32 %v4569_v44, %v4569_v44 }
0x1e35   :  { %v4573_v39 = vsel %vm115_vm0, %v4571_v55, 0.0 }
0x1e36   :  { %4574 = vadd.xlane.f32.xlu0 %v4573_v39 }
0x1e3d   :  { %v6521_v26 = vpop.eup %6520 }
0x1e3e   :  { %v4560_v31 = vmul.f32 %v6521_v26, %v4549_v8 }
0x1e40   :  { %v4564_v59 = vsel %vm115_vm0, %v4560_v31, 0.0 }
0x1e41   :  { %4565 = vadd.xlane.f32.xlu1 %v4564_v59 }
0x1ec3   :  { %v4575_v1 = vpop.xlane.xlu0 %4574 }
0x1ec4   :  { %v4579_v48 = vmul.f32 0.015625, %v4575_v1 }
0x1ec6   :  { %v4581_v4 = vadd.f32 1e-05, %v4579_v48 }
0x1ec8   :  { %6522 = vrsqrt.f32 %v4581_v4 }
0x1ece   :  { %v4566_v27 = vpop.xlane.xlu1 %4565 }
0x1ecf   :  { %v4568_v45 = vmul.f32 0.015625, %v4566_v27 }
0x1ed1   :  { %v4570_v52 = vsub.f32 %v4560_v31, %v4568_v45 }
0x1ed2   :  { %v6523_v37 = vpop.eup %6522 }
0x1ed3   :  { %v4572_v28 = vmul.f32 %v4570_v52, %v4570_v52  ;;  %v4585_v6 = vmul.f32 %v6523_v37, %v4569_v44 }
0x1ed5   :  { %v4576_v11 = vsel %vm115_vm0, %v4572_v28, 0.0  ;;  %v4593_v13 = vmul.f32 %v5017_v62, %v4585_v6 }
0x1ed6   :  { %4577 = vadd.xlane.f32.xlu1 %v4576_v11 }
0x1ed7   :  { %5726 = vmatprep.mubr.msk.f32.mxu1 %vm115_vm0, %v4593_v13 }
0x1f63   :  { %v4578_v36 = vpop.xlane.xlu1 %4577 }
0x1f64   :  { %v4580_v46 = vmul.f32 0.015625, %v4578_v36 }
0x1f66   :  { %v4582_v32 = vadd.f32 1e-05, %v4580_v46 }
0x1f68   :  { %6524 = vrsqrt.f32 %v4582_v32 }
0x1f72   :  { %v6525_v23 = vpop.eup %6524 }
0x1f73   :  { %v4586_v24 = vmul.f32 %v6525_v23, %v4570_v52 }
0x1f75   :  { %v4594_v50 = vmul.f32 %v5017_v62, %v4586_v24 }
0x1f77   :  { %5727 = vmatmul.mubr.msk.f32.vlgmr.msra.gmra.mrb[82].mxu1 %vm115_vm0, %v4594_v50 }
0x204a   :  { %v5728_v40 = vpop.f32.mrb[82].mxu1 }
0x204b   :  { %4685 = vst.msk [vmem:[#allocation2 + $0x8] sm:$0xff] %vm115_vm0, %v5728_v40  ;;  %v4675_v21 = vpop.f32.mrb[83].mxu1 }
0x204c   :  { %4684 = vst.msk [vmem:[#allocation2] sm:$0xff] %vm115_vm0, %v4675_v21 }
0x204d   :  { %6583 = shalt.err (!%p6580_p4)
}
0x204e   :  { %s6584_s3 = scalar_lea.hbm %s9241_s18, 256 }
0x204f   :  { %p6585_p5 = scmp.ne.s32.totalorder %s9241_s18, %s6584_s3  ;;  %p6588_p6 = scmp.lt.u32.totalorder %s6584_s3, %s9241_s18 }
0x2051   :  { %p6590_p7 = pnand %p6588_p6, %p6585_p5 }
0x2053   :  { %6593 = shalt.err (!%p6590_p7)
}
0x2054   :  { %s6599_s23 = smov 128   ;;  %s6600_s11 = smov 8  }
0x2055   :  { %4697 = dma.vmem_to_hbm [thread:$0]  %s4692_s13, 256, %s9241_s18, [#allocation3], %s6599_s23, %s6599_s23, %s6600_s11  }
0x2056   :  { %6594 = dma.done.wait [#allocation3], 256  }
0x2057   :  { %6595 = vsyncadd [#allocation3], 4294967040 }
0x2058   :  { %4701 = vsyncpa [#allocation3], 1 }

</bundles_post_ra>
